<compile_context>
chip_gen: v6e
topology: v6e:2x2x1
jax: 0.10.0
libtpu: 0.0.40
codegen_flags: <defaults>
</compile_context>

<pallas_src>
import functools
import math

import jax
import jax.numpy as jnp
from jax.experimental import pallas as pl
from jax.experimental.pallas import tpu as pltpu


# ----------------------------------------------------------------------------
# Fused encoder-stack kernel
# ----------------------------------------------------------------------------

def _encoder_stack_kernel(
    # inputs
    x_ref, cross_ref,
    wq_ref, wkv_ref, wo_ref, w1_ref, w2_ref, wc_ref,
    vecs_ref, lnf_ref,
    # output
    out_ref,
    # scratch
    x_scr,
    *, n_heads, numconv1, eps):
  """One grid step = (batch-group g of Bt batches, cross-layer l).

  The activations for the Bt batches live in a (Bt*L, D) f32 VMEM scratch
  across the whole layer sweep (axis l is 'arbitrary'); the output is written
  once, lane-dense, at the last layer straight from vregs.
  """
  l = pl.program_id(1)
  last = pl.num_programs(1) - 1

  Bt, Lq, D = x_ref.shape
  S = cross_ref.shape[1]
  F = w1_ref.shape[-1]
  N = Bt * Lq
  dh = D // n_heads
  scale = 1.0 / math.sqrt(dh)

  @pl.when(l == 0)
  def _():
    x_scr[...] = x_ref[...].reshape(N, D).astype(jnp.float32)

  def mm(a, w):            # bf16 MXU inputs, f32 accumulation
    return jax.lax.dot_general(
        a.astype(jnp.bfloat16), w, (((1,), (0,)), ((), ())),
        preferred_element_type=jnp.float32)

  def ln(v, g, b):         # biased-variance LayerNorm (matches nn.LayerNorm)
    mu = jnp.mean(v, axis=-1, keepdims=True)
    vc = v - mu
    var = jnp.mean(vc * vc, axis=-1, keepdims=True)
    return vc * jax.lax.rsqrt(var + eps) * g + b

  # One coalesced (8, W) f32 block holds every small per-layer vector.
  vecs = vecs_ref[0]
  bq   = vecs[0:1, 0:D]
  bkv  = vecs[1:2, 0:2 * D]
  bo   = vecs[2:3, 0:D]
  ln1g = vecs[3:4, 0:D]
  ln1b = vecs[3:4, D:2 * D]
  b1   = vecs[4:5, 0:F]
  b2   = vecs[5:6, 0:D]
  ln2g = vecs[6:7, 0:D]
  ln2b = vecs[6:7, D:2 * D]
  bc   = vecs[7:8, 0:D]

  x = x_scr[...]                                   # (N, D)   f32, resident
  cr = cross_ref[...].reshape(Bt * S, D)           # (Bt*S,D) bf16, resident

  # --- multi-head cross attention ------------------------------------------
  q = mm(x, wq_ref[0]) + bq                        # (N, D)      f32
  kv = mm(cr, wkv_ref[0]) + bkv                    # (Bt*S, 2D)  f32, fused K|V
  k = kv[:, :D].astype(jnp.bfloat16)
  v = kv[:, D:].astype(jnp.bfloat16)

  wo = wo_ref[0]                                   # (D, D) bf16
  o_rows = []
  for b in range(Bt):                              # static batch loop
    rq = slice(b * Lq, (b + 1) * Lq)
    rk = slice(b * S, (b + 1) * S)
    o_b = bo                                       # (1, D), broadcasts
    for h in range(n_heads):                       # static head loop
      cs = slice(h * dh, (h + 1) * dh)
      qh = q[rq, cs].astype(jnp.bfloat16)
      s = jax.lax.dot_general(                     # (L, S) = qh @ kh^T
          qh, k[rk, cs], (((1,), (1,)), ((), ())),
          preferred_element_type=jnp.float32) * scale
      m = jnp.max(s, axis=-1, keepdims=True)
      p = jnp.exp(s - m)                           # unnormalized softmax
      denom = jnp.sum(p, axis=-1, keepdims=True)
      oh = jax.lax.dot_general(                    # (L, dh) = p @ vh
          p.astype(jnp.bfloat16), v[rk, cs], (((1,), (0,)), ((), ())),
          preferred_element_type=jnp.float32)
      oh = oh * pl.reciprocal(denom, approx=True)  # deferred 1/sum (EUP)
      o_b = o_b + mm(oh, wo[cs, :])                # Wo folded into head loop
    o_rows.append(o_b)
  o = jnp.concatenate(o_rows, axis=0)              # sublane-axis concat only

  x1 = ln(x + o, ln1g, ln1b)                       # residual + norm1

  # --- pointwise FFN (Conv1d k=1 == dense), ReLU ----------------------------
  y = jnp.maximum(mm(x1, w1_ref[0]) + b1, 0.0)
  y = mm(y, w2_ref[0]) + b2
  x2 = ln(x1 + y, ln2g, ln2b)                      # residual + norm2

  # --- Conv1d(k=3, pad=1) + ELU on the first `numconv1` layers --------------
  # Per-batch halos via pltpu.roll + batch-boundary masking; single scratch
  # store per layer (x2 never round-trips through VMEM before the conv).
  # TODO(synk): stand-in for ConvPoolLayer (class not provided in the spec).
  @pl.when(l < numconv1)
  def _():
    pos = jax.lax.broadcasted_iota(jnp.int32, x2.shape, 0) % Lq
    xp = jnp.where(pos == 0, 0.0, pltpu.roll(x2, 1, 0))          # x[i-1]
    xn = jnp.where(pos == Lq - 1, 0.0, pltpu.roll(x2, N - 1, 0))  # x[i+1]
    yc = (mm(xp, wc_ref[0, 0]) + mm(x2, wc_ref[0, 1])
          + mm(xn, wc_ref[0, 2]) + bc)
    yc = jnp.where(yc > 0.0, yc, jnp.exp(jnp.minimum(yc, 0.0)) - 1.0)  # ELU
    x_scr[...] = yc

  @pl.when((l >= numconv1) & (l < last))
  def _():
    x_scr[...] = x2

  # --- final LayerNorm + single lane-dense store on the last layer ----------
  # (numcross >= numconv1 + 1 guarantees the last layer is never a conv layer,
  #  so x2 is still in vregs: no scratch store/reload on the last layer.)
  @pl.when(l == last)
  def _():
    out_ref[...] = ln(x2, lnf_ref[0:1, :],
                      lnf_ref[1:2, :]).reshape(Bt, Lq, D).astype(out_ref.dtype)


# ----------------------------------------------------------------------------
# Wrapper (mirrors EncoderBlock.forward)
# ----------------------------------------------------------------------------

def encoder_block_forward(x, cross, params, n_heads, batch_tile=None):
  B, L, D = x.shape
  S = cross.shape[1]
  NC = params["Wq"].shape[0]
  F = params["W1"].shape[-1]
  W = params["vecs"].shape[-1]
  numconv1 = int(params["numconv1"])
  nconv_w = params["Wc"].shape[0]          # == max(numconv1, 1)

  Bt = batch_tile or B
  assert B % Bt == 0, "batch must be divisible by the batch tile"
  assert D % 128 == 0 and F % 128 == 0, "lane-dense dims required"
  assert L % 8 == 0 and S % 8 == 0, "sublane-aligned sequence lengths required"

  def per_layer(*tail):        # weight stacked over layers; layer index = l
    zeros = (0,) * len(tail)
    return pl.BlockSpec((1,) + tuple(tail), lambda g, l: (l,) + zeros)

  def per_group(n):            # activation tile; resident across the l sweep
    return pl.BlockSpec((Bt, n, D), lambda g, l: (g, 0, 0))

  # Non-conv layers re-use the last conv block (index clamp) -> no extra DMA.
  conv_spec = pl.BlockSpec(
      (1, 3, D, D), lambda g, l: (jnp.minimum(l, nconv_w - 1), 0, 0, 0))

  kernel = functools.partial(
      _encoder_stack_kernel, n_heads=n_heads, numconv1=numconv1, eps=1e-5)

  return pl.pallas_call(
      kernel,
      out_shape=jax.ShapeDtypeStruct((B, L, D), x.dtype),
      grid=(B // Bt, NC),
      in_specs=[
          per_group(L),                          # x        (bf16)
          per_group(S),                          # cross    (bf16)
          per_layer(D, D),                       # Wq
          per_layer(D, 2 * D),                   # Wkv (fused K|V)
          per_layer(D, D),                       # Wo
          per_layer(D, F),                       # W1
          per_layer(F, D),                       # W2
          conv_spec,                             # Wc
          per_layer(8, W),                       # packed biases / LN params
          pl.BlockSpec((2, D), lambda g, l: (0, 0)),   # last_extro_norm g|b
      ],
      out_specs=pl.BlockSpec((Bt, L, D), lambda g, l: (g, 0, 0)),
      scratch_shapes=[pltpu.VMEM((Bt * L, D), jnp.float32)],
      compiler_params=pltpu.CompilerParams(
          dimension_semantics=("parallel", "arbitrary")),
  )(x, cross,
    params["Wq"], params["Wkv"], params["Wo"],
    params["W1"], params["W2"], params["Wc"],
    params["vecs"], params["ln_last"])


# ----------------------------------------------------------------------------
# Parameter init (deterministic, synthetic).  Matmul weights bf16 (MXU native);
# all small per-layer vectors packed into one f32 (NC, 8, W) array.
# ----------------------------------------------------------------------------

def init_params(seed, d_model, d_ff, numcross, numconv1):
  if numcross < numconv1 + 1:
    raise ValueError(
        f"invalid parameter numconv1:{numconv1}; "
        f"->numcross:{numcross} should greater than numconv1 + 1")
  key = jax.random.PRNGKey(seed)
  counter = [0]

  def nrm(shape, scale=0.05, dtype=jnp.float32):
    counter[0] += 1
    w = scale * jax.random.normal(
        jax.random.fold_in(key, counter[0]), shape, dtype=jnp.float32)
    return w.astype(dtype)

  NC, D, F = numcross, d_model, d_ff
  W = max(F, 2 * D)
  bf16 = jnp.bfloat16

  # Packed per-layer vectors: row layout
  #   0: bq | 1: b_kv | 2: bo | 3: ln1_g, ln1_b | 4: b1 | 5: b2
  #   6: ln2_g, ln2_b | 7: bc (zero for non-conv layers, never read there)
  vecs = jnp.zeros((NC, 8, W), jnp.float32)
  vecs = vecs.at[:, 0, :D].set(nrm((NC, D)))
  vecs = vecs.at[:, 1, :2 * D].set(nrm((NC, 2 * D)))
  vecs = vecs.at[:, 2, :D].set(nrm((NC, D)))
  vecs = vecs.at[:, 3, :D].set(1.0)                 # ln1 gamma (beta stays 0)
  vecs = vecs.at[:, 4, :F].set(nrm((NC, F)))
  vecs = vecs.at[:, 5, :D].set(nrm((NC, D)))
  vecs = vecs.at[:, 6, :D].set(1.0)                 # ln2 gamma
  if numconv1 > 0:
    vecs = vecs.at[:numconv1, 7, :D].set(nrm((numconv1, D)))

  ln_last = jnp.concatenate(
      [jnp.ones((1, D), jnp.float32), jnp.zeros((1, D), jnp.float32)], axis=0)

  # Conv weights laid out (kernel, Cin, Cout); only the real conv layers are
  # stored (no zero padding — non-conv layers never DMA or read them).
  # NOTE: porting a real PyTorch Conv1d checkpoint requires transposing
  # (Cout, Cin, k) -> (k, Cin, Cout).
  return dict(
      Wq=nrm((NC, D, D), dtype=bf16),
      Wkv=nrm((NC, D, 2 * D), dtype=bf16),           # fused K|V projection
      Wo=nrm((NC, D, D), dtype=bf16),
      W1=nrm((NC, D, F), dtype=bf16),
      W2=nrm((NC, F, D), dtype=bf16),
      Wc=nrm((max(numconv1, 1), 3, D, D), dtype=bf16),
      vecs=vecs,
      ln_last=ln_last,
      numconv1=numconv1,
  )


# ----------------------------------------------------------------------------
# Main
# ----------------------------------------------------------------------------

if __name__ == "__main__":
  B, Bt, L, S = 8, 4, 16, 16          # B//Bt = 2 (even: feeds both v7x TCs)
  d_model, n_heads, d_ff = 128, 4, 256  # lane-dense: d_model == 128 lanes
  numcross, numconv1 = 3, 2

  key = jax.random.PRNGKey(0)
  kx, kc = jax.random.split(key)
  x = jax.random.normal(kx, (B, L, d_model), jnp.float32).astype(jnp.bfloat16)
  cross = jax.random.normal(kc, (B, S, d_model), jnp.float32).astype(jnp.bfloat16)

  params = init_params(1234, d_model, d_ff, numcross, numconv1)

  out = encoder_block_forward(x, cross, params, n_heads=n_heads, batch_tile=Bt)
  out = jax.block_until_ready(out)
  assert out.shape == (B, L, d_model)
  assert bool(jnp.all(jnp.isfinite(out.astype(jnp.float32))))
  print("KERNEL_OK")
</pallas_src>

<mosaic_0001>
module attributes {stable_mosaic.version = 11 : i64} {
  func.func @_encoder_stack_kernel(%arg0: i32, %arg1: i32, %arg2: memref<4x16x128xbf16, #tpu.memory_space<vmem>>, %arg3: memref<4x16x128xbf16, #tpu.memory_space<vmem>>, %arg4: memref<1x128x128xbf16, #tpu.memory_space<vmem>>, %arg5: memref<1x128x256xbf16, #tpu.memory_space<vmem>>, %arg6: memref<1x128x128xbf16, #tpu.memory_space<vmem>>, %arg7: memref<1x128x256xbf16, #tpu.memory_space<vmem>>, %arg8: memref<1x256x128xbf16, #tpu.memory_space<vmem>>, %arg9: memref<1x3x128x128xbf16, #tpu.memory_space<vmem>>, %arg10: memref<1x8x256xf32, #tpu.memory_space<vmem>>, %arg11: memref<2x128xf32, #tpu.memory_space<vmem>>, %arg12: memref<4x16x128xbf16, #tpu.memory_space<vmem>>, %arg13: memref<64x128xf32, #tpu.memory_space<vmem>>) attributes {dimension_semantics = [#tpu.dimension_semantics<parallel>, #tpu.dimension_semantics<arbitrary>], iteration_bounds = array<i64: 2, 3>, scalar_prefetch = 0 : i64, scratch_operands = 1 : i64, tpu.core_type = #tpu.core_type<tc>, window_params = [{transform_indices = @transform_0, window_bounds = array<i64: 4, 16, 128>}, {transform_indices = @transform_1, window_bounds = array<i64: 4, 16, 128>}, {transform_indices = @transform_2, window_bounds = array<i64: 1, 128, 128>}, {transform_indices = @transform_3, window_bounds = array<i64: 1, 128, 256>}, {transform_indices = @transform_4, window_bounds = array<i64: 1, 128, 128>}, {transform_indices = @transform_5, window_bounds = array<i64: 1, 128, 256>}, {transform_indices = @transform_6, window_bounds = array<i64: 1, 256, 128>}, {transform_indices = @transform_7, window_bounds = array<i64: 1, 3, 128, 128>}, {transform_indices = @transform_8, window_bounds = array<i64: 1, 8, 256>}, {pipeline_mode = #tpu.pipeline_mode<synchronous>, transform_indices = @transform_9, window_bounds = array<i64: 2, 128>}, {transform_indices = @transform_10, window_bounds = array<i64: 4, 16, 128>}]} {
    %c0_i32 = arith.constant 0 : i32
    %0 = arith.cmpi eq, %arg1, %c0_i32 : i32
    %1 = arith.extui %0 : i1 to i32
    %c0_i32_0 = arith.constant 0 : i32
    %2 = arith.cmpi ne, %1, %c0_i32_0 : i32
    scf.if %2 {
      %c0_139 = arith.constant 0 : index
      %c0_140 = arith.constant 0 : index
      %c0_141 = arith.constant 0 : index
      %475 = vector.load %arg2[%c0_139, %c0_140, %c0_141] : memref<4x16x128xbf16, #tpu.memory_space<vmem>>, vector<4x16x128xbf16>
      %476 = vector.shape_cast %475 : vector<4x16x128xbf16> to vector<64x128xbf16>
      %477 = arith.extf %476 : vector<64x128xbf16> to vector<64x128xf32>
      %c0_142 = arith.constant 0 : index
      %c0_143 = arith.constant 0 : index
      %478 = vector.load %arg13[%c0_142, %c0_143] : memref<64x128xf32, #tpu.memory_space<vmem>>, vector<64x128xf32>
      tpu.vector_store %arg13[%c0_142, %c0_143], %477 {strides = array<i32>} : memref<64x128xf32, #tpu.memory_space<vmem>>, vector<64x128xf32>,
    } else {
    }
    %c0 = arith.constant 0 : index
    %c0_1 = arith.constant 0 : index
    %c0_2 = arith.constant 0 : index
    %3 = vector.load %arg10[%c0, %c0_1, %c0_2] : memref<1x8x256xf32, #tpu.memory_space<vmem>>, vector<1x8x256xf32>
    %4 = vector.shape_cast %3 : vector<1x8x256xf32> to vector<8x256xf32>
    %5 = vector.extract_strided_slice %4 {offsets = [0, 0], sizes = [1, 128], strides = [1, 1]} : vector<8x256xf32> to vector<1x128xf32>
    %6 = vector.extract_strided_slice %4 {offsets = [1, 0], sizes = [1, 256], strides = [1, 1]} : vector<8x256xf32> to vector<1x256xf32>
    %7 = vector.extract_strided_slice %4 {offsets = [2, 0], sizes = [1, 128], strides = [1, 1]} : vector<8x256xf32> to vector<1x128xf32>
    %8 = vector.extract_strided_slice %4 {offsets = [3, 0], sizes = [1, 128], strides = [1, 1]} : vector<8x256xf32> to vector<1x128xf32>
    %9 = vector.extract_strided_slice %4 {offsets = [3, 128], sizes = [1, 128], strides = [1, 1]} : vector<8x256xf32> to vector<1x128xf32>
    %10 = vector.extract_strided_slice %4 {offsets = [4, 0], sizes = [1, 256], strides = [1, 1]} : vector<8x256xf32> to vector<1x256xf32>
    %11 = vector.extract_strided_slice %4 {offsets = [5, 0], sizes = [1, 128], strides = [1, 1]} : vector<8x256xf32> to vector<1x128xf32>
    %12 = vector.extract_strided_slice %4 {offsets = [6, 0], sizes = [1, 128], strides = [1, 1]} : vector<8x256xf32> to vector<1x128xf32>
    %13 = vector.extract_strided_slice %4 {offsets = [6, 128], sizes = [1, 128], strides = [1, 1]} : vector<8x256xf32> to vector<1x128xf32>
    %14 = vector.extract_strided_slice %4 {offsets = [7, 0], sizes = [1, 128], strides = [1, 1]} : vector<8x256xf32> to vector<1x128xf32>
    %c0_3 = arith.constant 0 : index
    %c0_4 = arith.constant 0 : index
    %15 = vector.load %arg13[%c0_3, %c0_4] : memref<64x128xf32, #tpu.memory_space<vmem>>, vector<64x128xf32>
    %c0_5 = arith.constant 0 : index
    %c0_6 = arith.constant 0 : index
    %c0_7 = arith.constant 0 : index
    %16 = vector.load %arg3[%c0_5, %c0_6, %c0_7] : memref<4x16x128xbf16, #tpu.memory_space<vmem>>, vector<4x16x128xbf16>
    %17 = vector.shape_cast %16 : vector<4x16x128xbf16> to vector<64x128xbf16>
    %c0_8 = arith.constant 0 : index
    %c0_9 = arith.constant 0 : index
    %c0_10 = arith.constant 0 : index
    %18 = vector.load %arg4[%c0_8, %c0_9, %c0_10] : memref<1x128x128xbf16, #tpu.memory_space<vmem>>, vector<1x128x128xbf16>
    %19 = vector.shape_cast %18 : vector<1x128x128xbf16> to vector<128x128xbf16>
    %20 = arith.truncf %15 : vector<64x128xf32> to vector<64x128xbf16>
    %cst = arith.constant dense<0.000000e+00> : vector<64x128xf32>
    %21 = tpu.matmul %20, %19, %cst {dimension_numbers = #tpu.dot_dimension_numbers<[1], [0], [0], [1], [0, 0, 1, 1], [], []>} : vector<64x128xbf16>, vector<128x128xbf16>, vector<64x128xf32> -> vector<64x128xf32>
    %22 = vector.broadcast %5 : vector<1x128xf32> to vector<64x128xf32>
    %23 = arith.addf %21, %22 : vector<64x128xf32>
    %c0_11 = arith.constant 0 : index
    %c0_12 = arith.constant 0 : index
    %c0_13 = arith.constant 0 : index
    %24 = vector.load %arg5[%c0_11, %c0_12, %c0_13] : memref<1x128x256xbf16, #tpu.memory_space<vmem>>, vector<1x128x256xbf16>
    %25 = vector.shape_cast %24 : vector<1x128x256xbf16> to vector<128x256xbf16>
    %cst_14 = arith.constant dense<0.000000e+00> : vector<64x256xf32>
    %26 = tpu.matmul %17, %25, %cst_14 {dimension_numbers = #tpu.dot_dimension_numbers<[1], [0], [0], [1], [0, 0, 1, 1], [], []>} : vector<64x128xbf16>, vector<128x256xbf16>, vector<64x256xf32> -> vector<64x256xf32>
    %27 = vector.broadcast %6 : vector<1x256xf32> to vector<64x256xf32>
    %28 = arith.addf %26, %27 : vector<64x256xf32>
    %29 = vector.extract_strided_slice %28 {offsets = [0, 0], sizes = [64, 128], strides = [1, 1]} : vector<64x256xf32> to vector<64x128xf32>
    %30 = arith.truncf %29 : vector<64x128xf32> to vector<64x128xbf16>
    %31 = vector.extract_strided_slice %28 {offsets = [0, 128], sizes = [64, 128], strides = [1, 1]} : vector<64x256xf32> to vector<64x128xf32>
    %32 = arith.truncf %31 : vector<64x128xf32> to vector<64x128xbf16>
    %c0_15 = arith.constant 0 : index
    %c0_16 = arith.constant 0 : index
    %c0_17 = arith.constant 0 : index
    %33 = vector.load %arg6[%c0_15, %c0_16, %c0_17] : memref<1x128x128xbf16, #tpu.memory_space<vmem>>, vector<1x128x128xbf16>
    %34 = vector.shape_cast %33 : vector<1x128x128xbf16> to vector<128x128xbf16>
    %35 = vector.extract_strided_slice %23 {offsets = [0, 0], sizes = [16, 32], strides = [1, 1]} : vector<64x128xf32> to vector<16x32xf32>
    %36 = arith.truncf %35 : vector<16x32xf32> to vector<16x32xbf16>
    %37 = vector.extract_strided_slice %30 {offsets = [0, 0], sizes = [16, 32], strides = [1, 1]} : vector<64x128xbf16> to vector<16x32xbf16>
    %cst_18 = arith.constant dense<0.000000e+00> : vector<16x16xf32>
    %38 = tpu.matmul %36, %37, %cst_18 {dimension_numbers = #tpu.dot_dimension_numbers<[1], [1], [0], [0], [0, 0, 1, 0], [], []>} : vector<16x32xbf16>, vector<16x32xbf16>, vector<16x16xf32> -> vector<16x16xf32>
    %cst_19 = arith.constant 0.176776692 : f32
    %39 = vector.broadcast %cst_19 : f32 to vector<16x16xf32>
    %40 = arith.mulf %38, %39 : vector<16x16xf32>
    %cst_20 = arith.constant dense<0xFF800000> : vector<16xf32>
    %41 = vector.multi_reduction <maximumf>, %40, %cst_20 [1] : vector<16x16xf32> to vector<16xf32>
    %42 = vector.shape_cast %41 : vector<16xf32> to vector<16x1xf32>
    %43 = vector.broadcast %42 : vector<16x1xf32> to vector<16x16xf32>
    %44 = arith.subf %40, %43 : vector<16x16xf32>
    %45 = math.exp %44 : vector<16x16xf32>
    %cst_21 = arith.constant dense<0.000000e+00> : vector<16xf32>
    %46 = vector.multi_reduction <add>, %45, %cst_21 [1] : vector<16x16xf32> to vector<16xf32>
    %47 = vector.shape_cast %46 : vector<16xf32> to vector<16x1xf32>
    %48 = arith.truncf %45 : vector<16x16xf32> to vector<16x16xbf16>
    %49 = vector.extract_strided_slice %32 {offsets = [0, 0], sizes = [16, 32], strides = [1, 1]} : vector<64x128xbf16> to vector<16x32xbf16>
    %cst_22 = arith.constant dense<0.000000e+00> : vector<16x32xf32>
    %50 = tpu.matmul %48, %49, %cst_22 {dimension_numbers = #tpu.dot_dimension_numbers<[1], [0], [0], [1], [0, 0, 1, 1], [], []>} : vector<16x16xbf16>, vector<16x32xbf16>, vector<16x32xf32> -> vector<16x32xf32>
    %51 = tpu.reciprocal %47 {approx = true} : vector<16x1xf32> -> vector<16x1xf32>
    %52 = vector.broadcast %51 : vector<16x1xf32> to vector<16x32xf32>
    %53 = arith.mulf %50, %52 : vector<16x32xf32>
    %54 = vector.extract_strided_slice %34 {offsets = [0, 0], sizes = [32, 128], strides = [1, 1]} : vector<128x128xbf16> to vector<32x128xbf16>
    %55 = arith.truncf %53 : vector<16x32xf32> to vector<16x32xbf16>
    %cst_23 = arith.constant dense<0.000000e+00> : vector<16x128xf32>
    %56 = tpu.matmul %55, %54, %cst_23 {dimension_numbers = #tpu.dot_dimension_numbers<[1], [0], [0], [1], [0, 0, 1, 1], [], []>} : vector<16x32xbf16>, vector<32x128xbf16>, vector<16x128xf32> -> vector<16x128xf32>
    %57 = vector.broadcast %7 : vector<1x128xf32> to vector<16x128xf32>
    %58 = arith.addf %57, %56 : vector<16x128xf32>
    %59 = vector.extract_strided_slice %23 {offsets = [0, 32], sizes = [16, 32], strides = [1, 1]} : vector<64x128xf32> to vector<16x32xf32>
    %60 = arith.truncf %59 : vector<16x32xf32> to vector<16x32xbf16>
    %61 = vector.extract_strided_slice %30 {offsets = [0, 32], sizes = [16, 32], strides = [1, 1]} : vector<64x128xbf16> to vector<16x32xbf16>
    %cst_24 = arith.constant dense<0.000000e+00> : vector<16x16xf32>
    %62 = tpu.matmul %60, %61, %cst_24 {dimension_numbers = #tpu.dot_dimension_numbers<[1], [1], [0], [0], [0, 0, 1, 0], [], []>} : vector<16x32xbf16>, vector<16x32xbf16>, vector<16x16xf32> -> vector<16x16xf32>
    %cst_25 = arith.constant 0.176776692 : f32
    %63 = vector.broadcast %cst_25 : f32 to vector<16x16xf32>
    %64 = arith.mulf %62, %63 : vector<16x16xf32>
    %cst_26 = arith.constant dense<0xFF800000> : vector<16xf32>
    %65 = vector.multi_reduction <maximumf>, %64, %cst_26 [1] : vector<16x16xf32> to vector<16xf32>
    %66 = vector.shape_cast %65 : vector<16xf32> to vector<16x1xf32>
    %67 = vector.broadcast %66 : vector<16x1xf32> to vector<16x16xf32>
    %68 = arith.subf %64, %67 : vector<16x16xf32>
    %69 = math.exp %68 : vector<16x16xf32>
    %cst_27 = arith.constant dense<0.000000e+00> : vector<16xf32>
    %70 = vector.multi_reduction <add>, %69, %cst_27 [1] : vector<16x16xf32> to vector<16xf32>
    %71 = vector.shape_cast %70 : vector<16xf32> to vector<16x1xf32>
    %72 = arith.truncf %69 : vector<16x16xf32> to vector<16x16xbf16>
    %73 = vector.extract_strided_slice %32 {offsets = [0, 32], sizes = [16, 32], strides = [1, 1]} : vector<64x128xbf16> to vector<16x32xbf16>
    %cst_28 = arith.constant dense<0.000000e+00> : vector<16x32xf32>
    %74 = tpu.matmul %72, %73, %cst_28 {dimension_numbers = #tpu.dot_dimension_numbers<[1], [0], [0], [1], [0, 0, 1, 1], [], []>} : vector<16x16xbf16>, vector<16x32xbf16>, vector<16x32xf32> -> vector<16x32xf32>
    %75 = tpu.reciprocal %71 {approx = true} : vector<16x1xf32> -> vector<16x1xf32>
    %76 = vector.broadcast %75 : vector<16x1xf32> to vector<16x32xf32>
    %77 = arith.mulf %74, %76 : vector<16x32xf32>
    %78 = vector.extract_strided_slice %34 {offsets = [32, 0], sizes = [32, 128], strides = [1, 1]} : vector<128x128xbf16> to vector<32x128xbf16>
    %79 = arith.truncf %77 : vector<16x32xf32> to vector<16x32xbf16>
    %cst_29 = arith.constant dense<0.000000e+00> : vector<16x128xf32>
    %80 = tpu.matmul %79, %78, %cst_29 {dimension_numbers = #tpu.dot_dimension_numbers<[1], [0], [0], [1], [0, 0, 1, 1], [], []>} : vector<16x32xbf16>, vector<32x128xbf16>, vector<16x128xf32> -> vector<16x128xf32>
    %81 = arith.addf %58, %80 : vector<16x128xf32>
    %82 = vector.extract_strided_slice %23 {offsets = [0, 64], sizes = [16, 32], strides = [1, 1]} : vector<64x128xf32> to vector<16x32xf32>
    %83 = arith.truncf %82 : vector<16x32xf32> to vector<16x32xbf16>
    %84 = vector.extract_strided_slice %30 {offsets = [0, 64], sizes = [16, 32], strides = [1, 1]} : vector<64x128xbf16> to vector<16x32xbf16>
    %cst_30 = arith.constant dense<0.000000e+00> : vector<16x16xf32>
    %85 = tpu.matmul %83, %84, %cst_30 {dimension_numbers = #tpu.dot_dimension_numbers<[1], [1], [0], [0], [0, 0, 1, 0], [], []>} : vector<16x32xbf16>, vector<16x32xbf16>, vector<16x16xf32> -> vector<16x16xf32>
    %cst_31 = arith.constant 0.176776692 : f32
    %86 = vector.broadcast %cst_31 : f32 to vector<16x16xf32>
    %87 = arith.mulf %85, %86 : vector<16x16xf32>
    %cst_32 = arith.constant dense<0xFF800000> : vector<16xf32>
    %88 = vector.multi_reduction <maximumf>, %87, %cst_32 [1] : vector<16x16xf32> to vector<16xf32>
    %89 = vector.shape_cast %88 : vector<16xf32> to vector<16x1xf32>
    %90 = vector.broadcast %89 : vector<16x1xf32> to vector<16x16xf32>
    %91 = arith.subf %87, %90 : vector<16x16xf32>
    %92 = math.exp %91 : vector<16x16xf32>
    %cst_33 = arith.constant dense<0.000000e+00> : vector<16xf32>
    %93 = vector.multi_reduction <add>, %92, %cst_33 [1] : vector<16x16xf32> to vector<16xf32>
    %94 = vector.shape_cast %93 : vector<16xf32> to vector<16x1xf32>
    %95 = arith.truncf %92 : vector<16x16xf32> to vector<16x16xbf16>
    %96 = vector.extract_strided_slice %32 {offsets = [0, 64], sizes = [16, 32], strides = [1, 1]} : vector<64x128xbf16> to vector<16x32xbf16>
    %cst_34 = arith.constant dense<0.000000e+00> : vector<16x32xf32>
    %97 = tpu.matmul %95, %96, %cst_34 {dimension_numbers = #tpu.dot_dimension_numbers<[1], [0], [0], [1], [0, 0, 1, 1], [], []>} : vector<16x16xbf16>, vector<16x32xbf16>, vector<16x32xf32> -> vector<16x32xf32>
    %98 = tpu.reciprocal %94 {approx = true} : vector<16x1xf32> -> vector<16x1xf32>
    %99 = vector.broadcast %98 : vector<16x1xf32> to vector<16x32xf32>
    %100 = arith.mulf %97, %99 : vector<16x32xf32>
    %101 = vector.extract_strided_slice %34 {offsets = [64, 0], sizes = [32, 128], strides = [1, 1]} : vector<128x128xbf16> to vector<32x128xbf16>
    %102 = arith.truncf %100 : vector<16x32xf32> to vector<16x32xbf16>
    %cst_35 = arith.constant dense<0.000000e+00> : vector<16x128xf32>
    %103 = tpu.matmul %102, %101, %cst_35 {dimension_numbers = #tpu.dot_dimension_numbers<[1], [0], [0], [1], [0, 0, 1, 1], [], []>} : vector<16x32xbf16>, vector<32x128xbf16>, vector<16x128xf32> -> vector<16x128xf32>
    %104 = arith.addf %81, %103 : vector<16x128xf32>
    %105 = vector.extract_strided_slice %23 {offsets = [0, 96], sizes = [16, 32], strides = [1, 1]} : vector<64x128xf32> to vector<16x32xf32>
    %106 = arith.truncf %105 : vector<16x32xf32> to vector<16x32xbf16>
    %107 = vector.extract_strided_slice %30 {offsets = [0, 96], sizes = [16, 32], strides = [1, 1]} : vector<64x128xbf16> to vector<16x32xbf16>
    %cst_36 = arith.constant dense<0.000000e+00> : vector<16x16xf32>
    %108 = tpu.matmul %106, %107, %cst_36 {dimension_numbers = #tpu.dot_dimension_numbers<[1], [1], [0], [0], [0, 0, 1, 0], [], []>} : vector<16x32xbf16>, vector<16x32xbf16>, vector<16x16xf32> -> vector<16x16xf32>
    %cst_37 = arith.constant 0.176776692 : f32
    %109 = vector.broadcast %cst_37 : f32 to vector<16x16xf32>
    %110 = arith.mulf %108, %109 : vector<16x16xf32>
    %cst_38 = arith.constant dense<0xFF800000> : vector<16xf32>
    %111 = vector.multi_reduction <maximumf>, %110, %cst_38 [1] : vector<16x16xf32> to vector<16xf32>
    %112 = vector.shape_cast %111 : vector<16xf32> to vector<16x1xf32>
    %113 = vector.broadcast %112 : vector<16x1xf32> to vector<16x16xf32>
    %114 = arith.subf %110, %113 : vector<16x16xf32>
    %115 = math.exp %114 : vector<16x16xf32>
    %cst_39 = arith.constant dense<0.000000e+00> : vector<16xf32>
    %116 = vector.multi_reduction <add>, %115, %cst_39 [1] : vector<16x16xf32> to vector<16xf32>
    %117 = vector.shape_cast %116 : vector<16xf32> to vector<16x1xf32>
    %118 = arith.truncf %115 : vector<16x16xf32> to vector<16x16xbf16>
    %119 = vector.extract_strided_slice %32 {offsets = [0, 96], sizes = [16, 32], strides = [1, 1]} : vector<64x128xbf16> to vector<16x32xbf16>
    %cst_40 = arith.constant dense<0.000000e+00> : vector<16x32xf32>
    %120 = tpu.matmul %118, %119, %cst_40 {dimension_numbers = #tpu.dot_dimension_numbers<[1], [0], [0], [1], [0, 0, 1, 1], [], []>} : vector<16x16xbf16>, vector<16x32xbf16>, vector<16x32xf32> -> vector<16x32xf32>
    %121 = tpu.reciprocal %117 {approx = true} : vector<16x1xf32> -> vector<16x1xf32>
    %122 = vector.broadcast %121 : vector<16x1xf32> to vector<16x32xf32>
    %123 = arith.mulf %120, %122 : vector<16x32xf32>
    %124 = vector.extract_strided_slice %34 {offsets = [96, 0], sizes = [32, 128], strides = [1, 1]} : vector<128x128xbf16> to vector<32x128xbf16>
    %125 = arith.truncf %123 : vector<16x32xf32> to vector<16x32xbf16>
    %cst_41 = arith.constant dense<0.000000e+00> : vector<16x128xf32>
    %126 = tpu.matmul %125, %124, %cst_41 {dimension_numbers = #tpu.dot_dimension_numbers<[1], [0], [0], [1], [0, 0, 1, 1], [], []>} : vector<16x32xbf16>, vector<32x128xbf16>, vector<16x128xf32> -> vector<16x128xf32>
    %127 = arith.addf %104, %126 : vector<16x128xf32>
    %128 = vector.extract_strided_slice %23 {offsets = [16, 0], sizes = [16, 32], strides = [1, 1]} : vector<64x128xf32> to vector<16x32xf32>
    %129 = arith.truncf %128 : vector<16x32xf32> to vector<16x32xbf16>
    %130 = vector.extract_strided_slice %30 {offsets = [16, 0], sizes = [16, 32], strides = [1, 1]} : vector<64x128xbf16> to vector<16x32xbf16>
    %cst_42 = arith.constant dense<0.000000e+00> : vector<16x16xf32>
    %131 = tpu.matmul %129, %130, %cst_42 {dimension_numbers = #tpu.dot_dimension_numbers<[1], [1], [0], [0], [0, 0, 1, 0], [], []>} : vector<16x32xbf16>, vector<16x32xbf16>, vector<16x16xf32> -> vector<16x16xf32>
    %cst_43 = arith.constant 0.176776692 : f32
    %132 = vector.broadcast %cst_43 : f32 to vector<16x16xf32>
    %133 = arith.mulf %131, %132 : vector<16x16xf32>
    %cst_44 = arith.constant dense<0xFF800000> : vector<16xf32>
    %134 = vector.multi_reduction <maximumf>, %133, %cst_44 [1] : vector<16x16xf32> to vector<16xf32>
    %135 = vector.shape_cast %134 : vector<16xf32> to vector<16x1xf32>
    %136 = vector.broadcast %135 : vector<16x1xf32> to vector<16x16xf32>
    %137 = arith.subf %133, %136 : vector<16x16xf32>
    %138 = math.exp %137 : vector<16x16xf32>
    %cst_45 = arith.constant dense<0.000000e+00> : vector<16xf32>
    %139 = vector.multi_reduction <add>, %138, %cst_45 [1] : vector<16x16xf32> to vector<16xf32>
    %140 = vector.shape_cast %139 : vector<16xf32> to vector<16x1xf32>
    %141 = arith.truncf %138 : vector<16x16xf32> to vector<16x16xbf16>
    %142 = vector.extract_strided_slice %32 {offsets = [16, 0], sizes = [16, 32], strides = [1, 1]} : vector<64x128xbf16> to vector<16x32xbf16>
    %cst_46 = arith.constant dense<0.000000e+00> : vector<16x32xf32>
    %143 = tpu.matmul %141, %142, %cst_46 {dimension_numbers = #tpu.dot_dimension_numbers<[1], [0], [0], [1], [0, 0, 1, 1], [], []>} : vector<16x16xbf16>, vector<16x32xbf16>, vector<16x32xf32> -> vector<16x32xf32>
    %144 = tpu.reciprocal %140 {approx = true} : vector<16x1xf32> -> vector<16x1xf32>
    %145 = vector.broadcast %144 : vector<16x1xf32> to vector<16x32xf32>
    %146 = arith.mulf %143, %145 : vector<16x32xf32>
    %147 = vector.extract_strided_slice %34 {offsets = [0, 0], sizes = [32, 128], strides = [1, 1]} : vector<128x128xbf16> to vector<32x128xbf16>
    %148 = arith.truncf %146 : vector<16x32xf32> to vector<16x32xbf16>
    %cst_47 = arith.constant dense<0.000000e+00> : vector<16x128xf32>
    %149 = tpu.matmul %148, %147, %cst_47 {dimension_numbers = #tpu.dot_dimension_numbers<[1], [0], [0], [1], [0, 0, 1, 1], [], []>} : vector<16x32xbf16>, vector<32x128xbf16>, vector<16x128xf32> -> vector<16x128xf32>
    %150 = vector.broadcast %7 : vector<1x128xf32> to vector<16x128xf32>
    %151 = arith.addf %150, %149 : vector<16x128xf32>
    %152 = vector.extract_strided_slice %23 {offsets = [16, 32], sizes = [16, 32], strides = [1, 1]} : vector<64x128xf32> to vector<16x32xf32>
    %153 = arith.truncf %152 : vector<16x32xf32> to vector<16x32xbf16>
    %154 = vector.extract_strided_slice %30 {offsets = [16, 32], sizes = [16, 32], strides = [1, 1]} : vector<64x128xbf16> to vector<16x32xbf16>
    %cst_48 = arith.constant dense<0.000000e+00> : vector<16x16xf32>
    %155 = tpu.matmul %153, %154, %cst_48 {dimension_numbers = #tpu.dot_dimension_numbers<[1], [1], [0], [0], [0, 0, 1, 0], [], []>} : vector<16x32xbf16>, vector<16x32xbf16>, vector<16x16xf32> -> vector<16x16xf32>
    %cst_49 = arith.constant 0.176776692 : f32
    %156 = vector.broadcast %cst_49 : f32 to vector<16x16xf32>
    %157 = arith.mulf %155, %156 : vector<16x16xf32>
    %cst_50 = arith.constant dense<0xFF800000> : vector<16xf32>
    %158 = vector.multi_reduction <maximumf>, %157, %cst_50 [1] : vector<16x16xf32> to vector<16xf32>
    %159 = vector.shape_cast %158 : vector<16xf32> to vector<16x1xf32>
    %160 = vector.broadcast %159 : vector<16x1xf32> to vector<16x16xf32>
    %161 = arith.subf %157, %160 : vector<16x16xf32>
    %162 = math.exp %161 : vector<16x16xf32>
    %cst_51 = arith.constant dense<0.000000e+00> : vector<16xf32>
    %163 = vector.multi_reduction <add>, %162, %cst_51 [1] : vector<16x16xf32> to vector<16xf32>
    %164 = vector.shape_cast %163 : vector<16xf32> to vector<16x1xf32>
    %165 = arith.truncf %162 : vector<16x16xf32> to vector<16x16xbf16>
    %166 = vector.extract_strided_slice %32 {offsets = [16, 32], sizes = [16, 32], strides = [1, 1]} : vector<64x128xbf16> to vector<16x32xbf16>
    %cst_52 = arith.constant dense<0.000000e+00> : vector<16x32xf32>
    %167 = tpu.matmul %165, %166, %cst_52 {dimension_numbers = #tpu.dot_dimension_numbers<[1], [0], [0], [1], [0, 0, 1, 1], [], []>} : vector<16x16xbf16>, vector<16x32xbf16>, vector<16x32xf32> -> vector<16x32xf32>
    %168 = tpu.reciprocal %164 {approx = true} : vector<16x1xf32> -> vector<16x1xf32>
    %169 = vector.broadcast %168 : vector<16x1xf32> to vector<16x32xf32>
    %170 = arith.mulf %167, %169 : vector<16x32xf32>
    %171 = vector.extract_strided_slice %34 {offsets = [32, 0], sizes = [32, 128], strides = [1, 1]} : vector<128x128xbf16> to vector<32x128xbf16>
    %172 = arith.truncf %170 : vector<16x32xf32> to vector<16x32xbf16>
    %cst_53 = arith.constant dense<0.000000e+00> : vector<16x128xf32>
    %173 = tpu.matmul %172, %171, %cst_53 {dimension_numbers = #tpu.dot_dimension_numbers<[1], [0], [0], [1], [0, 0, 1, 1], [], []>} : vector<16x32xbf16>, vector<32x128xbf16>, vector<16x128xf32> -> vector<16x128xf32>
    %174 = arith.addf %151, %173 : vector<16x128xf32>
    %175 = vector.extract_strided_slice %23 {offsets = [16, 64], sizes = [16, 32], strides = [1, 1]} : vector<64x128xf32> to vector<16x32xf32>
    %176 = arith.truncf %175 : vector<16x32xf32> to vector<16x32xbf16>
    %177 = vector.extract_strided_slice %30 {offsets = [16, 64], sizes = [16, 32], strides = [1, 1]} : vector<64x128xbf16> to vector<16x32xbf16>
    %cst_54 = arith.constant dense<0.000000e+00> : vector<16x16xf32>
    %178 = tpu.matmul %176, %177, %cst_54 {dimension_numbers = #tpu.dot_dimension_numbers<[1], [1], [0], [0], [0, 0, 1, 0], [], []>} : vector<16x32xbf16>, vector<16x32xbf16>, vector<16x16xf32> -> vector<16x16xf32>
    %cst_55 = arith.constant 0.176776692 : f32
    %179 = vector.broadcast %cst_55 : f32 to vector<16x16xf32>
    %180 = arith.mulf %178, %179 : vector<16x16xf32>
    %cst_56 = arith.constant dense<0xFF800000> : vector<16xf32>
    %181 = vector.multi_reduction <maximumf>, %180, %cst_56 [1] : vector<16x16xf32> to vector<16xf32>
    %182 = vector.shape_cast %181 : vector<16xf32> to vector<16x1xf32>
    %183 = vector.broadcast %182 : vector<16x1xf32> to vector<16x16xf32>
    %184 = arith.subf %180, %183 : vector<16x16xf32>
    %185 = math.exp %184 : vector<16x16xf32>
    %cst_57 = arith.constant dense<0.000000e+00> : vector<16xf32>
    %186 = vector.multi_reduction <add>, %185, %cst_57 [1] : vector<16x16xf32> to vector<16xf32>
    %187 = vector.shape_cast %186 : vector<16xf32> to vector<16x1xf32>
    %188 = arith.truncf %185 : vector<16x16xf32> to vector<16x16xbf16>
    %189 = vector.extract_strided_slice %32 {offsets = [16, 64], sizes = [16, 32], strides = [1, 1]} : vector<64x128xbf16> to vector<16x32xbf16>
    %cst_58 = arith.constant dense<0.000000e+00> : vector<16x32xf32>
    %190 = tpu.matmul %188, %189, %cst_58 {dimension_numbers = #tpu.dot_dimension_numbers<[1], [0], [0], [1], [0, 0, 1, 1], [], []>} : vector<16x16xbf16>, vector<16x32xbf16>, vector<16x32xf32> -> vector<16x32xf32>
    %191 = tpu.reciprocal %187 {approx = true} : vector<16x1xf32> -> vector<16x1xf32>
    %192 = vector.broadcast %191 : vector<16x1xf32> to vector<16x32xf32>
    %193 = arith.mulf %190, %192 : vector<16x32xf32>
    %194 = vector.extract_strided_slice %34 {offsets = [64, 0], sizes = [32, 128], strides = [1, 1]} : vector<128x128xbf16> to vector<32x128xbf16>
    %195 = arith.truncf %193 : vector<16x32xf32> to vector<16x32xbf16>
    %cst_59 = arith.constant dense<0.000000e+00> : vector<16x128xf32>
    %196 = tpu.matmul %195, %194, %cst_59 {dimension_numbers = #tpu.dot_dimension_numbers<[1], [0], [0], [1], [0, 0, 1, 1], [], []>} : vector<16x32xbf16>, vector<32x128xbf16>, vector<16x128xf32> -> vector<16x128xf32>
    %197 = arith.addf %174, %196 : vector<16x128xf32>
    %198 = vector.extract_strided_slice %23 {offsets = [16, 96], sizes = [16, 32], strides = [1, 1]} : vector<64x128xf32> to vector<16x32xf32>
    %199 = arith.truncf %198 : vector<16x32xf32> to vector<16x32xbf16>
    %200 = vector.extract_strided_slice %30 {offsets = [16, 96], sizes = [16, 32], strides = [1, 1]} : vector<64x128xbf16> to vector<16x32xbf16>
    %cst_60 = arith.constant dense<0.000000e+00> : vector<16x16xf32>
    %201 = tpu.matmul %199, %200, %cst_60 {dimension_numbers = #tpu.dot_dimension_numbers<[1], [1], [0], [0], [0, 0, 1, 0], [], []>} : vector<16x32xbf16>, vector<16x32xbf16>, vector<16x16xf32> -> vector<16x16xf32>
    %cst_61 = arith.constant 0.176776692 : f32
    %202 = vector.broadcast %cst_61 : f32 to vector<16x16xf32>
    %203 = arith.mulf %201, %202 : vector<16x16xf32>
    %cst_62 = arith.constant dense<0xFF800000> : vector<16xf32>
    %204 = vector.multi_reduction <maximumf>, %203, %cst_62 [1] : vector<16x16xf32> to vector<16xf32>
    %205 = vector.shape_cast %204 : vector<16xf32> to vector<16x1xf32>
    %206 = vector.broadcast %205 : vector<16x1xf32> to vector<16x16xf32>
    %207 = arith.subf %203, %206 : vector<16x16xf32>
    %208 = math.exp %207 : vector<16x16xf32>
    %cst_63 = arith.constant dense<0.000000e+00> : vector<16xf32>
    %209 = vector.multi_reduction <add>, %208, %cst_63 [1] : vector<16x16xf32> to vector<16xf32>
    %210 = vector.shape_cast %209 : vector<16xf32> to vector<16x1xf32>
    %211 = arith.truncf %208 : vector<16x16xf32> to vector<16x16xbf16>
    %212 = vector.extract_strided_slice %32 {offsets = [16, 96], sizes = [16, 32], strides = [1, 1]} : vector<64x128xbf16> to vector<16x32xbf16>
    %cst_64 = arith.constant dense<0.000000e+00> : vector<16x32xf32>
    %213 = tpu.matmul %211, %212, %cst_64 {dimension_numbers = #tpu.dot_dimension_numbers<[1], [0], [0], [1], [0, 0, 1, 1], [], []>} : vector<16x16xbf16>, vector<16x32xbf16>, vector<16x32xf32> -> vector<16x32xf32>
    %214 = tpu.reciprocal %210 {approx = true} : vector<16x1xf32> -> vector<16x1xf32>
    %215 = vector.broadcast %214 : vector<16x1xf32> to vector<16x32xf32>
    %216 = arith.mulf %213, %215 : vector<16x32xf32>
    %217 = vector.extract_strided_slice %34 {offsets = [96, 0], sizes = [32, 128], strides = [1, 1]} : vector<128x128xbf16> to vector<32x128xbf16>
    %218 = arith.truncf %216 : vector<16x32xf32> to vector<16x32xbf16>
    %cst_65 = arith.constant dense<0.000000e+00> : vector<16x128xf32>
    %219 = tpu.matmul %218, %217, %cst_65 {dimension_numbers = #tpu.dot_dimension_numbers<[1], [0], [0], [1], [0, 0, 1, 1], [], []>} : vector<16x32xbf16>, vector<32x128xbf16>, vector<16x128xf32> -> vector<16x128xf32>
    %220 = arith.addf %197, %219 : vector<16x128xf32>
    %221 = vector.extract_strided_slice %23 {offsets = [32, 0], sizes = [16, 32], strides = [1, 1]} : vector<64x128xf32> to vector<16x32xf32>
    %222 = arith.truncf %221 : vector<16x32xf32> to vector<16x32xbf16>
    %223 = vector.extract_strided_slice %30 {offsets = [32, 0], sizes = [16, 32], strides = [1, 1]} : vector<64x128xbf16> to vector<16x32xbf16>
    %cst_66 = arith.constant dense<0.000000e+00> : vector<16x16xf32>
    %224 = tpu.matmul %222, %223, %cst_66 {dimension_numbers = #tpu.dot_dimension_numbers<[1], [1], [0], [0], [0, 0, 1, 0], [], []>} : vector<16x32xbf16>, vector<16x32xbf16>, vector<16x16xf32> -> vector<16x16xf32>
    %cst_67 = arith.constant 0.176776692 : f32
    %225 = vector.broadcast %cst_67 : f32 to vector<16x16xf32>
    %226 = arith.mulf %224, %225 : vector<16x16xf32>
    %cst_68 = arith.constant dense<0xFF800000> : vector<16xf32>
    %227 = vector.multi_reduction <maximumf>, %226, %cst_68 [1] : vector<16x16xf32> to vector<16xf32>
    %228 = vector.shape_cast %227 : vector<16xf32> to vector<16x1xf32>
    %229 = vector.broadcast %228 : vector<16x1xf32> to vector<16x16xf32>
    %230 = arith.subf %226, %229 : vector<16x16xf32>
    %231 = math.exp %230 : vector<16x16xf32>
    %cst_69 = arith.constant dense<0.000000e+00> : vector<16xf32>
    %232 = vector.multi_reduction <add>, %231, %cst_69 [1] : vector<16x16xf32> to vector<16xf32>
    %233 = vector.shape_cast %232 : vector<16xf32> to vector<16x1xf32>
    %234 = arith.truncf %231 : vector<16x16xf32> to vector<16x16xbf16>
    %235 = vector.extract_strided_slice %32 {offsets = [32, 0], sizes = [16, 32], strides = [1, 1]} : vector<64x128xbf16> to vector<16x32xbf16>
    %cst_70 = arith.constant dense<0.000000e+00> : vector<16x32xf32>
    %236 = tpu.matmul %234, %235, %cst_70 {dimension_numbers = #tpu.dot_dimension_numbers<[1], [0], [0], [1], [0, 0, 1, 1], [], []>} : vector<16x16xbf16>, vector<16x32xbf16>, vector<16x32xf32> -> vector<16x32xf32>
    %237 = tpu.reciprocal %233 {approx = true} : vector<16x1xf32> -> vector<16x1xf32>
    %238 = vector.broadcast %237 : vector<16x1xf32> to vector<16x32xf32>
    %239 = arith.mulf %236, %238 : vector<16x32xf32>
    %240 = vector.extract_strided_slice %34 {offsets = [0, 0], sizes = [32, 128], strides = [1, 1]} : vector<128x128xbf16> to vector<32x128xbf16>
    %241 = arith.truncf %239 : vector<16x32xf32> to vector<16x32xbf16>
    %cst_71 = arith.constant dense<0.000000e+00> : vector<16x128xf32>
    %242 = tpu.matmul %241, %240, %cst_71 {dimension_numbers = #tpu.dot_dimension_numbers<[1], [0], [0], [1], [0, 0, 1, 1], [], []>} : vector<16x32xbf16>, vector<32x128xbf16>, vector<16x128xf32> -> vector<16x128xf32>
    %243 = vector.broadcast %7 : vector<1x128xf32> to vector<16x128xf32>
    %244 = arith.addf %243, %242 : vector<16x128xf32>
    %245 = vector.extract_strided_slice %23 {offsets = [32, 32], sizes = [16, 32], strides = [1, 1]} : vector<64x128xf32> to vector<16x32xf32>
    %246 = arith.truncf %245 : vector<16x32xf32> to vector<16x32xbf16>
    %247 = vector.extract_strided_slice %30 {offsets = [32, 32], sizes = [16, 32], strides = [1, 1]} : vector<64x128xbf16> to vector<16x32xbf16>
    %cst_72 = arith.constant dense<0.000000e+00> : vector<16x16xf32>
    %248 = tpu.matmul %246, %247, %cst_72 {dimension_numbers = #tpu.dot_dimension_numbers<[1], [1], [0], [0], [0, 0, 1, 0], [], []>} : vector<16x32xbf16>, vector<16x32xbf16>, vector<16x16xf32> -> vector<16x16xf32>
    %cst_73 = arith.constant 0.176776692 : f32
    %249 = vector.broadcast %cst_73 : f32 to vector<16x16xf32>
    %250 = arith.mulf %248, %249 : vector<16x16xf32>
    %cst_74 = arith.constant dense<0xFF800000> : vector<16xf32>
    %251 = vector.multi_reduction <maximumf>, %250, %cst_74 [1] : vector<16x16xf32> to vector<16xf32>
    %252 = vector.shape_cast %251 : vector<16xf32> to vector<16x1xf32>
    %253 = vector.broadcast %252 : vector<16x1xf32> to vector<16x16xf32>
    %254 = arith.subf %250, %253 : vector<16x16xf32>
    %255 = math.exp %254 : vector<16x16xf32>
    %cst_75 = arith.constant dense<0.000000e+00> : vector<16xf32>
    %256 = vector.multi_reduction <add>, %255, %cst_75 [1] : vector<16x16xf32> to vector<16xf32>
    %257 = vector.shape_cast %256 : vector<16xf32> to vector<16x1xf32>
    %258 = arith.truncf %255 : vector<16x16xf32> to vector<16x16xbf16>
    %259 = vector.extract_strided_slice %32 {offsets = [32, 32], sizes = [16, 32], strides = [1, 1]} : vector<64x128xbf16> to vector<16x32xbf16>
    %cst_76 = arith.constant dense<0.000000e+00> : vector<16x32xf32>
    %260 = tpu.matmul %258, %259, %cst_76 {dimension_numbers = #tpu.dot_dimension_numbers<[1], [0], [0], [1], [0, 0, 1, 1], [], []>} : vector<16x16xbf16>, vector<16x32xbf16>, vector<16x32xf32> -> vector<16x32xf32>
    %261 = tpu.reciprocal %257 {approx = true} : vector<16x1xf32> -> vector<16x1xf32>
    %262 = vector.broadcast %261 : vector<16x1xf32> to vector<16x32xf32>
    %263 = arith.mulf %260, %262 : vector<16x32xf32>
    %264 = vector.extract_strided_slice %34 {offsets = [32, 0], sizes = [32, 128], strides = [1, 1]} : vector<128x128xbf16> to vector<32x128xbf16>
    %265 = arith.truncf %263 : vector<16x32xf32> to vector<16x32xbf16>
    %cst_77 = arith.constant dense<0.000000e+00> : vector<16x128xf32>
    %266 = tpu.matmul %265, %264, %cst_77 {dimension_numbers = #tpu.dot_dimension_numbers<[1], [0], [0], [1], [0, 0, 1, 1], [], []>} : vector<16x32xbf16>, vector<32x128xbf16>, vector<16x128xf32> -> vector<16x128xf32>
    %267 = arith.addf %244, %266 : vector<16x128xf32>
    %268 = vector.extract_strided_slice %23 {offsets = [32, 64], sizes = [16, 32], strides = [1, 1]} : vector<64x128xf32> to vector<16x32xf32>
    %269 = arith.truncf %268 : vector<16x32xf32> to vector<16x32xbf16>
    %270 = vector.extract_strided_slice %30 {offsets = [32, 64], sizes = [16, 32], strides = [1, 1]} : vector<64x128xbf16> to vector<16x32xbf16>
    %cst_78 = arith.constant dense<0.000000e+00> : vector<16x16xf32>
    %271 = tpu.matmul %269, %270, %cst_78 {dimension_numbers = #tpu.dot_dimension_numbers<[1], [1], [0], [0], [0, 0, 1, 0], [], []>} : vector<16x32xbf16>, vector<16x32xbf16>, vector<16x16xf32> -> vector<16x16xf32>
    %cst_79 = arith.constant 0.176776692 : f32
    %272 = vector.broadcast %cst_79 : f32 to vector<16x16xf32>
    %273 = arith.mulf %271, %272 : vector<16x16xf32>
    %cst_80 = arith.constant dense<0xFF800000> : vector<16xf32>
    %274 = vector.multi_reduction <maximumf>, %273, %cst_80 [1] : vector<16x16xf32> to vector<16xf32>
    %275 = vector.shape_cast %274 : vector<16xf32> to vector<16x1xf32>
    %276 = vector.broadcast %275 : vector<16x1xf32> to vector<16x16xf32>
    %277 = arith.subf %273, %276 : vector<16x16xf32>
    %278 = math.exp %277 : vector<16x16xf32>
    %cst_81 = arith.constant dense<0.000000e+00> : vector<16xf32>
    %279 = vector.multi_reduction <add>, %278, %cst_81 [1] : vector<16x16xf32> to vector<16xf32>
    %280 = vector.shape_cast %279 : vector<16xf32> to vector<16x1xf32>
    %281 = arith.truncf %278 : vector<16x16xf32> to vector<16x16xbf16>
    %282 = vector.extract_strided_slice %32 {offsets = [32, 64], sizes = [16, 32], strides = [1, 1]} : vector<64x128xbf16> to vector<16x32xbf16>
    %cst_82 = arith.constant dense<0.000000e+00> : vector<16x32xf32>
    %283 = tpu.matmul %281, %282, %cst_82 {dimension_numbers = #tpu.dot_dimension_numbers<[1], [0], [0], [1], [0, 0, 1, 1], [], []>} : vector<16x16xbf16>, vector<16x32xbf16>, vector<16x32xf32> -> vector<16x32xf32>
    %284 = tpu.reciprocal %280 {approx = true} : vector<16x1xf32> -> vector<16x1xf32>
    %285 = vector.broadcast %284 : vector<16x1xf32> to vector<16x32xf32>
    %286 = arith.mulf %283, %285 : vector<16x32xf32>
    %287 = vector.extract_strided_slice %34 {offsets = [64, 0], sizes = [32, 128], strides = [1, 1]} : vector<128x128xbf16> to vector<32x128xbf16>
    %288 = arith.truncf %286 : vector<16x32xf32> to vector<16x32xbf16>
    %cst_83 = arith.constant dense<0.000000e+00> : vector<16x128xf32>
    %289 = tpu.matmul %288, %287, %cst_83 {dimension_numbers = #tpu.dot_dimension_numbers<[1], [0], [0], [1], [0, 0, 1, 1], [], []>} : vector<16x32xbf16>, vector<32x128xbf16>, vector<16x128xf32> -> vector<16x128xf32>
    %290 = arith.addf %267, %289 : vector<16x128xf32>
    %291 = vector.extract_strided_slice %23 {offsets = [32, 96], sizes = [16, 32], strides = [1, 1]} : vector<64x128xf32> to vector<16x32xf32>
    %292 = arith.truncf %291 : vector<16x32xf32> to vector<16x32xbf16>
    %293 = vector.extract_strided_slice %30 {offsets = [32, 96], sizes = [16, 32], strides = [1, 1]} : vector<64x128xbf16> to vector<16x32xbf16>
    %cst_84 = arith.constant dense<0.000000e+00> : vector<16x16xf32>
    %294 = tpu.matmul %292, %293, %cst_84 {dimension_numbers = #tpu.dot_dimension_numbers<[1], [1], [0], [0], [0, 0, 1, 0], [], []>} : vector<16x32xbf16>, vector<16x32xbf16>, vector<16x16xf32> -> vector<16x16xf32>
    %cst_85 = arith.constant 0.176776692 : f32
    %295 = vector.broadcast %cst_85 : f32 to vector<16x16xf32>
    %296 = arith.mulf %294, %295 : vector<16x16xf32>
    %cst_86 = arith.constant dense<0xFF800000> : vector<16xf32>
    %297 = vector.multi_reduction <maximumf>, %296, %cst_86 [1] : vector<16x16xf32> to vector<16xf32>
    %298 = vector.shape_cast %297 : vector<16xf32> to vector<16x1xf32>
    %299 = vector.broadcast %298 : vector<16x1xf32> to vector<16x16xf32>
    %300 = arith.subf %296, %299 : vector<16x16xf32>
    %301 = math.exp %300 : vector<16x16xf32>
    %cst_87 = arith.constant dense<0.000000e+00> : vector<16xf32>
    %302 = vector.multi_reduction <add>, %301, %cst_87 [1] : vector<16x16xf32> to vector<16xf32>
    %303 = vector.shape_cast %302 : vector<16xf32> to vector<16x1xf32>
    %304 = arith.truncf %301 : vector<16x16xf32> to vector<16x16xbf16>
    %305 = vector.extract_strided_slice %32 {offsets = [32, 96], sizes = [16, 32], strides = [1, 1]} : vector<64x128xbf16> to vector<16x32xbf16>
    %cst_88 = arith.constant dense<0.000000e+00> : vector<16x32xf32>
    %306 = tpu.matmul %304, %305, %cst_88 {dimension_numbers = #tpu.dot_dimension_numbers<[1], [0], [0], [1], [0, 0, 1, 1], [], []>} : vector<16x16xbf16>, vector<16x32xbf16>, vector<16x32xf32> -> vector<16x32xf32>
    %307 = tpu.reciprocal %303 {approx = true} : vector<16x1xf32> -> vector<16x1xf32>
    %308 = vector.broadcast %307 : vector<16x1xf32> to vector<16x32xf32>
    %309 = arith.mulf %306, %308 : vector<16x32xf32>
    %310 = vector.extract_strided_slice %34 {offsets = [96, 0], sizes = [32, 128], strides = [1, 1]} : vector<128x128xbf16> to vector<32x128xbf16>
    %311 = arith.truncf %309 : vector<16x32xf32> to vector<16x32xbf16>
    %cst_89 = arith.constant dense<0.000000e+00> : vector<16x128xf32>
    %312 = tpu.matmul %311, %310, %cst_89 {dimension_numbers = #tpu.dot_dimension_numbers<[1], [0], [0], [1], [0, 0, 1, 1], [], []>} : vector<16x32xbf16>, vector<32x128xbf16>, vector<16x128xf32> -> vector<16x128xf32>
    %313 = arith.addf %290, %312 : vector<16x128xf32>
    %314 = vector.extract_strided_slice %23 {offsets = [48, 0], sizes = [16, 32], strides = [1, 1]} : vector<64x128xf32> to vector<16x32xf32>
    %315 = arith.truncf %314 : vector<16x32xf32> to vector<16x32xbf16>
    %316 = vector.extract_strided_slice %30 {offsets = [48, 0], sizes = [16, 32], strides = [1, 1]} : vector<64x128xbf16> to vector<16x32xbf16>
    %cst_90 = arith.constant dense<0.000000e+00> : vector<16x16xf32>
    %317 = tpu.matmul %315, %316, %cst_90 {dimension_numbers = #tpu.dot_dimension_numbers<[1], [1], [0], [0], [0, 0, 1, 0], [], []>} : vector<16x32xbf16>, vector<16x32xbf16>, vector<16x16xf32> -> vector<16x16xf32>
    %cst_91 = arith.constant 0.176776692 : f32
    %318 = vector.broadcast %cst_91 : f32 to vector<16x16xf32>
    %319 = arith.mulf %317, %318 : vector<16x16xf32>
    %cst_92 = arith.constant dense<0xFF800000> : vector<16xf32>
    %320 = vector.multi_reduction <maximumf>, %319, %cst_92 [1] : vector<16x16xf32> to vector<16xf32>
    %321 = vector.shape_cast %320 : vector<16xf32> to vector<16x1xf32>
    %322 = vector.broadcast %321 : vector<16x1xf32> to vector<16x16xf32>
    %323 = arith.subf %319, %322 : vector<16x16xf32>
    %324 = math.exp %323 : vector<16x16xf32>
    %cst_93 = arith.constant dense<0.000000e+00> : vector<16xf32>
    %325 = vector.multi_reduction <add>, %324, %cst_93 [1] : vector<16x16xf32> to vector<16xf32>
    %326 = vector.shape_cast %325 : vector<16xf32> to vector<16x1xf32>
    %327 = arith.truncf %324 : vector<16x16xf32> to vector<16x16xbf16>
    %328 = vector.extract_strided_slice %32 {offsets = [48, 0], sizes = [16, 32], strides = [1, 1]} : vector<64x128xbf16> to vector<16x32xbf16>
    %cst_94 = arith.constant dense<0.000000e+00> : vector<16x32xf32>
    %329 = tpu.matmul %327, %328, %cst_94 {dimension_numbers = #tpu.dot_dimension_numbers<[1], [0], [0], [1], [0, 0, 1, 1], [], []>} : vector<16x16xbf16>, vector<16x32xbf16>, vector<16x32xf32> -> vector<16x32xf32>
    %330 = tpu.reciprocal %326 {approx = true} : vector<16x1xf32> -> vector<16x1xf32>
    %331 = vector.broadcast %330 : vector<16x1xf32> to vector<16x32xf32>
    %332 = arith.mulf %329, %331 : vector<16x32xf32>
    %333 = vector.extract_strided_slice %34 {offsets = [0, 0], sizes = [32, 128], strides = [1, 1]} : vector<128x128xbf16> to vector<32x128xbf16>
    %334 = arith.truncf %332 : vector<16x32xf32> to vector<16x32xbf16>
    %cst_95 = arith.constant dense<0.000000e+00> : vector<16x128xf32>
    %335 = tpu.matmul %334, %333, %cst_95 {dimension_numbers = #tpu.dot_dimension_numbers<[1], [0], [0], [1], [0, 0, 1, 1], [], []>} : vector<16x32xbf16>, vector<32x128xbf16>, vector<16x128xf32> -> vector<16x128xf32>
    %336 = vector.broadcast %7 : vector<1x128xf32> to vector<16x128xf32>
    %337 = arith.addf %336, %335 : vector<16x128xf32>
    %338 = vector.extract_strided_slice %23 {offsets = [48, 32], sizes = [16, 32], strides = [1, 1]} : vector<64x128xf32> to vector<16x32xf32>
    %339 = arith.truncf %338 : vector<16x32xf32> to vector<16x32xbf16>
    %340 = vector.extract_strided_slice %30 {offsets = [48, 32], sizes = [16, 32], strides = [1, 1]} : vector<64x128xbf16> to vector<16x32xbf16>
    %cst_96 = arith.constant dense<0.000000e+00> : vector<16x16xf32>
    %341 = tpu.matmul %339, %340, %cst_96 {dimension_numbers = #tpu.dot_dimension_numbers<[1], [1], [0], [0], [0, 0, 1, 0], [], []>} : vector<16x32xbf16>, vector<16x32xbf16>, vector<16x16xf32> -> vector<16x16xf32>
    %cst_97 = arith.constant 0.176776692 : f32
    %342 = vector.broadcast %cst_97 : f32 to vector<16x16xf32>
    %343 = arith.mulf %341, %342 : vector<16x16xf32>
    %cst_98 = arith.constant dense<0xFF800000> : vector<16xf32>
    %344 = vector.multi_reduction <maximumf>, %343, %cst_98 [1] : vector<16x16xf32> to vector<16xf32>
    %345 = vector.shape_cast %344 : vector<16xf32> to vector<16x1xf32>
    %346 = vector.broadcast %345 : vector<16x1xf32> to vector<16x16xf32>
    %347 = arith.subf %343, %346 : vector<16x16xf32>
    %348 = math.exp %347 : vector<16x16xf32>
    %cst_99 = arith.constant dense<0.000000e+00> : vector<16xf32>
    %349 = vector.multi_reduction <add>, %348, %cst_99 [1] : vector<16x16xf32> to vector<16xf32>
    %350 = vector.shape_cast %349 : vector<16xf32> to vector<16x1xf32>
    %351 = arith.truncf %348 : vector<16x16xf32> to vector<16x16xbf16>
    %352 = vector.extract_strided_slice %32 {offsets = [48, 32], sizes = [16, 32], strides = [1, 1]} : vector<64x128xbf16> to vector<16x32xbf16>
    %cst_100 = arith.constant dense<0.000000e+00> : vector<16x32xf32>
    %353 = tpu.matmul %351, %352, %cst_100 {dimension_numbers = #tpu.dot_dimension_numbers<[1], [0], [0], [1], [0, 0, 1, 1], [], []>} : vector<16x16xbf16>, vector<16x32xbf16>, vector<16x32xf32> -> vector<16x32xf32>
    %354 = tpu.reciprocal %350 {approx = true} : vector<16x1xf32> -> vector<16x1xf32>
    %355 = vector.broadcast %354 : vector<16x1xf32> to vector<16x32xf32>
    %356 = arith.mulf %353, %355 : vector<16x32xf32>
    %357 = vector.extract_strided_slice %34 {offsets = [32, 0], sizes = [32, 128], strides = [1, 1]} : vector<128x128xbf16> to vector<32x128xbf16>
    %358 = arith.truncf %356 : vector<16x32xf32> to vector<16x32xbf16>
    %cst_101 = arith.constant dense<0.000000e+00> : vector<16x128xf32>
    %359 = tpu.matmul %358, %357, %cst_101 {dimension_numbers = #tpu.dot_dimension_numbers<[1], [0], [0], [1], [0, 0, 1, 1], [], []>} : vector<16x32xbf16>, vector<32x128xbf16>, vector<16x128xf32> -> vector<16x128xf32>
    %360 = arith.addf %337, %359 : vector<16x128xf32>
    %361 = vector.extract_strided_slice %23 {offsets = [48, 64], sizes = [16, 32], strides = [1, 1]} : vector<64x128xf32> to vector<16x32xf32>
    %362 = arith.truncf %361 : vector<16x32xf32> to vector<16x32xbf16>
    %363 = vector.extract_strided_slice %30 {offsets = [48, 64], sizes = [16, 32], strides = [1, 1]} : vector<64x128xbf16> to vector<16x32xbf16>
    %cst_102 = arith.constant dense<0.000000e+00> : vector<16x16xf32>
    %364 = tpu.matmul %362, %363, %cst_102 {dimension_numbers = #tpu.dot_dimension_numbers<[1], [1], [0], [0], [0, 0, 1, 0], [], []>} : vector<16x32xbf16>, vector<16x32xbf16>, vector<16x16xf32> -> vector<16x16xf32>
    %cst_103 = arith.constant 0.176776692 : f32
    %365 = vector.broadcast %cst_103 : f32 to vector<16x16xf32>
    %366 = arith.mulf %364, %365 : vector<16x16xf32>
    %cst_104 = arith.constant dense<0xFF800000> : vector<16xf32>
    %367 = vector.multi_reduction <maximumf>, %366, %cst_104 [1] : vector<16x16xf32> to vector<16xf32>
    %368 = vector.shape_cast %367 : vector<16xf32> to vector<16x1xf32>
    %369 = vector.broadcast %368 : vector<16x1xf32> to vector<16x16xf32>
    %370 = arith.subf %366, %369 : vector<16x16xf32>
    %371 = math.exp %370 : vector<16x16xf32>
    %cst_105 = arith.constant dense<0.000000e+00> : vector<16xf32>
    %372 = vector.multi_reduction <add>, %371, %cst_105 [1] : vector<16x16xf32> to vector<16xf32>
    %373 = vector.shape_cast %372 : vector<16xf32> to vector<16x1xf32>
    %374 = arith.truncf %371 : vector<16x16xf32> to vector<16x16xbf16>
    %375 = vector.extract_strided_slice %32 {offsets = [48, 64], sizes = [16, 32], strides = [1, 1]} : vector<64x128xbf16> to vector<16x32xbf16>
    %cst_106 = arith.constant dense<0.000000e+00> : vector<16x32xf32>
    %376 = tpu.matmul %374, %375, %cst_106 {dimension_numbers = #tpu.dot_dimension_numbers<[1], [0], [0], [1], [0, 0, 1, 1], [], []>} : vector<16x16xbf16>, vector<16x32xbf16>, vector<16x32xf32> -> vector<16x32xf32>
    %377 = tpu.reciprocal %373 {approx = true} : vector<16x1xf32> -> vector<16x1xf32>
    %378 = vector.broadcast %377 : vector<16x1xf32> to vector<16x32xf32>
    %379 = arith.mulf %376, %378 : vector<16x32xf32>
    %380 = vector.extract_strided_slice %34 {offsets = [64, 0], sizes = [32, 128], strides = [1, 1]} : vector<128x128xbf16> to vector<32x128xbf16>
    %381 = arith.truncf %379 : vector<16x32xf32> to vector<16x32xbf16>
    %cst_107 = arith.constant dense<0.000000e+00> : vector<16x128xf32>
    %382 = tpu.matmul %381, %380, %cst_107 {dimension_numbers = #tpu.dot_dimension_numbers<[1], [0], [0], [1], [0, 0, 1, 1], [], []>} : vector<16x32xbf16>, vector<32x128xbf16>, vector<16x128xf32> -> vector<16x128xf32>
    %383 = arith.addf %360, %382 : vector<16x128xf32>
    %384 = vector.extract_strided_slice %23 {offsets = [48, 96], sizes = [16, 32], strides = [1, 1]} : vector<64x128xf32> to vector<16x32xf32>
    %385 = arith.truncf %384 : vector<16x32xf32> to vector<16x32xbf16>
    %386 = vector.extract_strided_slice %30 {offsets = [48, 96], sizes = [16, 32], strides = [1, 1]} : vector<64x128xbf16> to vector<16x32xbf16>
    %cst_108 = arith.constant dense<0.000000e+00> : vector<16x16xf32>
    %387 = tpu.matmul %385, %386, %cst_108 {dimension_numbers = #tpu.dot_dimension_numbers<[1], [1], [0], [0], [0, 0, 1, 0], [], []>} : vector<16x32xbf16>, vector<16x32xbf16>, vector<16x16xf32> -> vector<16x16xf32>
    %cst_109 = arith.constant 0.176776692 : f32
    %388 = vector.broadcast %cst_109 : f32 to vector<16x16xf32>
    %389 = arith.mulf %387, %388 : vector<16x16xf32>
    %cst_110 = arith.constant dense<0xFF800000> : vector<16xf32>
    %390 = vector.multi_reduction <maximumf>, %389, %cst_110 [1] : vector<16x16xf32> to vector<16xf32>
    %391 = vector.shape_cast %390 : vector<16xf32> to vector<16x1xf32>
    %392 = vector.broadcast %391 : vector<16x1xf32> to vector<16x16xf32>
    %393 = arith.subf %389, %392 : vector<16x16xf32>
    %394 = math.exp %393 : vector<16x16xf32>
    %cst_111 = arith.constant dense<0.000000e+00> : vector<16xf32>
    %395 = vector.multi_reduction <add>, %394, %cst_111 [1] : vector<16x16xf32> to vector<16xf32>
    %396 = vector.shape_cast %395 : vector<16xf32> to vector<16x1xf32>
    %397 = arith.truncf %394 : vector<16x16xf32> to vector<16x16xbf16>
    %398 = vector.extract_strided_slice %32 {offsets = [48, 96], sizes = [16, 32], strides = [1, 1]} : vector<64x128xbf16> to vector<16x32xbf16>
    %cst_112 = arith.constant dense<0.000000e+00> : vector<16x32xf32>
    %399 = tpu.matmul %397, %398, %cst_112 {dimension_numbers = #tpu.dot_dimension_numbers<[1], [0], [0], [1], [0, 0, 1, 1], [], []>} : vector<16x16xbf16>, vector<16x32xbf16>, vector<16x32xf32> -> vector<16x32xf32>
    %400 = tpu.reciprocal %396 {approx = true} : vector<16x1xf32> -> vector<16x1xf32>
    %401 = vector.broadcast %400 : vector<16x1xf32> to vector<16x32xf32>
    %402 = arith.mulf %399, %401 : vector<16x32xf32>
    %403 = vector.extract_strided_slice %34 {offsets = [96, 0], sizes = [32, 128], strides = [1, 1]} : vector<128x128xbf16> to vector<32x128xbf16>
    %404 = arith.truncf %402 : vector<16x32xf32> to vector<16x32xbf16>
    %cst_113 = arith.constant dense<0.000000e+00> : vector<16x128xf32>
    %405 = tpu.matmul %404, %403, %cst_113 {dimension_numbers = #tpu.dot_dimension_numbers<[1], [0], [0], [1], [0, 0, 1, 1], [], []>} : vector<16x32xbf16>, vector<32x128xbf16>, vector<16x128xf32> -> vector<16x128xf32>
    %406 = arith.addf %383, %405 : vector<16x128xf32>
    %407 = tpu.concatenate %127, %220, %313, %406 in 0 : vector<16x128xf32>, vector<16x128xf32>, vector<16x128xf32>, vector<16x128xf32> -> vector<64x128xf32>
    %408 = arith.addf %15, %407 : vector<64x128xf32>
    %cst_114 = arith.constant dense<0.000000e+00> : vector<64xf32>
    %409 = vector.multi_reduction <add>, %408, %cst_114 [1] : vector<64x128xf32> to vector<64xf32>
    %410 = vector.shape_cast %409 : vector<64xf32> to vector<64x1xf32>
    %cst_115 = arith.constant 1.280000e+02 : f32
    %411 = vector.broadcast %cst_115 : f32 to vector<64x1xf32>
    %412 = arith.divf %410, %411 : vector<64x1xf32>
    %413 = vector.broadcast %412 : vector<64x1xf32> to vector<64x128xf32>
    %414 = arith.subf %408, %413 : vector<64x128xf32>
    %415 = arith.mulf %414, %414 : vector<64x128xf32>
    %cst_116 = arith.constant dense<0.000000e+00> : vector<64xf32>
    %416 = vector.multi_reduction <add>, %415, %cst_116 [1] : vector<64x128xf32> to vector<64xf32>
    %417 = vector.shape_cast %416 : vector<64xf32> to vector<64x1xf32>
    %cst_117 = arith.constant 1.280000e+02 : f32
    %418 = vector.broadcast %cst_117 : f32 to vector<64x1xf32>
    %419 = arith.divf %417, %418 : vector<64x1xf32>
    %cst_118 = arith.constant 9.99999974E-6 : f32
    %420 = vector.broadcast %cst_118 : f32 to vector<64x1xf32>
    %421 = arith.addf %419, %420 : vector<64x1xf32>
    %422 = math.rsqrt %421 : vector<64x1xf32>
    %423 = vector.broadcast %422 : vector<64x1xf32> to vector<64x128xf32>
    %424 = arith.mulf %414, %423 : vector<64x128xf32>
    %425 = vector.broadcast %8 : vector<1x128xf32> to vector<64x128xf32>
    %426 = arith.mulf %424, %425 : vector<64x128xf32>
    %427 = vector.broadcast %9 : vector<1x128xf32> to vector<64x128xf32>
    %428 = arith.addf %426, %427 : vector<64x128xf32>
    %c0_119 = arith.constant 0 : index
    %c0_120 = arith.constant 0 : index
    %c0_121 = arith.constant 0 : index
    %429 = vector.load %arg7[%c0_119, %c0_120, %c0_121] : memref<1x128x256xbf16, #tpu.memory_space<vmem>>, vector<1x128x256xbf16>
    %430 = vector.shape_cast %429 : vector<1x128x256xbf16> to vector<128x256xbf16>
    %431 = arith.truncf %428 : vector<64x128xf32> to vector<64x128xbf16>
    %cst_122 = arith.constant dense<0.000000e+00> : vector<64x256xf32>
    %432 = tpu.matmul %431, %430, %cst_122 {dimension_numbers = #tpu.dot_dimension_numbers<[1], [0], [0], [1], [0, 0, 1, 1], [], []>} : vector<64x128xbf16>, vector<128x256xbf16>, vector<64x256xf32> -> vector<64x256xf32>
    %433 = vector.broadcast %10 : vector<1x256xf32> to vector<64x256xf32>
    %434 = arith.addf %432, %433 : vector<64x256xf32>
    %cst_123 = arith.constant 0.000000e+00 : f32
    %435 = vector.broadcast %cst_123 : f32 to vector<64x256xf32>
    %436 = arith.maximumf %434, %435 : vector<64x256xf32>
    %c0_124 = arith.constant 0 : index
    %c0_125 = arith.constant 0 : index
    %c0_126 = arith.constant 0 : index
    %437 = vector.load %arg8[%c0_124, %c0_125, %c0_126] : memref<1x256x128xbf16, #tpu.memory_space<vmem>>, vector<1x256x128xbf16>
    %438 = vector.shape_cast %437 : vector<1x256x128xbf16> to vector<256x128xbf16>
    %439 = arith.truncf %436 : vector<64x256xf32> to vector<64x256xbf16>
    %cst_127 = arith.constant dense<0.000000e+00> : vector<64x128xf32>
    %440 = tpu.matmul %439, %438, %cst_127 {dimension_numbers = #tpu.dot_dimension_numbers<[1], [0], [0], [1], [0, 0, 1, 1], [], []>} : vector<64x256xbf16>, vector<256x128xbf16>, vector<64x128xf32> -> vector<64x128xf32>
    %441 = vector.broadcast %11 : vector<1x128xf32> to vector<64x128xf32>
    %442 = arith.addf %440, %441 : vector<64x128xf32>
    %443 = arith.addf %428, %442 : vector<64x128xf32>
    %cst_128 = arith.constant dense<0.000000e+00> : vector<64xf32>
    %444 = vector.multi_reduction <add>, %443, %cst_128 [1] : vector<64x128xf32> to vector<64xf32>
    %445 = vector.shape_cast %444 : vector<64xf32> to vector<64x1xf32>
    %cst_129 = arith.constant 1.280000e+02 : f32
    %446 = vector.broadcast %cst_129 : f32 to vector<64x1xf32>
    %447 = arith.divf %445, %446 : vector<64x1xf32>
    %448 = vector.broadcast %447 : vector<64x1xf32> to vector<64x128xf32>
    %449 = arith.subf %443, %448 : vector<64x128xf32>
    %450 = arith.mulf %449, %449 : vector<64x128xf32>
    %cst_130 = arith.constant dense<0.000000e+00> : vector<64xf32>
    %451 = vector.multi_reduction <add>, %450, %cst_130 [1] : vector<64x128xf32> to vector<64xf32>
    %452 = vector.shape_cast %451 : vector<64xf32> to vector<64x1xf32>
    %cst_131 = arith.constant 1.280000e+02 : f32
    %453 = vector.broadcast %cst_131 : f32 to vector<64x1xf32>
    %454 = arith.divf %452, %453 : vector<64x1xf32>
    %cst_132 = arith.constant 9.99999974E-6 : f32
    %455 = vector.broadcast %cst_132 : f32 to vector<64x1xf32>
    %456 = arith.addf %454, %455 : vector<64x1xf32>
    %457 = math.rsqrt %456 : vector<64x1xf32>
    %458 = vector.broadcast %457 : vector<64x1xf32> to vector<64x128xf32>
    %459 = arith.mulf %449, %458 : vector<64x128xf32>
    %460 = vector.broadcast %12 : vector<1x128xf32> to vector<64x128xf32>
    %461 = arith.mulf %459, %460 : vector<64x128xf32>
    %462 = vector.broadcast %13 : vector<1x128xf32> to vector<64x128xf32>
    %463 = arith.addf %461, %462 : vector<64x128xf32>
    %c2_i32 = arith.constant 2 : i32
    %464 = arith.cmpi slt, %arg1, %c2_i32 : i32
    %465 = arith.extui %464 : i1 to i32
    %c0_i32_133 = arith.constant 0 : i32
    %466 = arith.cmpi ne, %465, %c0_i32_133 : i32
    scf.if %466 {
      %475 = tpu.iota {dimensions = array<i32: 0>} : vector<64x128xi32>
      %c16_i32 = arith.constant 16 : i32
      %c0_i32_139 = arith.constant 0 : i32
      %476 = arith.cmpi eq, %c16_i32, %c0_i32_139 : i32
      %c1_i32 = arith.constant 1 : i32
      %477 = arith.select %476, %c1_i32, %c16_i32 : i32
      %478 = vector.broadcast %477 : i32 to vector<64x128xi32>
      %479 = arith.remsi %475, %478 : vector<64x128xi32>
      %c0_i32_140 = arith.constant 0 : i32
      %480 = vector.broadcast %c0_i32_140 : i32 to vector<64x128xi32>
      %481 = arith.cmpi ne, %479, %480 : vector<64x128xi32>
      %c0_i32_141 = arith.constant 0 : i32
      %482 = vector.broadcast %c0_i32_141 : i32 to vector<64x128xi32>
      %483 = arith.cmpi slt, %479, %482 : vector<64x128xi32>
      %c0_i32_142 = arith.constant 0 : i32
      %484 = arith.cmpi slt, %477, %c0_i32_142 : i32
      %485 = vector.broadcast %484 : i1 to vector<64x128xi1>
      %486 = vector.broadcast %485 : vector<64x128xi1> to vector<64x128xi1>
      %487 = arith.xori %483, %486 : vector<64x128xi1>
      %488 = arith.andi %487, %481 : vector<64x128xi1>
      %489 = vector.broadcast %477 : i32 to vector<64x128xi32>
      %490 = arith.addi %479, %489 : vector<64x128xi32>
      %491 = arith.select %488, %490, %479 : vector<64x128xi1>, vector<64x128xi32>
      %c0_i32_143 = arith.constant 0 : i32
      %492 = vector.broadcast %c0_i32_143 : i32 to vector<64x128xi32>
      %493 = arith.cmpi eq, %491, %492 : vector<64x128xi32>
      %c1_i32_144 = arith.constant 1 : i32
      %494 = tpu.dynamic_rotate %463 by %c1_i32_144 dim 0 : vector<64x128xf32>, i32 -> vector<64x128xf32>
      %cst_145 = arith.constant 0.000000e+00 : f32
      %495 = vector.broadcast %cst_145 : f32 to vector<64x128xf32>
      %496 = arith.select %493, %495, %494 : vector<64x128xi1>, vector<64x128xf32>
      %c15_i32 = arith.constant 15 : i32
      %497 = vector.broadcast %c15_i32 : i32 to vector<64x128xi32>
      %498 = arith.cmpi eq, %491, %497 : vector<64x128xi32>
      %c63_i32 = arith.constant 63 : i32
      %499 = tpu.dynamic_rotate %463 by %c63_i32 dim 0 : vector<64x128xf32>, i32 -> vector<64x128xf32>
      %cst_146 = arith.constant 0.000000e+00 : f32
      %500 = vector.broadcast %cst_146 : f32 to vector<64x128xf32>
      %501 = arith.select %498, %500, %499 : vector<64x128xi1>, vector<64x128xf32>
      %c0_147 = arith.constant 0 : index
      %c0_148 = arith.constant 0 : index
      %c0_149 = arith.constant 0 : index
      %c0_150 = arith.constant 0 : index
      %502 = vector.load %arg9[%c0_147, %c0_148, %c0_149, %c0_150] : memref<1x3x128x128xbf16, #tpu.memory_space<vmem>>, vector<1x1x128x128xbf16>
      %503 = vector.shape_cast %502 : vector<1x1x128x128xbf16> to vector<128x128xbf16>
      %504 = arith.truncf %496 : vector<64x128xf32> to vector<64x128xbf16>
      %cst_151 = arith.constant dense<0.000000e+00> : vector<64x128xf32>
      %505 = tpu.matmul %504, %503, %cst_151 {dimension_numbers = #tpu.dot_dimension_numbers<[1], [0], [0], [1], [0, 0, 1, 1], [], []>} : vector<64x128xbf16>, vector<128x128xbf16>, vector<64x128xf32> -> vector<64x128xf32>
      %c0_152 = arith.constant 0 : index
      %c1 = arith.constant 1 : index
      %c0_153 = arith.constant 0 : index
      %c0_154 = arith.constant 0 : index
      %506 = vector.load %arg9[%c0_152, %c1, %c0_153, %c0_154] : memref<1x3x128x128xbf16, #tpu.memory_space<vmem>>, vector<1x1x128x128xbf16>
      %507 = vector.shape_cast %506 : vector<1x1x128x128xbf16> to vector<128x128xbf16>
      %508 = arith.truncf %463 : vector<64x128xf32> to vector<64x128xbf16>
      %cst_155 = arith.constant dense<0.000000e+00> : vector<64x128xf32>
      %509 = tpu.matmul %508, %507, %cst_155 {dimension_numbers = #tpu.dot_dimension_numbers<[1], [0], [0], [1], [0, 0, 1, 1], [], []>} : vector<64x128xbf16>, vector<128x128xbf16>, vector<64x128xf32> -> vector<64x128xf32>
      %510 = arith.addf %505, %509 : vector<64x128xf32>
      %c0_156 = arith.constant 0 : index
      %c2 = arith.constant 2 : index
      %c0_157 = arith.constant 0 : index
      %c0_158 = arith.constant 0 : index
      %511 = vector.load %arg9[%c0_156, %c2, %c0_157, %c0_158] : memref<1x3x128x128xbf16, #tpu.memory_space<vmem>>, vector<1x1x128x128xbf16>
      %512 = vector.shape_cast %511 : vector<1x1x128x128xbf16> to vector<128x128xbf16>
      %513 = arith.truncf %501 : vector<64x128xf32> to vector<64x128xbf16>
      %cst_159 = arith.constant dense<0.000000e+00> : vector<64x128xf32>
      %514 = tpu.matmul %513, %512, %cst_159 {dimension_numbers = #tpu.dot_dimension_numbers<[1], [0], [0], [1], [0, 0, 1, 1], [], []>} : vector<64x128xbf16>, vector<128x128xbf16>, vector<64x128xf32> -> vector<64x128xf32>
      %515 = arith.addf %510, %514 : vector<64x128xf32>
      %516 = vector.broadcast %14 : vector<1x128xf32> to vector<64x128xf32>
      %517 = arith.addf %515, %516 : vector<64x128xf32>
      %cst_160 = arith.constant 0.000000e+00 : f32
      %518 = vector.broadcast %cst_160 : f32 to vector<64x128xf32>
      %519 = arith.cmpf ogt, %517, %518 : vector<64x128xf32>
      %cst_161 = arith.constant 0.000000e+00 : f32
      %520 = vector.broadcast %cst_161 : f32 to vector<64x128xf32>
      %521 = arith.minimumf %517, %520 : vector<64x128xf32>
      %522 = math.exp %521 : vector<64x128xf32>
      %cst_162 = arith.constant 1.000000e+00 : f32
      %523 = vector.broadcast %cst_162 : f32 to vector<64x128xf32>
      %524 = arith.subf %522, %523 : vector<64x128xf32>
      %525 = arith.select %519, %517, %524 : vector<64x128xi1>, vector<64x128xf32>
      %c0_163 = arith.constant 0 : index
      %c0_164 = arith.constant 0 : index
      %526 = vector.load %arg13[%c0_163, %c0_164] : memref<64x128xf32, #tpu.memory_space<vmem>>, vector<64x128xf32>
      tpu.vector_store %arg13[%c0_163, %c0_164], %525 {strides = array<i32>} : memref<64x128xf32, #tpu.memory_space<vmem>>, vector<64x128xf32>,
    } else {
    }
    %c2_i32_134 = arith.constant 2 : i32
    %467 = arith.cmpi sge, %arg1, %c2_i32_134 : i32
    %c2_i32_135 = arith.constant 2 : i32
    %468 = arith.cmpi slt, %arg1, %c2_i32_135 : i32
    %469 = arith.andi %467, %468 : i1
    %470 = arith.extui %469 : i1 to i32
    %c0_i32_136 = arith.constant 0 : i32
    %471 = arith.cmpi ne, %470, %c0_i32_136 : i32
    scf.if %471 {
      %c0_139 = arith.constant 0 : index
      %c0_140 = arith.constant 0 : index
      %475 = vector.load %arg13[%c0_139, %c0_140] : memref<64x128xf32, #tpu.memory_space<vmem>>, vector<64x128xf32>
      tpu.vector_store %arg13[%c0_139, %c0_140], %463 {strides = array<i32>} : memref<64x128xf32, #tpu.memory_space<vmem>>, vector<64x128xf32>,
    } else {
    }
    %c2_i32_137 = arith.constant 2 : i32
    %472 = arith.cmpi eq, %arg1, %c2_i32_137 : i32
    %473 = arith.extui %472 : i1 to i32
    %c0_i32_138 = arith.constant 0 : i32
    %474 = arith.cmpi ne, %473, %c0_i32_138 : i32
    scf.if %474 {
      %c0_139 = arith.constant 0 : index
      %c0_140 = arith.constant 0 : index
      %475 = vector.load %arg11[%c0_139, %c0_140] : memref<2x128xf32, #tpu.memory_space<vmem>>, vector<1x128xf32>
      %c1 = arith.constant 1 : index
      %c0_141 = arith.constant 0 : index
      %476 = vector.load %arg11[%c1, %c0_141] : memref<2x128xf32, #tpu.memory_space<vmem>>, vector<1x128xf32>
      %cst_142 = arith.constant dense<0.000000e+00> : vector<64xf32>
      %477 = vector.multi_reduction <add>, %463, %cst_142 [1] : vector<64x128xf32> to vector<64xf32>
      %478 = vector.shape_cast %477 : vector<64xf32> to vector<64x1xf32>
      %cst_143 = arith.constant 1.280000e+02 : f32
      %479 = vector.broadcast %cst_143 : f32 to vector<64x1xf32>
      %480 = arith.divf %478, %479 : vector<64x1xf32>
      %481 = vector.broadcast %480 : vector<64x1xf32> to vector<64x128xf32>
      %482 = arith.subf %463, %481 : vector<64x128xf32>
      %483 = arith.mulf %482, %482 : vector<64x128xf32>
      %cst_144 = arith.constant dense<0.000000e+00> : vector<64xf32>
      %484 = vector.multi_reduction <add>, %483, %cst_144 [1] : vector<64x128xf32> to vector<64xf32>
      %485 = vector.shape_cast %484 : vector<64xf32> to vector<64x1xf32>
      %cst_145 = arith.constant 1.280000e+02 : f32
      %486 = vector.broadcast %cst_145 : f32 to vector<64x1xf32>
      %487 = arith.divf %485, %486 : vector<64x1xf32>
      %cst_146 = arith.constant 9.99999974E-6 : f32
      %488 = vector.broadcast %cst_146 : f32 to vector<64x1xf32>
      %489 = arith.addf %487, %488 : vector<64x1xf32>
      %490 = math.rsqrt %489 : vector<64x1xf32>
      %491 = vector.broadcast %490 : vector<64x1xf32> to vector<64x128xf32>
      %492 = arith.mulf %482, %491 : vector<64x128xf32>
      %493 = vector.broadcast %475 : vector<1x128xf32> to vector<64x128xf32>
      %494 = arith.mulf %492, %493 : vector<64x128xf32>
      %495 = vector.broadcast %476 : vector<1x128xf32> to vector<64x128xf32>
      %496 = arith.addf %494, %495 : vector<64x128xf32>
      %497 = vector.shape_cast %496 : vector<64x128xf32> to vector<4x16x128xf32>
      %498 = arith.truncf %497 : vector<4x16x128xf32> to vector<4x16x128xbf16>
      %c0_147 = arith.constant 0 : index
      %c0_148 = arith.constant 0 : index
      %c0_149 = arith.constant 0 : index
      %499 = vector.load %arg12[%c0_147, %c0_148, %c0_149] : memref<4x16x128xbf16, #tpu.memory_space<vmem>>, vector<4x16x128xbf16>
      tpu.vector_store %arg12[%c0_147, %c0_148, %c0_149], %498 {strides = array<i32>} : memref<4x16x128xbf16, #tpu.memory_space<vmem>>, vector<4x16x128xbf16>,
    } else {
    }
    return
  }
  func.func @transform_0(%arg0: i32, %arg1: i32) -> (i32, i32, i32) {
    %c0_i32 = arith.constant 0 : i32
    %c0_i32_0 = arith.constant 0 : i32
    %c0_i32_1 = arith.constant 0 : i32
    return %arg0, %c0_i32, %c0_i32_0 : i32, i32, i32
  }
  func.func @transform_1(%arg0: i32, %arg1: i32) -> (i32, i32, i32) {
    %c0_i32 = arith.constant 0 : i32
    %c0_i32_0 = arith.constant 0 : i32
    %c0_i32_1 = arith.constant 0 : i32
    return %arg0, %c0_i32, %c0_i32_0 : i32, i32, i32
  }
  func.func @transform_2(%arg0: i32, %arg1: i32) -> (i32, i32, i32) {
    %c0_i32 = arith.constant 0 : i32
    %c0_i32_0 = arith.constant 0 : i32
    %c0_i32_1 = arith.constant 0 : i32
    return %arg1, %c0_i32, %c0_i32_0 : i32, i32, i32
  }
  func.func @transform_3(%arg0: i32, %arg1: i32) -> (i32, i32, i32) {
    %c0_i32 = arith.constant 0 : i32
    %c0_i32_0 = arith.constant 0 : i32
    %c0_i32_1 = arith.constant 0 : i32
    return %arg1, %c0_i32, %c0_i32_0 : i32, i32, i32
  }
  func.func @transform_4(%arg0: i32, %arg1: i32) -> (i32, i32, i32) {
    %c0_i32 = arith.constant 0 : i32
    %c0_i32_0 = arith.constant 0 : i32
    %c0_i32_1 = arith.constant 0 : i32
    return %arg1, %c0_i32, %c0_i32_0 : i32, i32, i32
  }
  func.func @transform_5(%arg0: i32, %arg1: i32) -> (i32, i32, i32) {
    %c0_i32 = arith.constant 0 : i32
    %c0_i32_0 = arith.constant 0 : i32
    %c0_i32_1 = arith.constant 0 : i32
    return %arg1, %c0_i32, %c0_i32_0 : i32, i32, i32
  }
  func.func @transform_6(%arg0: i32, %arg1: i32) -> (i32, i32, i32) {
    %c0_i32 = arith.constant 0 : i32
    %c0_i32_0 = arith.constant 0 : i32
    %c0_i32_1 = arith.constant 0 : i32
    return %arg1, %c0_i32, %c0_i32_0 : i32, i32, i32
  }
  func.func @transform_7(%arg0: i32, %arg1: i32) -> (i32, i32, i32, i32) {
    %c1_i32 = arith.constant 1 : i32
    %0 = arith.minsi %arg1, %c1_i32 : i32
    %c0_i32 = arith.constant 0 : i32
    %c0_i32_0 = arith.constant 0 : i32
    %c0_i32_1 = arith.constant 0 : i32
    %c0_i32_2 = arith.constant 0 : i32
    return %0, %c0_i32, %c0_i32_0, %c0_i32_1 : i32, i32, i32, i32
  }
  func.func @transform_8(%arg0: i32, %arg1: i32) -> (i32, i32, i32) {
    %c0_i32 = arith.constant 0 : i32
    %c0_i32_0 = arith.constant 0 : i32
    %c0_i32_1 = arith.constant 0 : i32
    return %arg1, %c0_i32, %c0_i32_0 : i32, i32, i32
  }
  func.func @transform_9(%arg0: i32, %arg1: i32) -> (i32, i32) {
    %c0_i32 = arith.constant 0 : i32
    %c0_i32_0 = arith.constant 0 : i32
    %c0_i32_1 = arith.constant 0 : i32
    return %c0_i32, %c0_i32_0 : i32, i32
  }
  func.func @transform_10(%arg0: i32, %arg1: i32) -> (i32, i32, i32) {
    %c0_i32 = arith.constant 0 : i32
    %c0_i32_0 = arith.constant 0 : i32
    %c0_i32_1 = arith.constant 0 : i32
    return %arg0, %c0_i32, %c0_i32_0 : i32, i32, i32
  }
}

</mosaic_0001>

<bundles_post_ra>
// kernel: tpu_custom_call.1
= control target key start
LH: loop header
LB: loop body
LE: loop exit
PB: predicated region body
PF: predicated region fallthrough
CT: control target
= control target key end

     0   :  { %s9130_s0 = inlined_call_operand.hbm [shape: bf16[8,16,128], index: 0, kind: input, shape index: {}]   ;;  %s9131_s1 = inlined_call_operand.hbm [shape: bf16[8,16,128], index: 1, kind: input, shape index: {}]   ;;  %s9132_s2 = inlined_call_operand.hbm [shape: bf16[3,128,128], index: 2, kind: input, shape index: {}]   ;;  %s9133_s3 = inlined_call_operand.hbm [shape: bf16[3,128,256], index: 3, kind: input, shape index: {}]   ;;  %s9134_s4 = inlined_call_operand.hbm [shape: bf16[3,128,128], index: 4, kind: input, shape index: {}]   ;;  %s9135_s5 = inlined_call_operand.hbm [shape: bf16[3,128,256], index: 5, kind: input, shape index: {}]   ;;  %s9136_s6 = inlined_call_operand.hbm [shape: bf16[3,256,128], index: 6, kind: input, shape index: {}]   ;;  %s9137_s7 = inlined_call_operand.hbm [shape: bf16[2,3,128,128], index: 7, kind: input, shape index: {}]   ;;  %s9138_s8 = inlined_call_operand.hbm [shape: f32[3,8,256], index: 8, kind: input, shape index: {}]   ;;  %s9139_s9 = inlined_call_operand.vmem [shape: f32[2,128], index: 9, kind: input, shape index: {}]   ;;  %s9140_s10 = inlined_call_operand.hbm [shape: bf16[8,16,128], index: 10, kind: output, shape index: {}]  }
   0x1   :  { %9187 = sst [smem:[#allocation50_spill]] %s9130_s0 }
   0x2   :  { %9188 = sst [smem:[#allocation51_spill]] %s9131_s1 }
   0x3   :  { %9189 = sst [smem:[#allocation52_spill]] %s9132_s2 }
   0x4   :  { %9190 = sst [smem:[#allocation53_spill]] %s9133_s3 }
   0x5   :  { %9191 = sst [smem:[#allocation54_spill]] %s9134_s4 }
   0x6   :  { %9192 = sst [smem:[#allocation55_spill]] %s9135_s5 }
   0x7   :  { %9193 = sst [smem:[#allocation56_spill]] %s9136_s6 }
   0x8   :  { %9194 = sst [smem:[#allocation57_spill]] %s9137_s7 }
   0x9   :  { %9195 = sst [smem:[#allocation58_spill]] %s9138_s8 }
   0xa   :  { %9196 = sst [smem:[#allocation59_spill]] %s9139_s9 }
   0xb   :  { %9197 = sst [smem:[#allocation60_spill]] %s9140_s10 }
   0xc   :  { %15 = vsyncpa [#allocation4], 0 }
   0xd   :  { %17 = vsyncpa [#allocation4 + $0x1], 0 }
   0xe   :  { %18 = vsyncpa [#allocation7], 0 }
   0xf   :  { %20 = vsyncpa [#allocation7 + $0x1], 0 }
  0x10   :  { %21 = vsyncpa [#allocation10], 0 }
  0x11   :  { %23 = vsyncpa [#allocation10 + $0x1], 0 }
  0x12   :  { %24 = vsyncpa [#allocation13], 0 }
  0x13   :  { %26 = vsyncpa [#allocation13 + $0x1], 0 }
  0x14   :  { %27 = vsyncpa [#allocation16], 0 }
  0x15   :  { %29 = vsyncpa [#allocation16 + $0x1], 0 }
  0x16   :  { %30 = vsyncpa [#allocation5], 0 }
  0x17   :  { %32 = vsyncpa [#allocation5 + $0x1], 0  ;;  %s7589_s13 = smov 0   ;;  %s7591_s14 = smov 0  }
  0x18   :  { %s7593_s15 = smov 0   ;;  %s7595_s16 = smov 0  }
  0x19   :  { %s7597_s17 = smov 0   ;;  %s7599_s18 = smov 0  }
  0x1a   :  { %s7601_s19 = smov 0   ;;  %s7603_s20 = smov 0  }
  0x1b   :  { %s7605_s21 = smov 0   ;;  %s7607_s22 = smov 0  }
  0x1c   :  { %s7609_s23 = smov 0   ;;  %s7611_s24 = smov 0  }
  0x1d   :  { %s7613_s25 = smov 0   ;;  %s7615_s26 = smov 0  }
  0x1e LB: > { %9198 = sst [smem:[#allocation27_spill]] %s7466_s15  ;;  %s7660_s27 = sadd.s32 4294967295, %s7510_s26   ;;  %s7510_s26 = sphi %s7615_s26, %s38_s26   ;;  %s7506_s25 = sphi %s7613_s25, %s9302_s25   ;;  %s7502_s24 = sphi %s7611_s24, %s9301_s24   ;;  %s7498_s23 = sphi %s7609_s23, %s9300_s23   ;;  %s7494_s22 = sphi %s7607_s22, %s9299_s22   ;;  %s7490_s21 = sphi %s7605_s21, %s9292_s21   ;;  %s7486_s20 = sphi %s7603_s20, %s9291_s20   ;;  %s7482_s19 = sphi %s7601_s19, %s9290_s19   ;;  %s7478_s18 = sphi %s7599_s18, %s9289_s18   ;;  %s7474_s17 = sphi %s7597_s17, %s9288_s17   ;;  %s7470_s16 = sphi %s7595_s16, %s9287_s16   ;;  %s7466_s15 = sphi %s7593_s15, %s9298_s15   ;;  %s7462_s14 = sphi %s7591_s14, %s9297_s14   ;;  %s7458_s13 = sphi %s7589_s13, %s9296_s13  }
  0x1f   : > { %9199 = sst [smem:[#allocation28_spill]] %s7474_s17  ;;  %s5618_s28 = sadd.s32 4294967294, %s7510_s26  }
  0x20   : > { %9200 = sst [smem:[#allocation29_spill]] %s7478_s18  ;;  %s9142_s29 = sadd.s32 1, %s7502_s24 }
  0x21   : > { %9201 = sst [smem:[#allocation30_spill]] %s7482_s19  ;;  %s50_s30 = sadd.s32 1, %s7506_s25 }
  0x22   : > { %9202 = sst [smem:[#allocation31_spill]] %s7486_s20  ;;  %p7667_p0 = scmp.ge.s32.totalorder %s9142_s29, 3 }
  0x23   : > { %9203 = sst [smem:[#allocation32_spill]] %s7490_s21  ;;  %s57_s12 = sadd.s32 1, %s7490_s21 }
  0x24   : > { %9204 = sst [smem:[#allocation33_spill]] %s7494_s22  ;;  %p64_p1 = scmp.ne.s32.totalorder %s7490_s21, %s7486_s20 }
  0x25   : > { %9205 = sst [smem:[#allocation34_spill]] %s7498_s23  ;;  %p9157_p2 = scmp.eq.s32.totalorder %s7510_s26, 0 }
  0x26   : > { %9206 = sst [smem:[#allocation35_spill]] %s7510_s26  ;;  %s9304_s30 = smov (!%p7667_p0, %s50_s30), %s7506_s25 }
  0x27   : > { %p7680_p3 = por %p9157_p2, %p64_p1  ;;  %p70_p4 = scmp.ne.s32.totalorder %s7486_s20, %s7482_s19 }
  0x28   : > { %p52_p5 = scmp.ge.s32.totalorder %s9304_s30, 2  ;;  %p9156_p6 = scmp.eq.s32.totalorder %s7660_s27, 0 }
  0x29   : > { %p327_p7 = scmp.eq.s32.totalorder %s7660_s27, 5  ;;  %p333_p8 = scmp.eq.s32.totalorder %s5618_s28, 5 }
  0x2a   : > { %s9306_s30 = smov (%p52_p5, %s9304_s30), 0  ;;  %p7692_p9 = por %p9156_p6, %p70_p4 }
  0x2b   : > { %9209 = sst [smem:[#allocation36_spill]] %s9306_s30  ;;  %p7696_p10 = por %p327_p7, %p64_p1 }
  0x2c   : > { %s9210_s29 = scalar_select %p7692_p9, 1, 0 }
  0x2d   : > { %s9212_s23 = scalar_select %p7696_p10, 1, 0 }
  0x2e   : > { %9211 = sst [smem:[#allocation37_spill]] %s9210_s29  ;;  %s54_s19 = ssub.s32 %s7506_s25, %s9306_s30 }
  0x2f   : > { %9213 = sst [smem:[#allocation38_spill]] %s9212_s23  ;;  %p7702_p11 = por %p333_p8, %p70_p4 }
  0x30   : > { %p55_p12 = scmp.eq.s32.totalorder %s54_s19, 0  ;;  %p9155_p13 = scmp.lt.s32.totalorder %s7510_s26, 6 }
  0x31   : > { %s9214_s9 = scalar_select %p7702_p11, 1, 0 }
  0x32   : > { %s9154_s28 = sand.u32 1, %s7490_s21   ;;  %s9159_s29 = sshll.u32 %s7506_s25, 9 }
  0x33   : > { %9215 = sst [smem:[#allocation39_spill]] %s9214_s9  ;;  %s7713_s20 = sshll.u32 %s9154_s28, 5 }
  0x34   : > { %s7709_s22 = scalar_select %p55_p12, %s7490_s21, %s57_s12  }
  0x35   : > { %9217 = sst [smem:[#allocation41_spill]] %s7713_s20  ;;  %p7720_p1 = pnand %p9155_p13, %p7680_p3 }
  0x36   : > { %9216 = sst [smem:[#allocation40_spill]] %s7709_s22  ;;  %s7725_s30 = sand.u32 1, %s7510_s26  }
  0x37   : > { %s9218_s23 = scalar_select %p7720_p1, 1, 0 }
  0x38   : > { %s9220_s1 = sld [smem:[#allocation51_spill]]  ;;  %s382_s28 = scalar_lea.vmem [#allocation6], %s7713_s20 }
  0x39   : > { %9219 = sst [smem:[#allocation42_spill]] %s9218_s23  ;;  %s390_s22 = sshll.u32 %s382_s28, 4  ;;  %s391_s22 = int_to_ptr.vmem [resolvable:$true] %s390_s22 }
  0x3a   : > { %p5648_p4 = scmp.ge.s32.totalorder %s7510_s26, 1  ;;  %p545_p5 = scmp.lt.s32.totalorder %s7510_s26, 7 }
  0x3b   : > { %s9158_s10 = scalar_lea.sflag [#allocation7], %s7725_s30  ;;  %p9168_p3 = pneg %p7720_p1 }
  0x3c   : > { %s7103_s8 = scalar_lea.vmem %s391_s22, 512  ;;  %s7512_s6 = smov [#allocation6]  }
  0x3d   : > { %p7104_p7 = scmp.ne.s32.totalorder %s391_s22, %s7103_s8  ;;  %s7108_s4 = sshll.u32 %s7512_s6, 4  ;;  %s7109_s4 = int_to_ptr.vmem [resolvable:$false] %s7108_s4 }
  0x3e   : > { %s389_s12 = scalar_lea.hbm %s9220_s1, %s9159_s29  ;;  %s7110_s9 = scalar_lea.vmem %s7109_s4, 1024 }
  0x3f   : > { %p7106_p8 = pnand %p7104_p7, %p9168_p3  ;;  %p7111_p13 = scmp.lt.s32.totalorder %s391_s22, %s7109_s4 }
  0x40   : > { %p7112_p6 = scmp.lt.s32.totalorder %s7110_s9, %s7103_s8 }
  0x41   : > { %p7107_p12 = pneg %p7106_p8 }
  0x42   : > { %p7113_p2 = por %p7112_p6, %p7111_p13 }
  0x44   : > { %p7114_p11 = pnand %p7113_p2, %p7107_p12 }
  0x46   : > { %7117 = shalt.err (!%p7114_p11)
}
  0x47   : > { %s9160_s28 = smov 64   ;;  %s9162_s4 = smov 4  }
  0x48   : > { %6620 = dma.hbm_to_vmem [thread:$0]  (!%p7720_p1), %s389_s12, 512, %s391_s22, %s9158_s10, %s9160_s28, %s9160_s28, %s9162_s4  }
  0x49   : > { %p7752_p2 = pnand %p5648_p4, %p545_p5  ;;  %p116_p6 = scmp.ne.s32.totalorder %s7478_s18, %s7474_s17 }
  0x4a   : > { %p122_p11 = scmp.ne.s32.totalorder %s7474_s17, %s7470_s16  ;;  %s7762_s19 = sand.u32 1, %s7478_s18  }
  0x4b   : > { %s9221_s6 = scalar_select %p7752_p2, 1, 0 }
  0x4c   : > { %9223 = sst [smem:[#allocation44_spill]] %s7762_s19  ;;  %p9224_p13 = scmp.eq.s32.totalorder %s7510_s26, 0 }
  0x4d   : > { %9222 = sst [smem:[#allocation43_spill]] %s9221_s6  ;;  %p9225_p8 = scmp.eq.s32.totalorder %s7660_s27, 0 }
  0x4e   : > { %p118_p7 = por %p116_p6, %p9224_p13  ;;  %s7773_s22 = sshll.u32 %s7762_s19, 7 }
  0x4f   : > { %p7768_p12 = por %p122_p11, %p9225_p8  ;;  %s7776_s12 = sshll.u32 %s7502_s24, 11 }
  0x50   : > { %p9228_p4 = scmp.lt.s32.totalorder %s7510_s26, 6  ;;  %s9230_s3 = sld [smem:[#allocation53_spill]] }
  0x51   : > { %s9226_s9 = scalar_select %p7768_p12, 1, 0 }
  0x52   : > { %p7780_p5 = pnand %p9228_p4, %p118_p7  ;;  %s425_s4 = scalar_lea.vmem [#allocation9], %s7773_s22 }
  0x53   : > { %9227 = sst [smem:[#allocation45_spill]] %s9226_s9  ;;  %s432_s8 = sshll.u32 %s425_s4, 4  ;;  %s433_s8 = int_to_ptr.vmem [resolvable:$true] %s432_s8 }
  0x54   : > { %s9179_s1 = scalar_lea.sflag [#allocation10], %s7725_s30  ;;  %p7792_p6 = pneg %p7780_p5 }
  0x55   : > { %s7131_s17 = scalar_lea.vmem %s433_s8, 2048  ;;  %s7515_s6 = smov [#allocation9]  }
  0x56   : > { %s431_s28 = scalar_lea.hbm %s9230_s3, %s7776_s12  ;;  %p7132_p11 = scmp.ne.s32.totalorder %s433_s8, %s7131_s17 }
  0x57   : > { %s7136_s2 = sshll.u32 %s7515_s6, 4  ;;  %s7137_s2 = int_to_ptr.vmem [resolvable:$false] %s7136_s2 }
  0x58   : > { %p7134_p13 = pnand %p7132_p11, %p7792_p6  ;;  %s7138_s29 = scalar_lea.vmem %s7137_s2, 4096 }
  0x59   : > { %p7139_p8 = scmp.lt.s32.totalorder %s433_s8, %s7137_s2  ;;  %p7140_p4 = scmp.lt.s32.totalorder %s7138_s29, %s7131_s17 }
  0x5a   : > { %p7135_p7 = pneg %p7134_p13 }
  0x5b   : > { %p7141_p3 = por %p7140_p4, %p7139_p8 }
  0x5d   : > { %p7142_p10 = pnand %p7141_p3, %p7135_p7 }
  0x5f   : > { %7145 = shalt.err (!%p7142_p10)
}
  0x60   : > { %s7516_s4 = smov 128   ;;  %s7517_s16 = smov 8  }
  0x61   : > { %6626 = dma.hbm_to_vmem [thread:$0]  (!%p7780_p5), %s431_s28, 2048, %s433_s8, %s9179_s1, %s7516_s4, %s7516_s4, %s7517_s16  }
  0x62   : > { %s9232_s5 = sld [smem:[#allocation55_spill]]  ;;  %s467_s2 = scalar_lea.vmem [#allocation12], %s7773_s22 }
  0x63   : > { %s474_s17 = sshll.u32 %s467_s2, 4  ;;  %s9178_s29 = scalar_lea.sflag [#allocation13], %s7725_s30  ;;  %s475_s17 = int_to_ptr.vmem [resolvable:$true] %s474_s17 }
  0x64   : > { %s7159_s23 = scalar_lea.vmem %s475_s17, 2048  ;;  %s7518_s21 = smov [#allocation12]  }
  0x65   : > { %p7160_p10 = scmp.ne.s32.totalorder %s475_s17, %s7159_s23  ;;  %s7164_s19 = sshll.u32 %s7518_s21, 4  ;;  %s7165_s19 = int_to_ptr.vmem [resolvable:$false] %s7164_s19 }
  0x66   : > { %s7166_s20 = scalar_lea.vmem %s7165_s19, 4096  ;;  %p7167_p13 = scmp.lt.s32.totalorder %s475_s17, %s7165_s19 }
  0x67   : > { %p7162_p3 = pnand %p7160_p10, %p7792_p6  ;;  %p7168_p7 = scmp.lt.s32.totalorder %s7166_s20, %s7159_s23 }
  0x68   : > { %s473_s0 = scalar_lea.hbm %s9232_s5, %s7776_s12 }
  0x69   : > { %p7163_p11 = pneg %p7162_p3  ;;  %p7169_p8 = por %p7168_p7, %p7167_p13 }
  0x6b   : > { %p7170_p4 = pnand %p7169_p8, %p7163_p11 }
  0x6d   : > { %7173 = shalt.err (!%p7170_p4)
}
  0x6e   : > { %6632 = dma.hbm_to_vmem [thread:$0]  (!%p7780_p5), %s473_s0, 2048, %s475_s17, %s9178_s29, %s7516_s4, %s7516_s4, %s7517_s16  }
  0x6f   : > { %p236_p10 = scmp.lt.s32.totalorder %s7502_s24, 1  ;;  %s9233_s3 = sadd.s32 1, %s7502_s24 }
  0x70   : > { %s9308_s3 = smov (%p7667_p0, %s9233_s3), 0  ;;  %s243_s23 = sadd.s32 1, %s7466_s15 }
  0x71   : > { %9234 = sst [smem:[#allocation46_spill]] %s9308_s3  ;;  %s106_s21 = ssub.s32 %s7502_s24, %s9308_s3 }
  0x72   : > { %s237_s20 = scalar_select %p236_p10, %s7502_s24, 1 }
  0x73   : > { %p238_p3 = scmp.lt.s32.totalorder %s9308_s3, 1  ;;  %p107_p11 = scmp.eq.s32.totalorder %s106_s21, 0 }
  0x74   : > { %s9235_s8 = sadd.s32 1, %s7478_s18  ;;  %p250_p13 = scmp.ne.s32.totalorder %s7466_s15, %s7462_s14 }
  0x75   : > { %s239_s28 = scalar_select %p238_p3, %s9308_s3, 1 }
  0x76   : > { %s7830_s19 = scalar_select %p107_p11, %s7478_s18, %s9235_s8  }
  0x77   : > { %s240_s0 = ssub.s32 %s237_s20, %s239_s28  ;;  %p256_p8 = scmp.ne.s32.totalorder %s7462_s14, %s7458_s13 }
  0x78   : > { %9236 = sst [smem:[#allocation47_spill]] %s7830_s19  ;;  %p241_p7 = scmp.eq.s32.totalorder %s240_s0, 0 }
  0x79   : > { %p9237_p0 = scmp.eq.s32.totalorder %s7510_s26, 0  ;;  %p9239_p12 = scmp.eq.s32.totalorder %s7660_s27, 0 }
  0x7a   : > { %s7839_s11 = scalar_select %p241_p7, %s7466_s15, %s243_s23  }
  0x7b   : > { %p252_p4 = por %p250_p13, %p9237_p0  ;;  %p7843_p10 = por %p256_p8, %p9239_p12 }
  0x7c   : > { %9238 = sst [smem:[#allocation48_spill]] %s7839_s11  ;;  %s507_s16 = sand.u32 1, %s7466_s15  }
  0x7d   : > { %s9240_s4 = scalar_select %p7843_p10, 1, 0 }
  0x7e   : > { %s6591_s6 = smul.u32 192, %s507_s16  ;;  %p9242_p3 = scmp.lt.s32.totalorder %s7510_s26, 6 }
  0x7f   : > { %9241 = sst [smem:[#allocation49_spill]] %s9240_s4  ;;  %s6592_s17 = smul.u32 3072, %s237_s20 }
  0x80   : > { %p7850_p9 = pnand %p9242_p3, %p252_p4  ;;  %s9244_s7 = sld [smem:[#allocation57_spill]] }
  0x81   : > { %s509_s23 = scalar_lea.vmem [#allocation15], %s6591_s6  ;;  %s506_s0 = scalar_lea.sflag [#allocation16], %s7725_s30 }
  0x82   : > { %s518_s8 = sshll.u32 %s509_s23, 4  ;;  %p7176_p12 = pneg %p7850_p9  ;;  %s519_s8 = int_to_ptr.vmem [resolvable:$true] %s518_s8 }
  0x83   : > { %s7187_s29 = scalar_lea.vmem %s519_s8, 3072  ;;  %s7519_s16 = smov [#allocation15]  }
  0x84   : > { %p7188_p11 = scmp.ne.s32.totalorder %s519_s8, %s7187_s29  ;;  %s7192_s1 = sshll.u32 %s7519_s16, 4  ;;  %s7193_s1 = int_to_ptr.vmem [resolvable:$false] %s7192_s1 }
  0x85   : > { %s7194_s5 = scalar_lea.vmem %s7193_s1, 6144  ;;  %p7195_p8 = scmp.lt.s32.totalorder %s519_s8, %s7193_s1 }
  0x86   : > { %s517_s28 = scalar_lea.hbm %s9244_s7, %s6592_s17  ;;  %p7190_p13 = pnand %p7188_p11, %p7176_p12 }
  0x87   : > { %p7196_p0 = scmp.lt.s32.totalorder %s7194_s5, %s7187_s29 }
  0x88   : > { %p7191_p7 = pneg %p7190_p13 }
  0x89   : > { %p7197_p4 = por %p7196_p0, %p7195_p8 }
  0x8b   : > { %p7198_p3 = pnand %p7197_p4, %p7191_p7 }
  0x8d   : > { %7201 = shalt.err (!%p7198_p3)
}
  0x8e   : > { %s9245_s20 = smov 4   ;;  %s9246_s6 = smov 64  }
  0x8f   : > { %s9247_s17 = sld [smem:[#allocation41_spill]]  ;;  %s9251_s16 = sshll.u32 %s7506_s25, 9 }
  0x90   : > { %s9248_s21 = sld [smem:[#allocation44_spill]]  ;;  %p9254_p11 = pneg %p7720_p1 }
  0x91   : > { %s9249_s13 = sld [smem:[#allocation32_spill]]  ;;  %s7520_s26 = smov [#allocation3]  }
  0x92   : > { %6638 = dma.hbm_to_vmem [thread:$0]  (!%p7850_p9), %s517_s28, 3072, %s519_s8, %s506_s0, %s9246_s6, %s9246_s6, %s9245_s20  }
  0x93   : > { %s9252_s5 = sld [smem:[#allocation50_spill]]  ;;  %s7220_s4 = sshll.u32 %s7520_s26, 4  ;;  %s7221_s4 = int_to_ptr.vmem [resolvable:$false] %s7220_s4 }
  0x94   : > { %s7222_s28 = scalar_lea.vmem %s7221_s4, 1024 }
  0x95   : > { %s360_s3 = scalar_lea.vmem [#allocation3], %s9247_s17 }
  0x96   : > { %s368_s19 = sshll.u32 %s360_s3, 4  ;;  %s5629_s2 = sshll.u32 %s9248_s21, 6  ;;  %s369_s19 = int_to_ptr.vmem [resolvable:$true] %s368_s19 }
  0x97   : > { %s9253_s18 = sand.u32 1, %s9249_s13   ;;  %s7215_s15 = scalar_lea.vmem %s369_s19, 512 }
  0x98   : > { %s357_s11 = scalar_lea.sflag [#allocation4], %s9253_s18  ;;  %p7216_p12 = scmp.ne.s32.totalorder %s369_s19, %s7215_s15 }
  0x99   : > { %s367_s29 = scalar_lea.hbm %s9252_s5, %s9251_s16  ;;  %p7223_p9 = scmp.lt.s32.totalorder %s369_s19, %s7221_s4 }
  0x9a   : > { %p7218_p13 = pnand %p7216_p12, %p9254_p11  ;;  %p7224_p8 = scmp.lt.s32.totalorder %s7222_s28, %s7215_s15 }
  0x9c   : > { %p7219_p7 = pneg %p7218_p13  ;;  %p7225_p0 = por %p7224_p8, %p7223_p9 }
  0x9e   : > { %p7226_p4 = pnand %p7225_p0, %p7219_p7 }
  0xa0   : > { %7229 = shalt.err (!%p7226_p4)
}
  0xa1   : > { %6617 = dma.hbm_to_vmem [thread:$0]  (!%p7720_p1), %s367_s29, 512, %s369_s19, %s357_s11, %s9246_s6, %s9246_s6, %s9245_s20  }
  0xa2   : > { %s5893_s7 = sshll.u32 %s7502_s24, 10  ;;  %s9255_s26 = sld [smem:[#allocation52_spill]] }
  0xa3   : > { %s404_s4 = scalar_lea.vmem [#allocation8], %s5629_s2  ;;  %s7521_s13 = smov [#allocation8]  }
  0xa4   : > { %s411_s15 = sshll.u32 %s404_s4, 4  ;;  %s7248_s23 = sshll.u32 %s7521_s13, 4  ;;  %s412_s15 = int_to_ptr.vmem [resolvable:$true] %s411_s15  ;;  %s7249_s23 = int_to_ptr.vmem [resolvable:$false] %s7248_s23 }
  0xa5   : > { %s7243_s17 = scalar_lea.vmem %s412_s15, 1024  ;;  %s7250_s16 = scalar_lea.vmem %s7249_s23, 2048 }
  0xa6   : > { %p7244_p3 = scmp.ne.s32.totalorder %s412_s15, %s7243_s17  ;;  %p7251_p13 = scmp.lt.s32.totalorder %s412_s15, %s7249_s23 }
  0xa7   : > { %p7252_p1 = scmp.lt.s32.totalorder %s7250_s16, %s7243_s17 }
  0xa8   : > { %s410_s8 = scalar_lea.hbm %s9255_s26, %s5893_s7  ;;  %p7246_p12 = pnand %p7244_p3, %p7792_p6 }
  0xa9   : > { %p7253_p7 = por %p7252_p1, %p7251_p13 }
  0xaa   : > { %p7247_p11 = pneg %p7246_p12 }
  0xac   : > { %p7254_p9 = pnand %p7253_p7, %p7247_p11 }
  0xae   : > { %7257 = shalt.err (!%p7254_p9)
}
  0xaf   : > { %s9256_s19 = scalar_lea.sflag [#allocation7], %s7725_s30  ;;  %s9257_s5 = sld [smem:[#allocation54_spill]] }
  0xb0   : > { %6623 = dma.hbm_to_vmem [thread:$0]  (!%p7780_p5), %s410_s8, 1024, %s412_s15, %s9256_s19, %s9246_s6, %s9246_s6, %s9245_s20  }
  0xb1   : > { %s446_s28 = scalar_lea.vmem [#allocation11], %s5629_s2  ;;  %s7522_s26 = smov [#allocation11]  }
  0xb2   : > { %s453_s18 = sshll.u32 %s446_s28, 4  ;;  %s7276_s4 = sshll.u32 %s7522_s26, 4  ;;  %s454_s18 = int_to_ptr.vmem [resolvable:$true] %s453_s18  ;;  %s7277_s4 = int_to_ptr.vmem [resolvable:$false] %s7276_s4 }
  0xb3   : > { %s7271_s3 = scalar_lea.vmem %s454_s18, 1024  ;;  %s7278_s17 = scalar_lea.vmem %s7277_s4, 2048 }
  0xb4   : > { %p7272_p8 = scmp.ne.s32.totalorder %s454_s18, %s7271_s3  ;;  %p7279_p3 = scmp.lt.s32.totalorder %s454_s18, %s7277_s4 }
  0xb5   : > { %s452_s29 = scalar_lea.hbm %s9257_s5, %s5893_s7  ;;  %p7280_p12 = scmp.lt.s32.totalorder %s7278_s17, %s7271_s3 }
  0xb6   : > { %p7274_p0 = pnand %p7272_p8, %p7792_p6 }
  0xb7   : > { %p7281_p11 = por %p7280_p12, %p7279_p3 }
  0xb8   : > { %p7275_p4 = pneg %p7274_p0 }
  0xba   : > { %p7282_p13 = pnand %p7281_p11, %p7275_p4 }
  0xbc   : > { %7285 = shalt.err (!%p7282_p13)
}
  0xbd   : > { %s9258_s2 = scalar_lea.sflag [#allocation10], %s7725_s30  ;;  %s9259_s15 = sld [smem:[#allocation56_spill]] }
  0xbe   : > { %6629 = dma.hbm_to_vmem [thread:$0]  (!%p7780_p5), %s452_s29, 1024, %s454_s18, %s9258_s2, %s9246_s6, %s9246_s6, %s9245_s20  }
  0xbf   : > { %s488_s23 = scalar_lea.vmem [#allocation14], %s7773_s22  ;;  %s5645_s19 = sshll.u32 %s9248_s21, 4 }
  0xc0   : > { %s495_s16 = sshll.u32 %s488_s23, 4  ;;  %s7523_s1 = smov [#allocation14]   ;;  %s496_s16 = int_to_ptr.vmem [resolvable:$true] %s495_s16 }
  0xc1   : > { %s7299_s11 = scalar_lea.vmem %s496_s16, 2048  ;;  %s7304_s5 = sshll.u32 %s7523_s1, 4  ;;  %s7305_s5 = int_to_ptr.vmem [resolvable:$false] %s7304_s5 }
  0xc2   : > { %p7300_p1 = scmp.ne.s32.totalorder %s496_s16, %s7299_s11  ;;  %s7306_s28 = scalar_lea.vmem %s7305_s5, 4096 }
  0xc3   : > { %s494_s13 = scalar_lea.hbm %s9259_s15, %s7776_s12  ;;  %p7307_p8 = scmp.lt.s32.totalorder %s496_s16, %s7305_s5 }
  0xc4   : > { %p7302_p7 = pnand %p7300_p1, %p7792_p6  ;;  %p7308_p0 = scmp.lt.s32.totalorder %s7306_s28, %s7299_s11 }
  0xc6   : > { %p7303_p9 = pneg %p7302_p7  ;;  %p7309_p4 = por %p7308_p0, %p7307_p8 }
  0xc8   : > { %p7310_p3 = pnand %p7309_p4, %p7303_p9 }
  0xca   : > { %7313 = shalt.err (!%p7310_p3)
}
  0xcb   : > { %s9260_s22 = scalar_lea.sflag [#allocation13], %s7725_s30  ;;  %s5898_s12 = sshll.u32 %s7502_s24, 8 }
  0xcc   : > { %6635 = dma.hbm_to_vmem [thread:$0]  (!%p7780_p5), %s494_s13, 2048, %s496_s16, %s9260_s22, %s9246_s6, %s9246_s6, %s9245_s20  }
  0xcd   : > { %s9261_s18 = sld [smem:[#allocation58_spill]]  ;;  %s532_s26 = scalar_lea.vmem [#allocation17], %s5645_s19 }
  0xce   : > { %s540_s4 = sshll.u32 %s532_s26, 4  ;;  %s7524_s2 = smov [#allocation17]   ;;  %s541_s4 = int_to_ptr.vmem [resolvable:$true] %s540_s4 }
  0xcf   : > { %s7327_s17 = scalar_lea.vmem %s541_s4, 256  ;;  %s7332_s7 = sshll.u32 %s7524_s2, 4  ;;  %s7333_s7 = int_to_ptr.vmem [resolvable:$false] %s7332_s7 }
  0xd0   : > { %p7328_p12 = scmp.ne.s32.totalorder %s541_s4, %s7327_s17  ;;  %s7334_s8 = scalar_lea.vmem %s7333_s7, 512 }
  0xd1   : > { %p7335_p1 = scmp.lt.s32.totalorder %s541_s4, %s7333_s7  ;;  %p7336_p7 = scmp.lt.s32.totalorder %s7334_s8, %s7327_s17 }
  0xd2   : > { %p7330_p11 = pnand %p7328_p12, %p7792_p6 }
  0xd3   : > { %s538_s3 = scalar_lea.hbm %s9261_s18, %s5898_s12  ;;  %p7337_p9 = por %p7336_p7, %p7335_p1 }
  0xd4   : > { %p7331_p13 = pneg %p7330_p11 }
  0xd6   : > { %p7338_p8 = pnand %p7337_p9, %p7331_p13 }
  0xd8   : > { %7341 = shalt.err (!%p7338_p8)
}
  0xd9   : > { %6641 = dma.hbm_to_vmem [thread:$0]  (!%p7780_p5), %s538_s3, 256, %s541_s4, %s506_s0  }
  0xda   : > { %549 = sbr.rel (%p7752_p2) target bundleno = 8305 (0x2071), region = 60  ;;  %s9263_s9 = sld [smem:[#allocation31_spill]] (!%p7752_p2) }
  0xdb   : > { %s9264_s6 = sld [smem:[#allocation37_spill]] (!%p7752_p2) }
  0xe0   : > { %s7941_s15 = sand.u32 1, %s9263_s9  }
  0xe1   : > { %s7944_s13 = sshll.u32 %s7941_s15, 5  ;;  %s552_s23 = scalar_lea.sflag [#allocation4], %s7941_s15 }
  0xe2   : > { %s7948_s16 = scalar_lea.vmem [#allocation3], %s7944_s13  ;;  %p9265_p6 = scmp.ne.s32.totalorder %s9264_s6, 0 }
  0xe4   : > { %7425 = dma.done.wait (%p9265_p6), %s552_s23, 512  }
  0xe5   : > { %7427 = vsyncadd (%p9265_p6), %s552_s23, 4294966784  ;;  %s560_s30 = sand.u32 1, %s7660_s27   ;;  %s7956_s0 = scalar_lea.vmem [#allocation6], %s7944_s13 }
  0xe6   : > { %s561_s10 = scalar_lea.sflag [#allocation7], %s560_s30 }
  0xe7   : > { %7429 = dma.done.wait (%p9265_p6), %s561_s10, 512  }
  0xe8   : > { %7431 = vsyncadd (%p9265_p6), %s561_s10, 4294966784  ;;  %s9266_s19 = sld [smem:[#allocation28_spill]] }
  0xe9   : > { %s9267_s11 = sld [smem:[#allocation45_spill]] }
  0xee   : > { %s571_s1 = sand.u32 1, %s9266_s19  }
  0xef   : > { %s5651_s5 = sshll.u32 %s571_s1, 6  ;;  %p9268_p2 = scmp.ne.s32.totalorder %s9267_s11, 0 }
  0xf0   : > { %s7963_s28 = scalar_lea.vmem [#allocation8], %s5651_s5 }
  0xf1   : > { %7433 = dma.done.wait (%p9268_p2), %s561_s10, 1024  }
  0xf2   : > { %7435 = vsyncadd (%p9268_p2), %s561_s10, 4294966272  ;;  %s5652_s27 = sshll.u32 %s571_s1, 7  ;;  %s579_s22 = scalar_lea.sflag [#allocation10], %s560_s30 }
  0xf3   : > { %s7969_s12 = scalar_lea.vmem [#allocation9], %s5652_s27 }
  0xf4   : > { %7437 = dma.done.wait (%p9268_p2), %s579_s22, 3072  }
  0xf5   : > { %7439 = vsyncadd (%p9268_p2), %s579_s22, 4294964224  ;;  %s7975_s21 = scalar_lea.vmem [#allocation11], %s5651_s5  ;;  %s597_s29 = scalar_lea.sflag [#allocation13], %s560_s30 }
  0xf6   : > { %s7977_s18 = scalar_lea.vmem [#allocation12], %s5652_s27 }
  0xf7   : > { %7441 = dma.done.wait (%p9268_p2), %s597_s29, 4096  }
  0xf8   : > { %7443 = vsyncadd (%p9268_p2), %s597_s29, 4294963200  ;;  %s616_s26 = sand.u32 1, %s7462_s14   ;;  %s7984_s17 = scalar_lea.vmem [#allocation14], %s5652_s27 }
  0xf9   : > { %s6593_s4 = smul.u32 192, %s616_s26  ;;  %s615_s2 = scalar_lea.sflag [#allocation16], %s560_s30 }
  0xfb   : > { %s7986_s7 = scalar_lea.vmem [#allocation15], %s6593_s4 }
  0xfc   : > { %7445 = dma.done.wait (%p7843_p10), %s615_s2, 3072  }
  0xfd   : > { %7447 = vsyncadd (%p7843_p10), %s615_s2, 4294964224  ;;  %s5656_s8 = sshll.u32 %s571_s1, 4 }
  0xfe   : > { %s7992_s20 = scalar_lea.vmem [#allocation17], %s5656_s8 }
  0xff   : > { %7449 = dma.done.wait (%p9268_p2), %s615_s2, 256  }
 0x100   : > { %7451 = vsyncadd (%p9268_p2), %s615_s2, 4294967040  ;;  %s7999_s9 = scalar_lea.vmem [#allocation18], %s7944_s13  ;;  %s9270_s6 = sld [smem:[#allocation33_spill]] }
 0x106   : > { %p5658_p5 = scmp.ne.s32.totalorder %s9270_s6, 0 }
 0x108   : > { %713 = sbr.rel (%p5658_p5) target bundleno = 276 (0x114), region = 100 }
 0x10d   : > { %v5910_v0 = vld [vmem:[%s7948_s16] sm:$0xff]   ;;  %v5945_v1 = vld [vmem:[%s7948_s16 + $0x8] sm:$0xff]   ;;  %v5946_v2 = vld [vmem:[%s7948_s16 + $0x10] sm:$0xff]  }
 0x10e   : > { %v5911_v3 = vunpack.c.l.bf16 %v5910_v0  ;;  %v5912_v4 = vunpack.c.h.bf16 %v5910_v0  ;;  %v5915_v5 = vunpack.c.l.bf16 %v5945_v1  ;;  %v5916_v6 = vunpack.c.h.bf16 %v5945_v1  ;;  %v5947_v7 = vld [vmem:[%s7948_s16 + $0x18] sm:$0xff]  }
 0x10f   : > { %v5919_v8 = vunpack.c.l.bf16 %v5946_v2  ;;  %v5920_v9 = vunpack.c.h.bf16 %v5946_v2  ;;  %v5923_v10 = vunpack.c.l.bf16 %v5947_v7  ;;  %v5924_v11 = vunpack.c.h.bf16 %v5947_v7 }
 0x110   : > { %730 = vst [vmem:[#allocation2 + $0x30] sm:$0xff] %v5911_v3  ;;  %731 = vst [vmem:[#allocation2] sm:$0xff] %v5912_v4 }
 0x111   : > { %732 = vst [vmem:[#allocation2 + $0x18] sm:$0xff] %v5915_v5  ;;  %733 = vst [vmem:[#allocation2 + $0x10] sm:$0xff] %v5916_v6 }
 0x112   : > { %734 = vst [vmem:[#allocation2 + $0x8] sm:$0xff] %v5919_v8  ;;  %735 = vst [vmem:[#allocation2 + $0x20] sm:$0xff] %v5920_v9 }
 0x113   : > { %736 = vst [vmem:[#allocation2 + $0x28] sm:$0xff] %v5923_v10  ;;  %737 = vst [vmem:[#allocation2 + $0x38] sm:$0xff] %v5924_v11 }
 0x114 PF: > { %v6772_v12 = vld [vmem:[%s7969_s12 + $0x74] ss:$8 sps:$4 sm:$0xff]   ;;  %v6774_v13 = vld [vmem:[%s7969_s12 + $0x70] ss:$8 sps:$4 sm:$0xff]   ;;  %v7525_v14 = vmov 0   ;;  %v6786_v22 = vld [vmem:[%s7963_s28 + $0x28] sm:$0xff]   ;;  %v776_v53 = vlaneseq }
 0x115   : > { %1053 = vmatprep.mubr.bf16.mxu1 %v7525_v14  ;;  %1021 = vmatprep.subr.bf16.mxu1 %v6772_v12  ;;  %v6775_v15 = vld [vmem:[%s7969_s12 + $0x64] ss:$8 sps:$4 sm:$0xff]   ;;  %v6777_v16 = vld [vmem:[%s7969_s12 + $0x60] ss:$8 sps:$4 sm:$0xff]   ;;  %v6778_v17 = vld [vmem:[%s7963_s28 + $0x38] sm:$0xff]   ;;  %v7526_v50 = vmov 0.0  }
 0x116   : > { %1022 = vmatpush1.bf16.msra.mxu1 %v6774_v13  ;;  %v6779_v18 = vld [vmem:[%s7969_s12 + $0x54] ss:$8 sps:$4 sm:$0xff]   ;;  %6159 = vmatprep.subr.bf16.mxu0 %v6778_v17  ;;  %v6781_v20 = vld [vmem:[%s7969_s12 + $0x50] ss:$8 sps:$4 sm:$0xff]   ;;  %v6783_v21 = vld [vmem:[%s7969_s12 + $0x44] ss:$8 sps:$4 sm:$0xff]  }
 0x117   : > { %1023 = vmatprep.subr.bf16.mxu1 %v6775_v15  ;;  %v6782_v19 = vld [vmem:[%s7963_s28 + $0x30] sm:$0xff]   ;;  %6160 = vmatpush3.bf16.msra.mxu0 %v6778_v17  ;;  %v6785_v23 = vld [vmem:[%s7969_s12 + $0x40] ss:$8 sps:$4 sm:$0xff]   ;;  %v6794_v27 = vld [vmem:[%s7963_s28 + $0x18] sm:$0xff]   ;;  %vm7527_vm0 = vmmov 0   ;;  %v8041_v54 = vshrl.u32 %v776_v53, 7 }
 0x118   : > { %6161 = vmatprep.subr.bf16.mxu0 %v6782_v19  ;;  %v6790_v24 = vld [vmem:[%s7963_s28 + $0x20] sm:$0xff]   ;;  %v6787_v25 = vld [vmem:[%s7969_s12 + $0x34] ss:$8 sps:$4 sm:$0xff]   ;;  %v6789_v26 = vld [vmem:[%s7969_s12 + $0x30] ss:$8 sps:$4 sm:$0xff]   ;;  %vm1119_vm1 = vcmask 261120  }
 0x119   : > { %v6791_v28 = vld [vmem:[%s7969_s12 + $0x24] ss:$8 sps:$4 sm:$0xff]   ;;  %v6793_v29 = vld [vmem:[%s7969_s12 + $0x20] ss:$8 sps:$4 sm:$0xff]   ;;  %v6798_v30 = vld [vmem:[%s7963_s28 + $0x10] sm:$0xff]   ;;  %v911_v56 = vsub.s32 1, %v8041_v54 }
 0x11a   : > { %1024 = vmatpush1.bf16.msra.mxu1 %v6777_v16  ;;  %v740_v31 = vld [vmem:[#allocation2 + $0x30] sm:$0xff]  ;;  %v741_v33 = vld [vmem:[#allocation2] sm:$0xff]  ;;  %v6802_v35 = vld [vmem:[%s7963_s28 + $0x8] sm:$0xff]   ;;  %v778_v58 = vsub.s32 0, %v8041_v54  ;;  %s7528_s13 = smov 96   ;;  %vm1169_vm2 = vcmask 130048  }
 0x11b   : > { %1025 = vmatprep.subr.bf16.mxu1 %v6779_v18  ;;  %6162 = vmatpush3.bf16.msra.mxu0 %v6782_v19  ;;  %v6795_v32 = vld [vmem:[%s7969_s12 + $0x14] ss:$8 sps:$4 sm:$0xff]   ;;  %v6797_v34 = vld [vmem:[%s7969_s12 + $0x10] ss:$8 sps:$4 sm:$0xff]   ;;  %v772_v36 = vpack.c.bf16 %v741_v33, %v740_v31  ;;  %v6799_v37 = vld [vmem:[%s7969_s12 + $0x4] ss:$8 sps:$4 sm:$0xff]  }
 0x11c   : > { %6163 = vmatprep.subr.bf16.mxu0 %v6786_v22  ;;  %v6801_v38 = vld [vmem:[%s7969_s12] ss:$8 sps:$4 sm:$0xff]   ;;  %v742_v41 = vld [vmem:[#allocation2 + $0x18] sm:$0xff]  ;;  %v743_v42 = vld [vmem:[#allocation2 + $0x10] sm:$0xff]  ;;  %s7529_s23 = smov 64   ;;  %s7530_s16 = smov 32  }
 0x11d   : > { %6175 = vmatprep.mubr.bf16.mxu0 %v772_v36  ;;  %v6804_v39 = vld [vmem:[%s7963_s28] sm:$0xff]   ;;  %v773_v43 = vpack.c.bf16 %v743_v42, %v742_v41  ;;  %v744_v44 = vld [vmem:[#allocation2 + $0x8] sm:$0xff]  ;;  %v747_v48 = vld [vmem:[#allocation2 + $0x38] sm:$0xff]  ;;  %s9271_s30 = sld [smem:[#allocation33_spill]] }
 0x11e   : > { %1026 = vmatpush1.bf16.msra.mxu1 %v6781_v20  ;;  %v6803_v40 = vld [vmem:[%s7956_s0] sm:$0xff]   ;;  %v746_v47 = vld [vmem:[#allocation2 + $0x28] sm:$0xff]  ;;  %v6806_v52 = vld [vmem:[%s7956_s0 + $0x10] sm:$0xff]  }
 0x11f   : > { %1027 = vmatprep.subr.bf16.mxu1 %v6783_v21  ;;  %6164 = vmatpush3.bf16.msra.mxu0 %v6786_v22  ;;  %v745_v45 = vld [vmem:[#allocation2 + $0x20] sm:$0xff]  ;;  %v775_v49 = vpack.c.bf16 %v747_v48, %v746_v47  ;;  %v6805_v51 = vld [vmem:[%s7956_s0 + $0x8] sm:$0xff]   ;;  %v6807_v55 = vld [vmem:[%s7956_s0 + $0x18] sm:$0xff]  }
 0x120   : > { %6165 = vmatprep.subr.bf16.mxu0 %v6790_v24  ;;  %v774_v46 = vpack.c.bf16 %v745_v45, %v744_v44  ;;  %v8046_v57 = vld [vmem:[%s7992_s20] sm:$0xff]  ;;  %v739_v5 = vld [vmem:[%s7992_s20 + $0x8] sm:$0xff] }
 0x121   : > { %v8052_v60 = vrot.slane %v8046_v57, %v911_v56  ;;  %v8055_v62 = vrot.slane %v8046_v57, %v778_v58  ;;  %v8069_v13 = vrot.slane %v739_v5, %v911_v56 }
 0x122   : > { %1028 = vmatpush1.bf16.msra.mxu1 %v6785_v23 }
 0x123   : > { %1029 = vmatprep.subr.bf16.mxu1 %v6787_v25  ;;  %6166 = vmatpush3.bf16.msra.mxu0 %v6790_v24  ;;  %p4523_p10 = scmp.lt.s32.totalorder %s9271_s30, 2  ;;  %p5775_p0 = scmp.ge.s32.totalorder %s9271_s30, 2 }
 0x124   : > { %6167 = vmatprep.subr.bf16.mxu0 %v6794_v27 }
 0x126   : > { %1030 = vmatpush1.bf16.msra.mxu1 %v6789_v26 }
 0x127   : > { %1031 = vmatprep.subr.bf16.mxu1 %v6791_v28  ;;  %6168 = vmatpush3.bf16.msra.mxu0 %v6794_v27 }
 0x128   : > { %6169 = vmatprep.subr.bf16.mxu0 %v6798_v30 }
 0x12a   : > { %1032 = vmatpush1.bf16.msra.mxu1 %v6793_v29 }
 0x12b   : > { %1033 = vmatprep.subr.bf16.mxu1 %v6795_v32  ;;  %6170 = vmatpush3.bf16.msra.mxu0 %v6798_v30 }
 0x12c   : > { %6171 = vmatprep.subr.bf16.mxu0 %v6802_v35 }
 0x12e   : > { %1034 = vmatpush1.bf16.msra.mxu1 %v6797_v34 }
 0x12f   : > { %1035 = vmatprep.subr.bf16.mxu1 %v6799_v37  ;;  %6172 = vmatpush3.bf16.msra.mxu0 %v6802_v35 }
 0x130   : > { %6173 = vmatprep.subr.bf16.mxu0 %v6804_v39 }
 0x132   : > { %1036 = vmatpush1.bf16.msra.mxu1 %v6801_v38 }
 0x133   : > { %6174 = vmatpush3.bf16.msra.mxu0 %v6804_v39  ;;  %6203 = vmatprep.subr.bf16.mxu1 %v7526_v50 }
 0x134   : > { %6183 = vmatprep.subr.bf16.mxu0 %v7526_v50 }
 0x135   : > { %1054 = vmatmul.mubr.bf16.vlgmr.msra.gmra.mxu1 %v6803_v40 }
 0x136   : > { %1063 = vmatprep.mubr.bf16.mxu1 %v7525_v14  ;;  %6176 = vmatmul.mubr.bf16.vlgmr.msra.gmra.mxu0 %v773_v43 }
 0x137   : > { %6179 = vmatprep.mubr.bf16.mxu0 %v774_v46 }
 0x13d   : > { %1064 = vmatmul.mubr.bf16.gmra.mxu1 %v6805_v51 }
 0x13e   : > { %6180 = vmatmul.mubr.bf16.gmra.mxu0 %v775_v49  ;;  %1073 = vmatprep.mubr.bf16.mxu1 %v7525_v14 }
 0x13f   : > { %6185 = vmatprep.mubr.msk.bf16.mxu0 %vm7527_vm0, %v7526_v50 }
 0x145   : > { %1074 = vmatmul.mubr.bf16.gmra.mxu1 %v6806_v52 }
 0x146   : > { %1083 = vmatprep.mubr.bf16.mxu1 %v7525_v14 }
 0x14d   : > { %1084 = vmatmul.mubr.bf16.gmra.mxu1 %v6807_v55 }
 0x14e   : > { %6205 = vmatprep.mubr.msk.bf16.mxu1 %vm7527_vm0, %v7526_v50 }
 0x1f5   : > { %v1055_v59 = vpop.f32.mrf.mxu1 }
 0x1f6   : > { %v6177_v63 = vpop.f32.mrf.mxu0  ;;  %v1056_v1 = vadd.f32 %v1055_v59, %v8052_v60 }
 0x1f7   : > { %v1057_v61 = vpop.f32.mrf.mxu1  ;;  %v871_v4 = vadd.f32 %v6177_v63, %v8055_v62 }
 0x1f8   : > { %v862_v3 = vpop.f32.mrf.mxu0  ;;  %v1058_v19 = vadd.f32 %v1057_v61, %v8069_v13 }
 0x1f9   : > { %v1059_v0 = vpop.f32.mrf.mxu1  ;;  %v863_v8 = vadd.f32 %v862_v3, %v8055_v62 }
 0x1fa   : > { %v1060_v2 = vadd.f32 %v1059_v0, %v8052_v60  ;;  %v6178_v7 = vpop.f32.mrf.mxu0 }
 0x1fb   : > { %v874_v9 = vadd.f32 %v6178_v7, %v8055_v62  ;;  %v1061_v10 = vpop.f32.mrf.mxu1 }
 0x1fc   : > { %v8061_v6 = vpack.c.bf16 %v1060_v2, %v1056_v1  ;;  %v865_v12 = vpop.f32.mrf.mxu0  ;;  %v1062_v17 = vadd.f32 %v1061_v10, %v8069_v13 }
 0x1fd   : > { %v8071_v15 = vpack.c.bf16 %v874_v9, %v871_v4  ;;  %v866_v16 = vadd.f32 %v865_v12, %v8055_v62  ;;  %v1065_v27 = vpop.f32.mrf.mxu1 }
 0x1fe   : > { %1304 = vrot.lane.b32.xlu0 %v8061_v6, %s7528_s13  ;;  %v1124_v11 = vsel %vm1119_vm1, %v8061_v6, 0  ;;  %v8081_v20 = vpack.c.bf16 %v1062_v17, %v1058_v19  ;;  %v6181_v21 = vpop.f32.mrf.mxu0  ;;  %v1066_v29 = vadd.f32 %v1065_v27, %v8052_v60  ;;  %v8142_v27 = vld [vmem:[%s7975_s21 + $0x8] sm:$0xff]  }
 0x1ff   : > { %6184 = vmatpush3.bf16.xpose.msra.mxu0 %v1124_v11  ;;  %v8076_v18 = vpack.c.bf16 %v866_v16, %v863_v8  ;;  %v887_v23 = vadd.f32 %v6181_v21, %v8055_v62  ;;  %v8095_v28 = vpop.f32.mrf.mxu1 }
 0x200   : > { %6189 = vmatprep.subr.bf16.mxu0 %v7526_v50  ;;  %v8089_v22 = vpop.f32.mrf.mxu0 }
 0x201   : > { %v1069_v30 = vpop.f32.mrf.mxu1 }
 0x202   : > { %1301 = vrot.lane.b32.xlu0 %v8076_v18, %s7528_s13  ;;  %v6182_v24 = vpop.f32.mrf.mxu0  ;;  %v1070_v31 = vadd.f32 %v1069_v30, %v8052_v60 }
 0x203   : > { %v890_v25 = vadd.f32 %v6182_v24, %v8055_v62  ;;  %v8099_v32 = vpop.f32.mrf.mxu1 }
 0x204   : > { %v8101_v33 = vpack.c.bf16 %v1070_v31, %v1066_v29  ;;  %v8122_v51 = vpop.f32.mrf.mxu0  ;;  %v8147_v29 = vld [vmem:[%s7975_s21] sm:$0xff]  }
 0x205   : > { %v8093_v26 = vpack.c.bf16 %v890_v25, %v887_v23  ;;  %v1075_v34 = vpop.f32.mrf.mxu1 }
 0x206   : > { %6186 = vmatmul.mubr.msk.bf16.vlgmr.msra.gmra.mxu0 %vm1119_vm1, %v8076_v18  ;;  %v1076_v36 = vadd.f32 %v1075_v34, %v8052_v60 }
 0x207   : > { %6190 = vmatpush3.bf16.msra.mxu0 %v8081_v20  ;;  %6191 = vmatprep.mubr.msk.bf16.mxu0 %vm7527_vm0, %v7526_v50  ;;  %v8103_v35 = vpop.f32.mrf.mxu1 }
 0x208   : > { %6195 = vmatprep.subr.bf16.mxu0 %v7526_v50 }
 0x209   : > { %v1079_v37 = vpop.f32.mrf.mxu1 }
 0x20a   : > { %v1080_v38 = vadd.f32 %v1079_v37, %v8052_v60 }
 0x20b   : > { %v8114_v43 = vpop.f32.mrf.mxu1 }
 0x20c   : > { %v8107_v39 = vpack.c.bf16 %v1080_v38, %v1076_v36 }
 0x20d   : > { %v1085_v44 = vpop.f32.mrf.mxu1 }
 0x20e   : > { %v1086_v46 = vadd.f32 %v1085_v44, %v8052_v60 }
 0x20f   : > { %v8116_v45 = vpop.f32.mrf.mxu1 }
 0x211   : > { %v1089_v47 = vpop.f32.mrf.mxu1 }
 0x212   : > { %v1090_v48 = vadd.f32 %v1089_v47, %v8052_v60 }
 0x213   : > { %v8126_v0 = vpop.f32.mrf.mxu1 }
 0x214   : > { %v8120_v49 = vpack.c.bf16 %v1090_v48, %v1086_v46 }
 0x270   : > { %v1305_v40 = vpop.permute.xlu0 %1304 }
 0x271   : > { %v1310_v41 = vsel %vm1119_vm1, %v1305_v40, 0 }
 0x272   : > { %6204 = vmatpush3.bf16.xpose.msra.mxu1 %v1310_v41 }
 0x273   : > { %6215 = vmatprep.subr.bf16.mxu1 %v7526_v50 }
 0x274   : > { %v1302_v42 = vpop.permute.xlu0 %1301 }
 0x279   : > { %6206 = vmatmul.mubr.msk.bf16.vlgmr.msra.gmra.mxu1 %vm1119_vm1, %v1302_v42 }
 0x27a   : > { %6219 = vmatprep.mubr.msk.bf16.mxu1 %vm7527_vm0, %v7526_v50 }
 0x2c6   : > { %v1160_v52 = vpop.f32.mrf.mxu0 }
 0x2c7   : > { %v1167_v53 = vmul.f32 0.17677669, %v1160_v52 }
 0x2c8   : > { %v6187_v55 = vpop.f32.mrf.mxu0 }
 0x2c9   : > { %v1170_v56 = vsel %vm1169_vm2, %v1167_v53, -inf }
 0x2ca   : > { %1171 = vmax.xlane.f32.xlu1 %v1170_v56  ;;  %v1163_v58 = vpop.f32.mrf.mxu0 }
 0x2cb   : > { %v1168_v59 = vmul.f32 0.17677669, %v1163_v58 }
 0x2cc   : > { %v6188_v61 = vpop.f32.mrf.mxu0 }
 0x2cd   : > { %v1173_v63 = vsel %vm1169_vm2, %v1168_v59, -inf }
 0x2ce   : > { %1174 = vmax.xlane.f32.xlu1 %v1173_v63 }
 0x339   : > { %v1346_v60 = vpop.f32.mrf.mxu1 }
 0x33a   : > { %v1353_v1 = vmul.f32 0.17677669, %v1346_v60 }
 0x33b   : > { %v6207_v2 = vpop.f32.mrf.mxu1 }
 0x33c   : > { %v1355_v3 = vsel %vm1169_vm2, %v1353_v1, -inf }
 0x33d   : > { %v1349_v4 = vpop.f32.mrf.mxu1  ;;  %1356 = vmax.xlane.f32.xlu1 %v1355_v3 }
 0x33e   : > { %v1354_v5 = vmul.f32 0.17677669, %v1349_v4  ;;  %v8168_v4 = vld [vmem:[%s7975_s21 + $0x18] sm:$0xff]  }
 0x33f   : > { %v6208_v7 = vpop.f32.mrf.mxu1  ;;  %6216 = vmatpush3.bf16.msra.mxu1 %v8168_v4 }
 0x340   : > { %v1358_v8 = vsel %vm1169_vm2, %v1354_v5, -inf  ;;  %6217 = vmatprep.subr.bf16.mxu1 %v7526_v50 }
 0x341   : > { %1359 = vmax.xlane.f32.xlu1 %v1358_v8 }
 0x353   : > { %v1172_v9 = vpop.xlane.xlu1 %1171 }
 0x354   : > { %v1176_v10 = vsub.f32 %v1167_v53, %v1172_v9 }
 0x356   : > { %v1178_v11 = vmul.f32 1.442695, %v1176_v10 }
 0x357   : > { %v1175_v12 = vpop.xlane.xlu1 %1174 }
 0x358   : > { %6856 = vpow2.f32 %v1178_v11  ;;  %v1177_v16 = vsub.f32 %v1168_v59, %v1175_v12 }
 0x35a   : > { %v1180_v17 = vmul.f32 1.442695, %v1177_v16 }
 0x35c   : > { %6858 = vpow2.f32 %v1180_v17 }
 0x365   : > { %v6857_v19 = vpop.eup %6856 }
 0x366   : > { %v1182_v21 = vsel %vm1169_vm2, %v6857_v19, 0.0 }
 0x367   : > { %1183 = vadd.xlane.f32.xlu0 %v1182_v21 }
 0x369   : > { %v6859_v23 = vpop.eup %6858 }
 0x36a   : > { %v1185_v24 = vsel %vm1169_vm2, %v6859_v23, 0.0  ;;  %v1188_v25 = vpack.c.bf16 %v6859_v23, %v6857_v19 }
 0x36b   : > { %1186 = vadd.xlane.f32.xlu1 %v1185_v24 }
 0x36c   : > { %6192 = vmatmul.mubr.msk.bf16.vlgmr.msra.gmra.mxu0 %vm1169_vm2, %v1188_v25 }
 0x36d   : > { %6199 = vmatprep.mubr.msk.bf16.mxu0 %vm7527_vm0, %v7526_v50  ;;  %6196 = vmatpush3.bf16.msra.mxu0 %v8142_v27 }
 0x36e   : > { %6197 = vmatprep.subr.bf16.mxu0 %v7526_v50 }
 0x371   : > { %6198 = vmatpush3.bf16.msra.mxu0 %v8147_v29 }
 0x372   : > { %6209 = vmatprep.subr.bf16.mxu0 %v7526_v50 }
 0x37c   : > { %1375 = vrot.lane.b32.xlu1 %v8081_v20, %s7528_s13 }
 0x37d   : > { %1485 = vrot.lane.b32.xlu0 %v8076_v18, %s7529_s23 }
 0x380   : > { %1487 = vrot.lane.b32.xlu1 %v8061_v6, %s7529_s23 }
 0x3c6   : > { %v1357_v30 = vpop.xlane.xlu1 %1356 }
 0x3c7   : > { %v1361_v31 = vsub.f32 %v1353_v1, %v1357_v30 }
 0x3c9   : > { %v1363_v34 = vmul.f32 1.442695, %v1361_v31 }
 0x3ca   : > { %v1360_v36 = vpop.xlane.xlu1 %1359 }
 0x3cb   : > { %6860 = vpow2.f32 %v1363_v34  ;;  %v1362_v37 = vsub.f32 %v1354_v5, %v1360_v36  ;;  %v8173_v5 = vld [vmem:[%s7975_s21 + $0x10] sm:$0xff]  }
 0x3cc   : > { %6218 = vmatpush3.bf16.msra.mxu1 %v8173_v5 }
 0x3cd   : > { %v1365_v38 = vmul.f32 1.442695, %v1362_v37  ;;  %6229 = vmatprep.subr.bf16.mxu1 %v7526_v50 }
 0x3cf   : > { %6862 = vpow2.f32 %v1365_v38 }
 0x3d8   : > { %v6861_v40 = vpop.eup %6860 }
 0x3d9   : > { %v1367_v41 = vsel %vm1169_vm2, %v6861_v40, 0.0 }
 0x3da   : > { %1368 = vadd.xlane.f32.xlu1 %v1367_v41 }
 0x3dc   : > { %v6863_v42 = vpop.eup %6862 }
 0x3dd   : > { %v1370_v44 = vsel %vm1169_vm2, %v6863_v42, 0.0  ;;  %v1373_v46 = vpack.c.bf16 %v6863_v42, %v6861_v40 }
 0x3de   : > { %1371 = vadd.xlane.f32.xlu0 %v1370_v44 }
 0x3f0   : > { %v1184_v47 = vpop.xlane.xlu0 %1183 }
 0x3f1   : > { %6864 = vrcp.f32 %v1184_v47 }
 0x3f4   : > { %1669 = vrot.lane.b32.xlu0 %v8061_v6, %s7530_s16  ;;  %v1187_v48 = vpop.xlane.xlu1 %1186  ;;  %v1486_v3 = vpop.permute.xlu0 %1485 }
 0x3f5   : > { %6866 = vrcp.f32 %v1187_v48 }
 0x3f8   : > { %v1376_v1 = vpop.permute.xlu1 %1375 }
 0x3fc   : > { %v1488_v6 = vpop.permute.xlu1 %1487 }
 0x3fd   : > { %v1493_v2 = vsel %vm1119_vm1, %v1488_v6, 0 }
 0x3fe   : > { %v6865_v55 = vpop.eup %6864 }
 0x402   : > { %v6867_v56 = vpop.eup %6866 }
 0x42c   : > { %v1226_v52 = vpop.f32.mrf.mxu0 }
 0x42d   : > { %v1235_v59 = vmul.f32 %v6865_v55, %v1226_v52 }
 0x42e   : > { %v6193_v53 = vpop.f32.mrf.mxu0 }
 0x430   : > { %v1229_v58 = vpop.f32.mrf.mxu0 }
 0x431   : > { %v1236_v61 = vmul.f32 %v6867_v56, %v1229_v58 }
 0x432   : > { %v6194_v63 = vpop.f32.mrf.mxu0 }
 0x433   : > { %v1237_v60 = vpack.c.bf16 %v1236_v61, %v1235_v59 }
 0x435   : > { %6200 = vmatmul.mubr.msk.bf16.vlgmr.msra.gmra.mxu0 %vm1119_vm1, %v1237_v60 }
 0x436   : > { %6210 = vmatpush3.bf16.msra.mxu0 %v1376_v1  ;;  %6211 = vmatprep.mubr.msk.bf16.mxu0 %vm7527_vm0, %v7526_v50 }
 0x437   : > { %6223 = vmatprep.subr.bf16.mxu0 %v7526_v50 }
 0x43d   : > { %6212 = vmatmul.mubr.msk.bf16.vlgmr.msra.gmra.mxu0 %vm1169_vm2, %v1373_v46 }
 0x43e   : > { %6224 = vmatpush3.bf16.xpose.msra.mxu0 %v1493_v2  ;;  %6225 = vmatprep.mubr.msk.bf16.mxu0 %vm7527_vm0, %v7526_v50  ;;  %v1296_v2 = vsub.s32 2, %v8041_v54 }
 0x43f   : > { %6235 = vmatprep.subr.bf16.mxu0 %v7526_v50 }
 0x445   : > { %6226 = vmatmul.mubr.msk.bf16.vlgmr.msra.gmra.mxu0 %vm1119_vm1, %v1486_v3  ;;  %v8199_v3 = vrot.slane %v8046_v57, %v1296_v2 }
 0x446   : > { %6239 = vmatprep.mubr.msk.bf16.mxu0 %vm7527_vm0, %v7526_v50 }
 0x463   : > { %v1369_v7 = vpop.xlane.xlu1 %1368 }
 0x464   : > { %6868 = vrcp.f32 %v1369_v7 }
 0x467   : > { %v1372_v8 = vpop.xlane.xlu0 %1371 }
 0x468   : > { %6870 = vrcp.f32 %v1372_v8 }
 0x46b   : > { %v1670_v63 = vpop.permute.xlu0 %1669 }
 0x46c   : > { %v1675_v1 = vsel %vm1119_vm1, %v1670_v63, 0 }
 0x471   : > { %v6869_v19 = vpop.eup %6868 }
 0x475   : > { %v6871_v21 = vpop.eup %6870 }
 0x4f5   : > { %v1287_v9 = vpop.f32.mrf.mxu0 }
 0x4f6   : > { %v1298_v7 = vadd.f32 %v8199_v3, %v1287_v9 }
 0x4f7   : > { %v6201_v10 = vpop.f32.mrf.mxu0 }
 0x4f9   : > { %v1290_v11 = vpop.f32.mrf.mxu0 }
 0x4fb   : > { %v6202_v12 = vpop.f32.mrf.mxu0 }
 0x4fd   : > { %v1415_v16 = vpop.f32.mrf.mxu0 }
 0x4fe   : > { %v1424_v24 = vmul.f32 %v6869_v19, %v1415_v16  ;;  %v1299_v16 = vadd.f32 %v8199_v3, %v1290_v11 }
 0x4ff   : > { %v6213_v17 = vpop.f32.mrf.mxu0 }
 0x501   : > { %v1418_v23 = vpop.f32.mrf.mxu0 }
 0x502   : > { %v1425_v25 = vmul.f32 %v6871_v21, %v1418_v23  ;;  %v8208_v23 = vld [vmem:[%s7975_s21 + $0x28] sm:$0xff]  }
 0x503   : > { %v6214_v30 = vpop.f32.mrf.mxu0  ;;  %6236 = vmatpush3.bf16.msra.mxu0 %v8208_v23 }
 0x504   : > { %v1426_v31 = vpack.c.bf16 %v1425_v25, %v1424_v24  ;;  %6237 = vmatprep.subr.bf16.mxu0 %v7526_v50  ;;  %v8213_v24 = vld [vmem:[%s7975_s21 + $0x20] sm:$0xff]  }
 0x505   : > { %v1529_v34 = vpop.f32.mrf.mxu0 }
 0x506   : > { %v1536_v36 = vmul.f32 0.17677669, %v1529_v34  ;;  %6220 = vmatmul.mubr.msk.bf16.vlgmr.msra.gmra.mxu1 %vm1119_vm1, %v1426_v31 }
 0x507   : > { %v6227_v37 = vpop.f32.mrf.mxu0  ;;  %6231 = vmatprep.mubr.msk.bf16.mxu1 %vm7527_vm0, %v7526_v50  ;;  %6238 = vmatpush3.bf16.msra.mxu0 %v8213_v24 }
 0x508   : > { %v1538_v38 = vsel %vm1169_vm2, %v1536_v36, -inf  ;;  %6249 = vmatprep.subr.bf16.mxu0 %v7526_v50 }
 0x509   : > { %1539 = vmax.xlane.f32.xlu1 %v1538_v38  ;;  %v1532_v40 = vpop.f32.mrf.mxu0 }
 0x50a   : > { %v1537_v41 = vmul.f32 0.17677669, %v1532_v40 }
 0x50b   : > { %v6228_v42 = vpop.f32.mrf.mxu0 }
 0x50c   : > { %v1541_v44 = vsel %vm1169_vm2, %v1537_v41, -inf }
 0x50d   : > { %1542 = vmax.xlane.f32.xlu1 %v1541_v44 }
 0x51e   : > { %1557 = vrot.lane.b32.xlu1 %v8081_v20, %s7529_s23 }
 0x522   : > { %1667 = vrot.lane.b32.xlu1 %v8076_v18, %s7530_s16 }
 0x592   : > { %v1540_v46 = vpop.xlane.xlu1 %1539 }
 0x593   : > { %v1544_v47 = vsub.f32 %v1536_v36, %v1540_v46 }
 0x595   : > { %v1546_v48 = vmul.f32 1.442695, %v1544_v47 }
 0x596   : > { %v1543_v52 = vpop.xlane.xlu1 %1542 }
 0x597   : > { %6872 = vpow2.f32 %v1546_v48  ;;  %v1545_v53 = vsub.f32 %v1537_v41, %v1543_v52 }
 0x599   : > { %v1548_v55 = vmul.f32 1.442695, %v1545_v53 }
 0x59a   : > { %v1558_v56 = vpop.permute.xlu1 %1557 }
 0x59b   : > { %6874 = vpow2.f32 %v1548_v55  ;;  %6230 = vmatpush3.bf16.msra.mxu1 %v1558_v56 }
 0x59c   : > { %6243 = vmatprep.subr.bf16.mxu1 %v7526_v50 }
 0x59e   : > { %v1668_v6 = vpop.permute.xlu1 %1667 }
 0x5a4   : > { %v6873_v58 = vpop.eup %6872 }
 0x5a5   : > { %v1550_v59 = vsel %vm1169_vm2, %v6873_v58, 0.0 }
 0x5a6   : > { %1551 = vadd.xlane.f32.xlu1 %v1550_v59 }
 0x5a8   : > { %v6875_v61 = vpop.eup %6874 }
 0x5a9   : > { %v1553_v18 = vsel %vm1169_vm2, %v6875_v61, 0.0  ;;  %v1556_v60 = vpack.c.bf16 %v6875_v61, %v6873_v58 }
 0x5aa   : > { %1554 = vadd.xlane.f32.xlu0 %v1553_v18 }
 0x5ab   : > { %6232 = vmatmul.mubr.msk.bf16.vlgmr.msra.gmra.mxu1 %vm1169_vm2, %v1556_v60 }
 0x5ac   : > { %6244 = vmatpush3.bf16.xpose.msra.mxu1 %v1675_v1  ;;  %6245 = vmatprep.mubr.msk.bf16.mxu1 %vm7527_vm0, %v7526_v50 }
 0x5ad   : > { %6255 = vmatprep.subr.bf16.mxu1 %v7526_v50 }
 0x5b3   : > { %6246 = vmatmul.mubr.msk.bf16.vlgmr.msra.gmra.mxu1 %vm1119_vm1, %v1668_v6 }
 0x5b4   : > { %6259 = vmatprep.mubr.msk.bf16.mxu1 %vm7527_vm0, %v7526_v50 }
 0x5c6   : > { %v1476_v8 = vpop.f32.mrf.mxu1 }
 0x5c7   : > { %v8202_v10 = vadd.f32 %v1476_v8, %v1298_v7  ;;  %v1854_v8 = vsel %vm1119_vm1, %v8101_v33, 0 }
 0x5c8   : > { %v6221_v12 = vpop.f32.mrf.mxu1 }
 0x5ca   : > { %v1479_v17 = vpop.f32.mrf.mxu1 }
 0x5cb   : > { %v8205_v19 = vadd.f32 %v1479_v17, %v1299_v16 }
 0x5cc   : > { %v6222_v21 = vpop.f32.mrf.mxu1 }
 0x62f   : > { %v1552_v9 = vpop.xlane.xlu1 %1551 }
 0x630   : > { %6876 = vrcp.f32 %v1552_v9 }
 0x633   : > { %v1555_v25 = vpop.xlane.xlu0 %1554 }
 0x634   : > { %6878 = vrcp.f32 %v1555_v25 }
 0x63d   : > { %v6877_v31 = vpop.eup %6876 }
 0x641   : > { %v6879_v34 = vpop.eup %6878 }
 0x66b   : > { %v1597_v11 = vpop.f32.mrf.mxu1 }
 0x66c   : > { %v1606_v37 = vmul.f32 %v6877_v31, %v1597_v11  ;;  %v8250_v11 = vld [vmem:[%s7975_s21 + $0x38] sm:$0xff]  }
 0x66d   : > { %v6233_v30 = vpop.f32.mrf.mxu1  ;;  %6256 = vmatpush3.bf16.msra.mxu1 %v8250_v11 }
 0x66e   : > { %6257 = vmatprep.subr.bf16.mxu1 %v7526_v50  ;;  %v8255_v30 = vld [vmem:[%s7975_s21 + $0x30] sm:$0xff]  }
 0x66f   : > { %v1600_v36 = vpop.f32.mrf.mxu1 }
 0x670   : > { %v1607_v38 = vmul.f32 %v6879_v34, %v1600_v36 }
 0x671   : > { %v6234_v40 = vpop.f32.mrf.mxu1  ;;  %6258 = vmatpush3.bf16.msra.mxu1 %v8255_v30 }
 0x672   : > { %v1608_v41 = vpack.c.bf16 %v1607_v38, %v1606_v37  ;;  %6269 = vmatprep.subr.bf16.mxu1 %v7526_v50  ;;  %v1068_v38 = vadd.f32 %v8095_v28, %v8069_v13  ;;  %v1072_v40 = vadd.f32 %v8099_v32, %v8069_v13 }
 0x673   : > { %v1711_v42 = vpop.f32.mrf.mxu1 }
 0x674   : > { %v1718_v44 = vmul.f32 0.17677669, %v1711_v42  ;;  %6240 = vmatmul.mubr.msk.bf16.vlgmr.msra.gmra.mxu0 %vm1119_vm1, %v1608_v41 }
 0x675   : > { %v6247_v46 = vpop.f32.mrf.mxu1  ;;  %6251 = vmatprep.mubr.msk.bf16.mxu0 %vm7527_vm0, %v7526_v50 }
 0x676   : > { %v1720_v47 = vsel %vm1169_vm2, %v1718_v44, -inf }
 0x677   : > { %1721 = vmax.xlane.f32.xlu1 %v1720_v47  ;;  %v1714_v48 = vpop.f32.mrf.mxu1 }
 0x678   : > { %v1719_v52 = vmul.f32 0.17677669, %v1714_v48  ;;  %v8263_v48 = vpack.c.bf16 %v1072_v40, %v1068_v38 }
 0x679   : > { %v6248_v53 = vpop.f32.mrf.mxu1 }
 0x67a   : > { %v1723_v55 = vsel %vm1169_vm2, %v1719_v52, -inf }
 0x67b   : > { %1724 = vmax.xlane.f32.xlu0 %v1723_v55 }
 0x688   : > { %1739 = vrot.lane.b32.xlu1 %v8081_v20, %s7530_s16 }
 0x68c   : > { %2017 = vrot.lane.b32.xlu1 %v8101_v33, %s7528_s13 }
 0x700   : > { %v1722_v56 = vpop.xlane.xlu1 %1721 }
 0x701   : > { %v1726_v58 = vsub.f32 %v1718_v44, %v1722_v56 }
 0x703   : > { %v1728_v59 = vmul.f32 1.442695, %v1726_v58 }
 0x704   : > { %v1725_v61 = vpop.xlane.xlu0 %1724  ;;  %v1740_v63 = vpop.permute.xlu1 %1739 }
 0x705   : > { %6880 = vpow2.f32 %v1728_v59  ;;  %v1727_v18 = vsub.f32 %v1719_v52, %v1725_v61  ;;  %6250 = vmatpush3.bf16.msra.mxu0 %v1740_v63 }
 0x706   : > { %6263 = vmatprep.subr.bf16.mxu0 %v7526_v50 }
 0x707   : > { %v1730_v60 = vmul.f32 1.442695, %v1727_v18 }
 0x709   : > { %6882 = vpow2.f32 %v1730_v60 }
 0x712   : > { %v6881_v1 = vpop.eup %6880 }
 0x713   : > { %v1732_v6 = vsel %vm1169_vm2, %v6881_v1, 0.0 }
 0x714   : > { %1733 = vadd.xlane.f32.xlu0 %v1732_v6 }
 0x716   : > { %v6883_v20 = vpop.eup %6882 }
 0x717   : > { %v1735_v2 = vsel %vm1169_vm2, %v6883_v20, 0.0  ;;  %v1738_v7 = vpack.c.bf16 %v6883_v20, %v6881_v1 }
 0x718   : > { %1736 = vadd.xlane.f32.xlu0 %v1735_v2 }
 0x719   : > { %6252 = vmatmul.mubr.msk.bf16.vlgmr.msra.gmra.mxu0 %vm1169_vm2, %v1738_v7 }
 0x71a   : > { %6264 = vmatpush3.bf16.xpose.msra.mxu0 %v1854_v8  ;;  %6265 = vmatprep.mubr.msk.bf16.mxu0 %vm7527_vm0, %v7526_v50  ;;  %v2018_v8 = vpop.permute.xlu1 %2017 }
 0x71b   : > { %6275 = vmatprep.subr.bf16.mxu0 %v7526_v50 }
 0x721   : > { %6266 = vmatmul.mubr.msk.bf16.vlgmr.msra.gmra.mxu0 %vm1119_vm1, %v8071_v15 }
 0x722   : > { %6276 = vmatpush3.bf16.msra.mxu0 %v8142_v27  ;;  %6279 = vmatprep.mubr.msk.bf16.mxu0 %vm7527_vm0, %v7526_v50 }
 0x723   : > { %6277 = vmatprep.subr.bf16.mxu0 %v7526_v50 }
 0x726   : > { %6278 = vmatpush3.bf16.msra.mxu0 %v8147_v29 }
 0x727   : > { %6289 = vmatprep.subr.bf16.mxu0 %v7526_v50 }
 0x734   : > { %v1658_v12 = vpop.f32.mrf.mxu0 }
 0x735   : > { %v8244_v16 = vadd.f32 %v1658_v12, %v8202_v10 }
 0x736   : > { %v6241_v17 = vpop.f32.mrf.mxu0 }
 0x738   : > { %v1661_v21 = vpop.f32.mrf.mxu0 }
 0x739   : > { %v8247_v9 = vadd.f32 %v1661_v21, %v8205_v19  ;;  %v2023_v21 = vsel %vm1119_vm1, %v2018_v8, 0 }
 0x73a   : > { %v6242_v25 = vpop.f32.mrf.mxu0 }
 0x79d   : > { %v1734_v10 = vpop.xlane.xlu0 %1733 }
 0x79e   : > { %6884 = vrcp.f32 %v1734_v10 }
 0x7a1   : > { %v1737_v31 = vpop.xlane.xlu0 %1736 }
 0x7a2   : > { %6886 = vrcp.f32 %v1737_v31 }
 0x7ab   : > { %v6885_v36 = vpop.eup %6884 }
 0x7af   : > { %v6887_v37 = vpop.eup %6886 }
 0x7d9   : > { %v1779_v34 = vpop.f32.mrf.mxu0 }
 0x7da   : > { %v1788_v42 = vmul.f32 %v6885_v36, %v1779_v34 }
 0x7db   : > { %v6253_v19 = vpop.f32.mrf.mxu0 }
 0x7dd   : > { %v1782_v41 = vpop.f32.mrf.mxu0 }
 0x7de   : > { %v1789_v44 = vmul.f32 %v6887_v37, %v1782_v41 }
 0x7df   : > { %v6254_v46 = vpop.f32.mrf.mxu0 }
 0x7e0   : > { %v1790_v47 = vpack.c.bf16 %v1789_v44, %v1788_v42 }
 0x7e1   : > { %v1890_v52 = vpop.f32.mrf.mxu0 }
 0x7e2   : > { %v1897_v53 = vmul.f32 0.17677669, %v1890_v52  ;;  %6260 = vmatmul.mubr.msk.bf16.vlgmr.msra.gmra.mxu1 %vm1119_vm1, %v1790_v47 }
 0x7e3   : > { %6270 = vmatpush3.bf16.msra.mxu1 %v8263_v48  ;;  %v6267_v55 = vpop.f32.mrf.mxu0  ;;  %6271 = vmatprep.mubr.msk.bf16.mxu1 %vm7527_vm0, %v7526_v50 }
 0x7e4   : > { %v1899_v28 = vsel %vm1169_vm2, %v1897_v53, -inf  ;;  %6283 = vmatprep.subr.bf16.mxu1 %v7526_v50 }
 0x7e5   : > { %1900 = vmax.xlane.f32.xlu0 %v1899_v28  ;;  %v1893_v32 = vpop.f32.mrf.mxu0 }
 0x7e6   : > { %v1898_v56 = vmul.f32 0.17677669, %v1893_v32 }
 0x7e7   : > { %v6268_v58 = vpop.f32.mrf.mxu0 }
 0x7e8   : > { %v1902_v59 = vsel %vm1169_vm2, %v1898_v56, -inf }
 0x7e9   : > { %1903 = vmax.xlane.f32.xlu0 %v1902_v59 }
 0x7ff   : > { %2014 = vrot.lane.b32.xlu0 %v8071_v15, %s7528_s13 }
 0x86e   : > { %v1901_v61 = vpop.xlane.xlu0 %1900 }
 0x86f   : > { %v1905_v63 = vsub.f32 %v1897_v53, %v1901_v61 }
 0x871   : > { %v1907_v18 = vmul.f32 1.442695, %v1905_v63 }
 0x872   : > { %v1904_v60 = vpop.xlane.xlu0 %1903 }
 0x873   : > { %6888 = vpow2.f32 %v1907_v18  ;;  %v1906_v1 = vsub.f32 %v1898_v56, %v1904_v60 }
 0x875   : > { %v1909_v6 = vmul.f32 1.442695, %v1906_v1 }
 0x876   : > { %v2015_v25 = vpop.permute.xlu0 %2014 }
 0x877   : > { %6890 = vpow2.f32 %v1909_v6 }
 0x880   : > { %v6889_v20 = vpop.eup %6888 }
 0x881   : > { %v1911_v2 = vsel %vm1169_vm2, %v6889_v20, 0.0 }
 0x882   : > { %1912 = vadd.xlane.f32.xlu1 %v1911_v2 }
 0x884   : > { %v6891_v7 = vpop.eup %6890 }
 0x885   : > { %v1914_v12 = vsel %vm1169_vm2, %v6891_v7, 0.0  ;;  %v1917_v17 = vpack.c.bf16 %v6891_v7, %v6889_v20 }
 0x886   : > { %1915 = vadd.xlane.f32.xlu0 %v1914_v12 }
 0x887   : > { %6272 = vmatmul.mubr.msk.bf16.vlgmr.msra.gmra.mxu1 %vm1169_vm2, %v1917_v17 }
 0x888   : > { %6284 = vmatpush3.bf16.xpose.msra.mxu1 %v2023_v21  ;;  %6285 = vmatprep.mubr.msk.bf16.mxu1 %vm7527_vm0, %v7526_v50 }
 0x889   : > { %6295 = vmatprep.subr.bf16.mxu1 %v7526_v50 }
 0x88f   : > { %6286 = vmatmul.mubr.msk.bf16.vlgmr.msra.gmra.mxu1 %vm1119_vm1, %v2015_v25 }
 0x890   : > { %6296 = vmatpush3.bf16.msra.mxu1 %v8168_v4  ;;  %6299 = vmatprep.mubr.msk.bf16.mxu1 %vm7527_vm0, %v7526_v50 }
 0x891   : > { %6297 = vmatprep.subr.bf16.mxu1 %v7526_v50 }
 0x894   : > { %6298 = vmatpush3.bf16.msra.mxu1 %v8173_v5 }
 0x895   : > { %6309 = vmatprep.subr.bf16.mxu1 %v7526_v50 }
 0x89c   : > { %2188 = vrot.lane.b32.xlu0 %v8101_v33, %s7529_s23 }
 0x8a2   : > { %v1840_v10 = vpop.f32.mrf.mxu1 }
 0x8a3   : > { %v8291_v31 = vadd.f32 %v1840_v10, %v8244_v16 }
 0x8a4   : > { %v6261_v34 = vpop.f32.mrf.mxu1 }
 0x8a6   : > { %v1843_v19 = vpop.f32.mrf.mxu1 }
 0x8a7   : > { %v8294_v36 = vadd.f32 %v1843_v19, %v8247_v9 }
 0x8a8   : > { %v6262_v37 = vpop.f32.mrf.mxu1 }
 0x90b   : > { %v1913_v38 = vpop.xlane.xlu1 %1912 }
 0x90c   : > { %6892 = vrcp.f32 %v1913_v38 }
 0x90f   : > { %v1916_v40 = vpop.xlane.xlu0 %1915 }
 0x910   : > { %6894 = vrcp.f32 %v1916_v40 }
 0x913   : > { %v2189_v21 = vpop.permute.xlu0 %2188 }
 0x914   : > { %v2194_v34 = vsel %vm1119_vm1, %v2189_v21, 0 }
 0x919   : > { %v6893_v44 = vpop.eup %6892 }
 0x91d   : > { %v6895_v46 = vpop.eup %6894 }
 0x947   : > { %v1955_v41 = vpop.f32.mrf.mxu1 }
 0x948   : > { %v1964_v52 = vmul.f32 %v6893_v44, %v1955_v41 }
 0x949   : > { %v6273_v42 = vpop.f32.mrf.mxu1 }
 0x94b   : > { %v1958_v47 = vpop.f32.mrf.mxu1 }
 0x94c   : > { %v1965_v53 = vmul.f32 %v6895_v46, %v1958_v47 }
 0x94d   : > { %v6274_v55 = vpop.f32.mrf.mxu1 }
 0x94e   : > { %v1966_v16 = vpack.c.bf16 %v1965_v53, %v1964_v52 }
 0x94f   : > { %v2059_v28 = vpop.f32.mrf.mxu1 }
 0x950   : > { %v2066_v32 = vmul.f32 0.17677669, %v2059_v28  ;;  %6280 = vmatmul.mubr.msk.bf16.vlgmr.msra.gmra.mxu0 %vm1119_vm1, %v1966_v16 }
 0x951   : > { %v6287_v9 = vpop.f32.mrf.mxu1  ;;  %6291 = vmatprep.mubr.msk.bf16.mxu0 %vm7527_vm0, %v7526_v50 }
 0x952   : > { %v2068_v56 = vsel %vm1169_vm2, %v2066_v32, -inf }
 0x953   : > { %2069 = vmax.xlane.f32.xlu1 %v2068_v56  ;;  %v2062_v58 = vpop.f32.mrf.mxu1 }
 0x954   : > { %v2067_v59 = vmul.f32 0.17677669, %v2062_v58 }
 0x955   : > { %v6288_v61 = vpop.f32.mrf.mxu1 }
 0x956   : > { %v2071_v63 = vsel %vm1169_vm2, %v2067_v59, -inf }
 0x957   : > { %2072 = vmax.xlane.f32.xlu1 %v2071_v63 }
 0x968   : > { %2088 = vrot.lane.b32.xlu1 %v8263_v48, %s7528_s13 }
 0x96c   : > { %2186 = vrot.lane.b32.xlu1 %v8071_v15, %s7529_s23 }
 0x9dc   : > { %v2070_v18 = vpop.xlane.xlu1 %2069 }
 0x9dd   : > { %v2074_v60 = vsub.f32 %v2066_v32, %v2070_v18 }
 0x9df   : > { %v2076_v1 = vmul.f32 1.442695, %v2074_v60 }
 0x9e0   : > { %v2073_v6 = vpop.xlane.xlu1 %2072 }
 0x9e1   : > { %6896 = vpow2.f32 %v2076_v1  ;;  %v2075_v20 = vsub.f32 %v2067_v59, %v2073_v6 }
 0x9e3   : > { %v2078_v2 = vmul.f32 1.442695, %v2075_v20 }
 0x9e4   : > { %v2089_v7 = vpop.permute.xlu1 %2088 }
 0x9e5   : > { %6898 = vpow2.f32 %v2078_v2  ;;  %6290 = vmatpush3.bf16.msra.mxu0 %v2089_v7 }
 0x9e6   : > { %6303 = vmatprep.subr.bf16.mxu0 %v7526_v50 }
 0x9e8   : > { %v2187_v19 = vpop.permute.xlu1 %2186 }
 0x9ee   : > { %v6897_v8 = vpop.eup %6896 }
 0x9ef   : > { %v2080_v12 = vsel %vm1169_vm2, %v6897_v8, 0.0 }
 0x9f0   : > { %2081 = vadd.xlane.f32.xlu1 %v2080_v12 }
 0x9f2   : > { %v6899_v17 = vpop.eup %6898 }
 0x9f3   : > { %v2083_v25 = vsel %vm1169_vm2, %v6899_v17, 0.0  ;;  %v2086_v10 = vpack.c.bf16 %v6899_v17, %v6897_v8 }
 0x9f4   : > { %2084 = vadd.xlane.f32.xlu0 %v2083_v25 }
 0x9f5   : > { %6292 = vmatmul.mubr.msk.bf16.vlgmr.msra.gmra.mxu0 %vm1169_vm2, %v2086_v10 }
 0x9f6   : > { %6304 = vmatpush3.bf16.xpose.msra.mxu0 %v2194_v34  ;;  %6305 = vmatprep.mubr.msk.bf16.mxu0 %vm7527_vm0, %v7526_v50 }
 0x9f7   : > { %6315 = vmatprep.subr.bf16.mxu0 %v7526_v50 }
 0x9fd   : > { %6306 = vmatmul.mubr.msk.bf16.vlgmr.msra.gmra.mxu0 %vm1119_vm1, %v2187_v19 }
 0x9fe   : > { %6316 = vmatpush3.bf16.msra.mxu0 %v8208_v23  ;;  %6319 = vmatprep.mubr.msk.bf16.mxu0 %vm7527_vm0, %v7526_v50 }
 0x9ff   : > { %6317 = vmatprep.subr.bf16.mxu0 %v7526_v50 }
 0xa02   : > { %6318 = vmatpush3.bf16.msra.mxu0 %v8213_v24 }
 0xa03   : > { %6329 = vmatprep.subr.bf16.mxu0 %v7526_v50 }
 0xa10   : > { %v8320_v37 = vpop.f32.mrf.mxu0 }
 0xa12   : > { %v6281_v38 = vpop.f32.mrf.mxu0 }
 0xa14   : > { %v8322_v40 = vpop.f32.mrf.mxu0 }
 0xa16   : > { %v6282_v41 = vpop.f32.mrf.mxu0 }
 0xa17   : > { %v2011_v41 = vadd.f32 %v8320_v37, %v8199_v3 }
 0xa79   : > { %v2082_v42 = vpop.xlane.xlu1 %2081 }
 0xa7a   : > { %6900 = vrcp.f32 %v2082_v42 }
 0xa7d   : > { %v2085_v44 = vpop.xlane.xlu0 %2084 }
 0xa7e   : > { %6902 = vrcp.f32 %v2085_v44 }
 0xa87   : > { %v6901_v52 = vpop.eup %6900 }
 0xa8b   : > { %v6903_v53 = vpop.eup %6902 }
 0xab5   : > { %v2128_v46 = vpop.f32.mrf.mxu0 }
 0xab6   : > { %v2137_v16 = vmul.f32 %v6901_v52, %v2128_v46 }
 0xab7   : > { %v6293_v47 = vpop.f32.mrf.mxu0 }
 0xab8   : > { %v2012_v47 = vadd.f32 %v8322_v40, %v8199_v3 }
 0xab9   : > { %v2131_v55 = vpop.f32.mrf.mxu0 }
 0xaba   : > { %v2138_v28 = vmul.f32 %v6903_v53, %v2131_v55 }
 0xabb   : > { %v6294_v32 = vpop.f32.mrf.mxu0 }
 0xabc   : > { %v2139_v9 = vpack.c.bf16 %v2138_v28, %v2137_v16 }
 0xabd   : > { %v2230_v56 = vpop.f32.mrf.mxu0 }
 0xabe   : > { %v2237_v58 = vmul.f32 0.17677669, %v2230_v56  ;;  %6300 = vmatmul.mubr.msk.bf16.vlgmr.msra.gmra.mxu1 %vm1119_vm1, %v2139_v9 }
 0xabf   : > { %v6307_v59 = vpop.f32.mrf.mxu0  ;;  %6311 = vmatprep.mubr.msk.bf16.mxu1 %vm7527_vm0, %v7526_v50 }
 0xac0   : > { %v2239_v61 = vsel %vm1169_vm2, %v2237_v58, -inf }
 0xac1   : > { %2240 = vmax.xlane.f32.xlu1 %v2239_v61  ;;  %v2233_v63 = vpop.f32.mrf.mxu0 }
 0xac2   : > { %v2238_v18 = vmul.f32 0.17677669, %v2233_v63 }
 0xac3   : > { %v6308_v60 = vpop.f32.mrf.mxu0 }
 0xac4   : > { %v2242_v1 = vsel %vm1169_vm2, %v2238_v18, -inf }
 0xac5   : > { %2243 = vmax.xlane.f32.xlu0 %v2242_v1 }
 0xad2   : > { %2258 = vrot.lane.b32.xlu1 %v8263_v48, %s7529_s23 }
 0xad6   : > { %2356 = vrot.lane.b32.xlu1 %v8071_v15, %s7530_s16 }
 0xadb   : > { %2358 = vrot.lane.b32.xlu0 %v8101_v33, %s7530_s16 }
 0xb4a   : > { %v2241_v6 = vpop.xlane.xlu1 %2240 }
 0xb4b   : > { %v2245_v20 = vsub.f32 %v2237_v58, %v2241_v6 }
 0xb4d   : > { %v2247_v2 = vmul.f32 1.442695, %v2245_v20 }
 0xb4e   : > { %v2259_v7 = vpop.permute.xlu1 %2258  ;;  %v2244_v8 = vpop.xlane.xlu0 %2243 }
 0xb4f   : > { %6904 = vpow2.f32 %v2247_v2  ;;  %v2246_v12 = vsub.f32 %v2238_v18, %v2244_v8  ;;  %6310 = vmatpush3.bf16.msra.mxu1 %v2259_v7 }
 0xb50   : > { %6323 = vmatprep.subr.bf16.mxu1 %v7526_v50 }
 0xb51   : > { %v2249_v17 = vmul.f32 1.442695, %v2246_v12  ;;  %v879_v12 = vadd.f32 %v8089_v22, %v8055_v62 }
 0xb52   : > { %v2359_v10 = vpop.permute.xlu0 %2358  ;;  %v2357_v38 = vpop.permute.xlu1 %2356 }
 0xb53   : > { %6906 = vpow2.f32 %v2249_v17  ;;  %v2364_v19 = vsel %vm1119_vm1, %v2359_v10, 0  ;;  %v882_v17 = vadd.f32 %v8122_v51, %v8055_v62 }
 0xb5c   : > { %v6905_v21 = vpop.eup %6904 }
 0xb5d   : > { %v2251_v25 = vsel %vm1169_vm2, %v6905_v21, 0.0 }
 0xb5e   : > { %2252 = vadd.xlane.f32.xlu1 %v2251_v25 }
 0xb60   : > { %v6907_v15 = vpop.eup %6906 }
 0xb61   : > { %v2254_v33 = vsel %vm1169_vm2, %v6907_v15, 0.0  ;;  %v2257_v34 = vpack.c.bf16 %v6907_v15, %v6905_v21  ;;  %v8369_v21 = vpack.c.bf16 %v882_v17, %v879_v12 }
 0xb62   : > { %2255 = vadd.xlane.f32.xlu0 %v2254_v33 }
 0xb63   : > { %6312 = vmatmul.mubr.msk.bf16.vlgmr.msra.gmra.mxu1 %vm1169_vm2, %v2257_v34 }
 0xb64   : > { %6324 = vmatpush3.bf16.xpose.msra.mxu1 %v2364_v19  ;;  %6325 = vmatprep.mubr.msk.bf16.mxu1 %vm7527_vm0, %v7526_v50 }
 0xb65   : > { %6335 = vmatprep.subr.bf16.mxu1 %v7526_v50 }
 0xb6b   : > { %6326 = vmatmul.mubr.msk.bf16.vlgmr.msra.gmra.mxu1 %vm1119_vm1, %v2357_v38 }
 0xb6c   : > { %6336 = vmatpush3.bf16.msra.mxu1 %v8250_v11  ;;  %6339 = vmatprep.mubr.msk.bf16.mxu1 %vm7527_vm0, %v7526_v50 }
 0xb6d   : > { %6337 = vmatprep.subr.bf16.mxu1 %v7526_v50 }
 0xb70   : > { %6338 = vmatpush3.bf16.msra.mxu1 %v8255_v30 }
 0xb71   : > { %6349 = vmatprep.subr.bf16.mxu1 %v7526_v50 }
 0xb7e   : > { %v2177_v42 = vpop.f32.mrf.mxu1 }
 0xb7f   : > { %v8352_v44 = vadd.f32 %v2177_v42, %v2011_v41  ;;  %v2531_v42 = vsel %vm1119_vm1, %v8107_v39, 0 }
 0xb80   : > { %v6301_v46 = vpop.f32.mrf.mxu1 }
 0xb82   : > { %v2180_v52 = vpop.f32.mrf.mxu1 }
 0xb83   : > { %v8356_v53 = vadd.f32 %v2180_v52, %v2012_v47 }
 0xb84   : > { %v6302_v55 = vpop.f32.mrf.mxu1 }
 0xbe7   : > { %v2253_v16 = vpop.xlane.xlu1 %2252 }
 0xbe8   : > { %6908 = vrcp.f32 %v2253_v16 }
 0xbeb   : > { %v2256_v28 = vpop.xlane.xlu0 %2255 }
 0xbec   : > { %6910 = vrcp.f32 %v2256_v28 }
 0xbf5   : > { %v6909_v56 = vpop.eup %6908 }
 0xbf9   : > { %v6911_v58 = vpop.eup %6910 }
 0xc23   : > { %v2298_v32 = vpop.f32.mrf.mxu1 }
 0xc24   : > { %v2307_v59 = vmul.f32 %v6909_v56, %v2298_v32 }
 0xc25   : > { %v6313_v9 = vpop.f32.mrf.mxu1 }
 0xc27   : > { %v2301_v37 = vpop.f32.mrf.mxu1 }
 0xc28   : > { %v2308_v61 = vmul.f32 %v6911_v58, %v2301_v37  ;;  %v1078_v37 = vadd.f32 %v8103_v35, %v8069_v13 }
 0xc29   : > { %v6314_v63 = vpop.f32.mrf.mxu1 }
 0xc2a   : > { %v2309_v18 = vpack.c.bf16 %v2308_v61, %v2307_v59 }
 0xc2b   : > { %v2400_v60 = vpop.f32.mrf.mxu1 }
 0xc2c   : > { %v2407_v1 = vmul.f32 0.17677669, %v2400_v60  ;;  %6320 = vmatmul.mubr.msk.bf16.vlgmr.msra.gmra.mxu0 %vm1119_vm1, %v2309_v18 }
 0xc2d   : > { %v6327_v40 = vpop.f32.mrf.mxu1  ;;  %6331 = vmatprep.mubr.msk.bf16.mxu0 %vm7527_vm0, %v7526_v50 }
 0xc2e   : > { %v2409_v6 = vsel %vm1169_vm2, %v2407_v1, -inf }
 0xc2f   : > { %2410 = vmax.xlane.f32.xlu0 %v2409_v6  ;;  %v2403_v20 = vpop.f32.mrf.mxu1 }
 0xc30   : > { %v2408_v2 = vmul.f32 0.17677669, %v2403_v20 }
 0xc31   : > { %v6328_v7 = vpop.f32.mrf.mxu1 }
 0xc32   : > { %v2412_v8 = vsel %vm1169_vm2, %v2408_v2, -inf }
 0xc33   : > { %2413 = vmax.xlane.f32.xlu1 %v2412_v8 }
 0xc45   : > { %2428 = vrot.lane.b32.xlu0 %v8263_v48, %s7530_s16 }
 0xc49   : > { %2691 = vrot.lane.b32.xlu0 %v8369_v21, %s7528_s13 }
 0xcb8   : > { %v2411_v25 = vpop.xlane.xlu0 %2410 }
 0xcb9   : > { %v2415_v15 = vsub.f32 %v2407_v1, %v2411_v25 }
 0xcbb   : > { %v2417_v10 = vmul.f32 1.442695, %v2415_v15 }
 0xcbc   : > { %v2414_v33 = vpop.xlane.xlu1 %2413  ;;  %v2429_v34 = vpop.permute.xlu0 %2428 }
 0xcbd   : > { %6912 = vpow2.f32 %v2417_v10  ;;  %v2416_v19 = vsub.f32 %v2408_v2, %v2414_v33  ;;  %6330 = vmatpush3.bf16.msra.mxu0 %v2429_v34 }
 0xcbe   : > { %6343 = vmatprep.subr.bf16.mxu0 %v7526_v50 }
 0xcbf   : > { %v2419_v22 = vmul.f32 1.442695, %v2416_v19 }
 0xcc1   : > { %6914 = vpow2.f32 %v2419_v22 }
 0xcca   : > { %v6913_v62 = vpop.eup %6912 }
 0xccb   : > { %v2421_v51 = vsel %vm1169_vm2, %v6913_v62, 0.0 }
 0xccc   : > { %2422 = vadd.xlane.f32.xlu1 %v2421_v51 }
 0xcce   : > { %v6915_v48 = vpop.eup %6914 }
 0xccf   : > { %v2424_v38 = vsel %vm1169_vm2, %v6915_v48, 0.0  ;;  %v2427_v41 = vpack.c.bf16 %v6915_v48, %v6913_v62 }
 0xcd0   : > { %2425 = vadd.xlane.f32.xlu1 %v2424_v38  ;;  %v2692_v38 = vpop.permute.xlu0 %2691 }
 0xcd1   : > { %6332 = vmatmul.mubr.msk.bf16.vlgmr.msra.gmra.mxu0 %vm1169_vm2, %v2427_v41 }
 0xcd2   : > { %6344 = vmatpush3.bf16.xpose.msra.mxu0 %v2531_v42  ;;  %6345 = vmatprep.mubr.msk.bf16.mxu0 %vm7527_vm0, %v7526_v50 }
 0xcd3   : > { %6355 = vmatprep.subr.bf16.mxu0 %v7526_v50 }
 0xcd9   : > { %6346 = vmatmul.mubr.msk.bf16.vlgmr.msra.gmra.mxu0 %vm1119_vm1, %v8369_v21 }
 0xcda   : > { %6356 = vmatpush3.bf16.msra.mxu0 %v8142_v27  ;;  %6359 = vmatprep.mubr.msk.bf16.mxu0 %vm7527_vm0, %v7526_v50 }
 0xcdb   : > { %6357 = vmatprep.subr.bf16.mxu0 %v7526_v50 }
 0xcde   : > { %6358 = vmatpush3.bf16.msra.mxu0 %v8147_v29 }
 0xcdf   : > { %6369 = vmatprep.subr.bf16.mxu0 %v7526_v50 }
 0xcec   : > { %v2347_v46 = vpop.f32.mrf.mxu0 }
 0xced   : > { %v8391_v47 = vadd.f32 %v2347_v46, %v8352_v44  ;;  %v1082_v44 = vadd.f32 %v8114_v43, %v8069_v13 }
 0xcee   : > { %v6321_v52 = vpop.f32.mrf.mxu0 }
 0xcef   : > { %v8400_v60 = vpack.c.bf16 %v1082_v44, %v1078_v37 }
 0xcf0   : > { %v2350_v55 = vpop.f32.mrf.mxu0 }
 0xcf1   : > { %v8394_v16 = vadd.f32 %v2350_v55, %v8356_v53 }
 0xcf2   : > { %v6322_v28 = vpop.f32.mrf.mxu0 }
 0xd55   : > { %v2423_v27 = vpop.xlane.xlu1 %2422 }
 0xd56   : > { %6916 = vrcp.f32 %v2423_v27 }
 0xd59   : > { %v2426_v32 = vpop.xlane.xlu1 %2425 }
 0xd5a   : > { %6918 = vrcp.f32 %v2426_v32 }
 0xd63   : > { %v6917_v58 = vpop.eup %6916 }
 0xd67   : > { %v6919_v29 = vpop.eup %6918 }
 0xd91   : > { %v2468_v9 = vpop.f32.mrf.mxu0 }
 0xd92   : > { %v2477_v61 = vmul.f32 %v6917_v58, %v2468_v9 }
 0xd93   : > { %v6333_v56 = vpop.f32.mrf.mxu0 }
 0xd95   : > { %v2471_v59 = vpop.f32.mrf.mxu0 }
 0xd96   : > { %v2478_v63 = vmul.f32 %v6919_v29, %v2471_v59 }
 0xd97   : > { %v6334_v53 = vpop.f32.mrf.mxu0 }
 0xd98   : > { %v2479_v18 = vpack.c.bf16 %v2478_v63, %v2477_v61 }
 0xd99   : > { %v2567_v1 = vpop.f32.mrf.mxu0 }
 0xd9a   : > { %v2574_v40 = vmul.f32 0.17677669, %v2567_v1  ;;  %6340 = vmatmul.mubr.msk.bf16.vlgmr.msra.gmra.mxu1 %vm1119_vm1, %v2479_v18 }
 0xd9b   : > { %6350 = vmatpush3.bf16.msra.mxu1 %v8400_v60  ;;  %v6347_v6 = vpop.f32.mrf.mxu0  ;;  %6351 = vmatprep.mubr.msk.bf16.mxu1 %vm7527_vm0, %v7526_v50 }
 0xd9c   : > { %v2576_v35 = vsel %vm1169_vm2, %v2574_v40, -inf  ;;  %6363 = vmatprep.subr.bf16.mxu1 %v7526_v50 }
 0xd9d   : > { %2577 = vmax.xlane.f32.xlu1 %v2576_v35  ;;  %v2570_v43 = vpop.f32.mrf.mxu0 }
 0xd9e   : > { %v2575_v20 = vmul.f32 0.17677669, %v2570_v43 }
 0xd9f   : > { %v6348_v2 = vpop.f32.mrf.mxu0 }
 0xda0   : > { %v2579_v7 = vsel %vm1169_vm2, %v2575_v20, -inf }
 0xda1   : > { %2580 = vmax.xlane.f32.xlu1 %v2579_v7 }
 0xdb2   : > { %2694 = vrot.lane.b32.xlu1 %v8107_v39, %s7528_s13 }
 0xe26   : > { %v2578_v8 = vpop.xlane.xlu1 %2577 }
 0xe27   : > { %v2582_v12 = vsub.f32 %v2574_v40, %v2578_v8 }
 0xe29   : > { %v2584_v17 = vmul.f32 1.442695, %v2582_v12 }
 0xe2a   : > { %v2581_v25 = vpop.xlane.xlu1 %2580 }
 0xe2b   : > { %6920 = vpow2.f32 %v2584_v17  ;;  %v2583_v15 = vsub.f32 %v2575_v20, %v2581_v25 }
 0xe2d   : > { %v2586_v10 = vmul.f32 1.442695, %v2583_v15 }
 0xe2e   : > { %v2695_v22 = vpop.permute.xlu1 %2694 }
 0xe2f   : > { %6922 = vpow2.f32 %v2586_v10  ;;  %v2700_v48 = vsel %vm1119_vm1, %v2695_v22, 0 }
 0xe38   : > { %v6921_v33 = vpop.eup %6920 }
 0xe39   : > { %v2588_v34 = vsel %vm1169_vm2, %v6921_v33, 0.0 }
 0xe3a   : > { %2589 = vadd.xlane.f32.xlu0 %v2588_v34 }
 0xe3c   : > { %v6923_v19 = vpop.eup %6922 }
 0xe3d   : > { %v2591_v62 = vsel %vm1169_vm2, %v6923_v19, 0.0  ;;  %v2594_v51 = vpack.c.bf16 %v6923_v19, %v6921_v33 }
 0xe3e   : > { %2592 = vadd.xlane.f32.xlu1 %v2591_v62 }
 0xe3f   : > { %6352 = vmatmul.mubr.msk.bf16.vlgmr.msra.gmra.mxu1 %vm1169_vm2, %v2594_v51 }
 0xe40   : > { %6364 = vmatpush3.bf16.xpose.msra.mxu1 %v2700_v48  ;;  %6365 = vmatprep.mubr.msk.bf16.mxu1 %vm7527_vm0, %v7526_v50 }
 0xe41   : > { %6375 = vmatprep.subr.bf16.mxu1 %v7526_v50 }
 0xe47   : > { %6366 = vmatmul.mubr.msk.bf16.vlgmr.msra.gmra.mxu1 %vm1119_vm1, %v2692_v38 }
 0xe48   : > { %6376 = vmatpush3.bf16.msra.mxu1 %v8168_v4  ;;  %6379 = vmatprep.mubr.msk.bf16.mxu1 %vm7527_vm0, %v7526_v50 }
 0xe49   : > { %6377 = vmatprep.subr.bf16.mxu1 %v7526_v50 }
 0xe4c   : > { %6378 = vmatpush3.bf16.msra.mxu1 %v8173_v5 }
 0xe4d   : > { %6389 = vmatprep.subr.bf16.mxu1 %v7526_v50 }
 0xe4f   : > { %2865 = vrot.lane.b32.xlu1 %v8107_v39, %s7529_s23 }
 0xe5a   : > { %v2517_v41 = vpop.f32.mrf.mxu1 }
 0xe5b   : > { %v8428_v42 = vadd.f32 %v2517_v41, %v8391_v47 }
 0xe5c   : > { %v6341_v46 = vpop.f32.mrf.mxu1 }
 0xe5e   : > { %v2520_v52 = vpop.f32.mrf.mxu1 }
 0xe5f   : > { %v8431_v4 = vadd.f32 %v2520_v52, %v8394_v16 }
 0xe60   : > { %v6342_v55 = vpop.f32.mrf.mxu1 }
 0xec3   : > { %v2590_v28 = vpop.xlane.xlu0 %2589 }
 0xec4   : > { %6924 = vrcp.f32 %v2590_v28 }
 0xec7   : > { %v2593_v27 = vpop.xlane.xlu1 %2592 }
 0xec8   : > { %6926 = vrcp.f32 %v2593_v27 }
 0xecb   : > { %v2866_v15 = vpop.permute.xlu1 %2865 }
 0xecc   : > { %v2871_v34 = vsel %vm1119_vm1, %v2866_v15, 0 }
 0xed1   : > { %v6925_v9 = vpop.eup %6924 }
 0xed5   : > { %v6927_v56 = vpop.eup %6926 }
 0xeff   : > { %v2632_v5 = vpop.f32.mrf.mxu1 }
 0xf00   : > { %v2641_v29 = vmul.f32 %v6925_v9, %v2632_v5 }
 0xf01   : > { %v6353_v32 = vpop.f32.mrf.mxu1 }
 0xf03   : > { %v2635_v58 = vpop.f32.mrf.mxu1 }
 0xf04   : > { %v2642_v37 = vmul.f32 %v6927_v56, %v2635_v58 }
 0xf05   : > { %v6354_v44 = vpop.f32.mrf.mxu1 }
 0xf06   : > { %v2643_v47 = vpack.c.bf16 %v2642_v37, %v2641_v29 }
 0xf07   : > { %v2736_v59 = vpop.f32.mrf.mxu1 }
 0xf08   : > { %v2743_v61 = vmul.f32 0.17677669, %v2736_v59  ;;  %6360 = vmatmul.mubr.msk.bf16.vlgmr.msra.gmra.mxu0 %vm1119_vm1, %v2643_v47 }
 0xf09   : > { %v6367_v16 = vpop.f32.mrf.mxu1  ;;  %6371 = vmatprep.mubr.msk.bf16.mxu0 %vm7527_vm0, %v7526_v50 }
 0xf0a   : > { %v2745_v63 = vsel %vm1169_vm2, %v2743_v61, -inf }
 0xf0b   : > { %2746 = vmax.xlane.f32.xlu0 %v2745_v63  ;;  %v2739_v53 = vpop.f32.mrf.mxu1 }
 0xf0c   : > { %v2744_v18 = vmul.f32 0.17677669, %v2739_v53 }
 0xf0d   : > { %v6368_v1 = vpop.f32.mrf.mxu1 }
 0xf0e   : > { %v2748_v40 = vsel %vm1169_vm2, %v2744_v18, -inf }
 0xf0f   : > { %2749 = vmax.xlane.f32.xlu0 %v2748_v40 }
 0xf25   : > { %2765 = vrot.lane.b32.xlu0 %v8400_v60, %s7528_s13 }
 0xf29   : > { %2863 = vrot.lane.b32.xlu0 %v8369_v21, %s7529_s23 }
 0xf94   : > { %v2747_v6 = vpop.xlane.xlu0 %2746 }
 0xf95   : > { %v2751_v35 = vsub.f32 %v2743_v61, %v2747_v6 }
 0xf97   : > { %v2753_v43 = vmul.f32 1.442695, %v2751_v35 }
 0xf98   : > { %v2750_v20 = vpop.xlane.xlu0 %2749 }
 0xf99   : > { %6928 = vpow2.f32 %v2753_v43  ;;  %v2752_v2 = vsub.f32 %v2744_v18, %v2750_v20 }
 0xf9b   : > { %v2755_v7 = vmul.f32 1.442695, %v2752_v2 }
 0xf9c   : > { %v2766_v8 = vpop.permute.xlu0 %2765 }
 0xf9d   : > { %6930 = vpow2.f32 %v2755_v7  ;;  %6370 = vmatpush3.bf16.msra.mxu0 %v2766_v8 }
 0xf9e   : > { %6383 = vmatprep.subr.bf16.mxu0 %v7526_v50 }
 0xfa0   : > { %v2864_v19 = vpop.permute.xlu0 %2863 }
 0xfa6   : > { %v6929_v12 = vpop.eup %6928 }
 0xfa7   : > { %v2757_v17 = vsel %vm1169_vm2, %v6929_v12, 0.0 }
 0xfa8   : > { %2758 = vadd.xlane.f32.xlu1 %v2757_v17 }
 0xfaa   : > { %v6931_v25 = vpop.eup %6930 }
 0xfab   : > { %v2760_v10 = vsel %vm1169_vm2, %v6931_v25, 0.0  ;;  %v2763_v33 = vpack.c.bf16 %v6931_v25, %v6929_v12 }
 0xfac   : > { %2761 = vadd.xlane.f32.xlu0 %v2760_v10 }
 0xfad   : > { %6372 = vmatmul.mubr.msk.bf16.vlgmr.msra.gmra.mxu0 %vm1169_vm2, %v2763_v33 }
 0xfae   : > { %6384 = vmatpush3.bf16.xpose.msra.mxu0 %v2871_v34  ;;  %6385 = vmatprep.mubr.msk.bf16.mxu0 %vm7527_vm0, %v7526_v50 }
 0xfaf   : > { %6395 = vmatprep.subr.bf16.mxu0 %v7526_v50 }
 0xfb5   : > { %6386 = vmatmul.mubr.msk.bf16.vlgmr.msra.gmra.mxu0 %vm1119_vm1, %v2864_v19 }
 0xfb6   : > { %6396 = vmatpush3.bf16.msra.mxu0 %v8208_v23  ;;  %6399 = vmatprep.mubr.msk.bf16.mxu0 %vm7527_vm0, %v7526_v50 }
 0xfb7   : > { %6397 = vmatprep.subr.bf16.mxu0 %v7526_v50 }
 0xfba   : > { %6398 = vmatpush3.bf16.msra.mxu0 %v8213_v24 }
 0xfbb   : > { %6409 = vmatprep.subr.bf16.mxu0 %v7526_v50 }
 0xfc8   : > { %v8457_v22 = vpop.f32.mrf.mxu0 }
 0xfc9   : > { %v2688_v8 = vadd.f32 %v8457_v22, %v8199_v3 }
 0xfca   : > { %v6361_v62 = vpop.f32.mrf.mxu0 }
 0xfcc   : > { %v8459_v51 = vpop.f32.mrf.mxu0 }
 0xfcd   : > { %v2689_v25 = vadd.f32 %v8459_v51, %v8199_v3 }
 0xfce   : > { %v6362_v48 = vpop.f32.mrf.mxu0 }
0x1031   : > { %v2759_v38 = vpop.xlane.xlu1 %2758 }
0x1032   : > { %6932 = vrcp.f32 %v2759_v38 }
0x1035   : > { %v2762_v41 = vpop.xlane.xlu0 %2761 }
0x1036   : > { %6934 = vrcp.f32 %v2762_v41 }
0x103f   : > { %v6933_v52 = vpop.eup %6932 }
0x1043   : > { %v6935_v55 = vpop.eup %6934 }
0x106d   : > { %v2805_v23 = vpop.f32.mrf.mxu0 }
0x106e   : > { %v2814_v27 = vmul.f32 %v6933_v52, %v2805_v23 }
0x106f   : > { %v6373_v46 = vpop.f32.mrf.mxu0 }
0x1071   : > { %v2808_v28 = vpop.f32.mrf.mxu0 }
0x1072   : > { %v2815_v5 = vmul.f32 %v6935_v55, %v2808_v28 }
0x1073   : > { %v6374_v24 = vpop.f32.mrf.mxu0 }
0x1074   : > { %v2816_v32 = vpack.c.bf16 %v2815_v5, %v2814_v27 }
0x1075   : > { %v2907_v9 = vpop.f32.mrf.mxu0 }
0x1076   : > { %v2914_v56 = vmul.f32 0.17677669, %v2907_v9  ;;  %6380 = vmatmul.mubr.msk.bf16.vlgmr.msra.gmra.mxu1 %vm1119_vm1, %v2816_v32 }
0x1077   : > { %v6387_v58 = vpop.f32.mrf.mxu0  ;;  %6391 = vmatprep.mubr.msk.bf16.mxu1 %vm7527_vm0, %v7526_v50 }
0x1078   : > { %v2916_v29 = vsel %vm1169_vm2, %v2914_v56, -inf }
0x1079   : > { %2917 = vmax.xlane.f32.xlu0 %v2916_v29  ;;  %v2910_v37 = vpop.f32.mrf.mxu0 }
0x107a   : > { %v2915_v44 = vmul.f32 0.17677669, %v2910_v37 }
0x107b   : > { %v6388_v47 = vpop.f32.mrf.mxu0 }
0x107c   : > { %v2919_v59 = vsel %vm1169_vm2, %v2915_v44, -inf }
0x107d   : > { %2920 = vmax.xlane.f32.xlu1 %v2919_v59 }
0x108e   : > { %3035 = vrot.lane.b32.xlu1 %v8107_v39, %s7530_s16 }
0x108f   : > { %2935 = vrot.lane.b32.xlu0 %v8400_v60, %s7529_s23 }
0x1092   : > { %3033 = vrot.lane.b32.xlu1 %v8369_v21, %s7530_s16 }
0x1102   : > { %v2918_v61 = vpop.xlane.xlu0 %2917 }
0x1103   : > { %v2922_v16 = vsub.f32 %v2914_v56, %v2918_v61 }
0x1105   : > { %v2924_v63 = vmul.f32 1.442695, %v2922_v16 }
0x1106   : > { %v2936_v53 = vpop.permute.xlu0 %2935  ;;  %v2921_v18 = vpop.xlane.xlu1 %2920 }
0x1107   : > { %6936 = vpow2.f32 %v2924_v63  ;;  %v2923_v1 = vsub.f32 %v2915_v44, %v2921_v18  ;;  %6390 = vmatpush3.bf16.msra.mxu1 %v2936_v53  ;;  %v3208_v18 = vsel %vm1119_vm1, %v8120_v49, 0 }
0x1108   : > { %6403 = vmatprep.subr.bf16.mxu1 %v7526_v50 }
0x1109   : > { %v2926_v40 = vmul.f32 1.442695, %v2923_v1  ;;  %v7016_v1 = vld [vmem:[%s7975_s21 + $0x8] sm:$0xff]  }
0x110a   : > { %v3036_v43 = vpop.permute.xlu1 %3035 }
0x110b   : > { %6938 = vpow2.f32 %v2926_v40  ;;  %v3041_v2 = vsel %vm1119_vm1, %v3036_v43, 0  ;;  %v7017_v40 = vld [vmem:[%s7975_s21] sm:$0xff]  }
0x110e   : > { %v3034_v7 = vpop.permute.xlu1 %3033 }
0x1114   : > { %v6937_v6 = vpop.eup %6936 }
0x1115   : > { %v2928_v39 = vsel %vm1169_vm2, %v6937_v6, 0.0 }
0x1116   : > { %2929 = vadd.xlane.f32.xlu0 %v2928_v39 }
0x1118   : > { %v6939_v35 = vpop.eup %6938 }
0x1119   : > { %v2931_v21 = vsel %vm1169_vm2, %v6939_v35, 0.0  ;;  %v2934_v20 = vpack.c.bf16 %v6939_v35, %v6937_v6 }
0x111a   : > { %2932 = vadd.xlane.f32.xlu1 %v2931_v21 }
0x111b   : > { %6392 = vmatmul.mubr.msk.bf16.vlgmr.msra.gmra.mxu1 %vm1169_vm2, %v2934_v20 }
0x111c   : > { %6404 = vmatpush3.bf16.xpose.msra.mxu1 %v3041_v2  ;;  %6405 = vmatprep.mubr.msk.bf16.mxu1 %vm7527_vm0, %v7526_v50 }
0x111d   : > { %6415 = vmatprep.subr.bf16.mxu1 %v7526_v50 }
0x1123   : > { %6406 = vmatmul.mubr.msk.bf16.vlgmr.msra.gmra.mxu1 %vm1119_vm1, %v3034_v7 }
0x1124   : > { %6416 = vmatpush3.bf16.msra.mxu1 %v8250_v11  ;;  %6419 = vmatprep.mubr.msk.bf16.mxu1 %vm7527_vm0, %v7526_v50 }
0x1125   : > { %6417 = vmatprep.subr.bf16.mxu1 %v7526_v50 }
0x1128   : > { %6418 = vmatpush3.bf16.msra.mxu1 %v8255_v30 }
0x1129   : > { %6429 = vmatprep.subr.bf16.mxu1 %v7526_v50 }
0x112b   : > { %3105 = vrot.lane.b32.xlu1 %v8400_v60, %s7530_s16 }
0x112f   : > { %3371 = vrot.lane.b32.xlu1 %v8120_v49, %s7528_s13 }
0x1136   : > { %v2854_v12 = vpop.f32.mrf.mxu1 }
0x1137   : > { %v8493_v11 = vadd.f32 %v2854_v12, %v2688_v8 }
0x1138   : > { %v6381_v17 = vpop.f32.mrf.mxu1 }
0x113a   : > { %v2857_v15 = vpop.f32.mrf.mxu1 }
0x113b   : > { %v2862_v30 = vadd.f32 %v2857_v15, %v2689_v25  ;;  %v1088_v15 = vadd.f32 %v8116_v45, %v8069_v13 }
0x113c   : > { %v6382_v10 = vpop.f32.mrf.mxu1 }
0x119f   : > { %v2930_v33 = vpop.xlane.xlu0 %2929 }
0x11a0   : > { %6940 = vrcp.f32 %v2930_v33 }
0x11a3   : > { %v2933_v34 = vpop.xlane.xlu1 %2932 }
0x11a4   : > { %6942 = vrcp.f32 %v2933_v34 }
0x11a7   : > { %v3106_v55 = vpop.permute.xlu1 %3105 }
0x11ad   : > { %v6941_v62 = vpop.eup %6940 }
0x11b1   : > { %v6943_v48 = vpop.eup %6942 }
0x11db   : > { %v2975_v60 = vpop.f32.mrf.mxu1 }
0x11dc   : > { %v2984_v22 = vmul.f32 %v6941_v62, %v2975_v60 }
0x11dd   : > { %v6393_v19 = vpop.f32.mrf.mxu1 }
0x11df   : > { %v2978_v38 = vpop.f32.mrf.mxu1 }
0x11e0   : > { %v2985_v41 = vmul.f32 %v6943_v48, %v2978_v38 }
0x11e1   : > { %v6394_v23 = vpop.f32.mrf.mxu1 }
0x11e2   : > { %v2986_v46 = vpack.c.bf16 %v2985_v41, %v2984_v22 }
0x11e3   : > { %v3077_v52 = vpop.f32.mrf.mxu1 }
0x11e4   : > { %v3084_v28 = vmul.f32 0.17677669, %v3077_v52  ;;  %6400 = vmatmul.mubr.msk.bf16.vlgmr.msra.gmra.mxu0 %vm1119_vm1, %v2986_v46 }
0x11e5   : > { %6410 = vmatpush3.bf16.msra.mxu0 %v3106_v55  ;;  %v6407_v51 = vpop.f32.mrf.mxu1  ;;  %6411 = vmatprep.mubr.msk.bf16.mxu0 %vm7527_vm0, %v7526_v50 }
0x11e6   : > { %v3086_v27 = vsel %vm1169_vm2, %v3084_v28, -inf  ;;  %6423 = vmatprep.subr.bf16.mxu0 %v7526_v50 }
0x11e7   : > { %3087 = vmax.xlane.f32.xlu0 %v3086_v27  ;;  %v3080_v5 = vpop.f32.mrf.mxu1 }
0x11e8   : > { %v3085_v24 = vmul.f32 0.17677669, %v3080_v5 }
0x11e9   : > { %v6408_v32 = vpop.f32.mrf.mxu1 }
0x11ea   : > { %v3089_v9 = vsel %vm1169_vm2, %v3085_v24, -inf  ;;  %v3372_v32 = vpop.permute.xlu1 %3371 }
0x11eb   : > { %3090 = vmax.xlane.f32.xlu0 %v3089_v9 }
0x1270   : > { %v3088_v56 = vpop.xlane.xlu0 %3087 }
0x1271   : > { %v3092_v58 = vsub.f32 %v3084_v28, %v3088_v56 }
0x1273   : > { %v3094_v29 = vmul.f32 1.442695, %v3092_v58  ;;  %v3377_v58 = vsel %vm1119_vm1, %v3372_v32, 0 }
0x1274   : > { %v3091_v37 = vpop.xlane.xlu0 %3090 }
0x1275   : > { %6944 = vpow2.f32 %v3094_v29  ;;  %v3093_v44 = vsub.f32 %v3085_v24, %v3091_v37  ;;  %v7018_v37 = vld [vmem:[%s7975_s21 + $0x18] sm:$0xff]  }
0x1277   : > { %v3096_v47 = vmul.f32 1.442695, %v3093_v44  ;;  %v7019_v44 = vld [vmem:[%s7975_s21 + $0x10] sm:$0xff]  }
0x1279   : > { %6946 = vpow2.f32 %v3096_v47 }
0x1282   : > { %v6945_v59 = vpop.eup %6944 }
0x1283   : > { %v3098_v61 = vsel %vm1169_vm2, %v6945_v59, 0.0 }
0x1284   : > { %3099 = vadd.xlane.f32.xlu0 %v3098_v61 }
0x1286   : > { %v6947_v16 = vpop.eup %6946 }
0x1287   : > { %v3101_v63 = vsel %vm1169_vm2, %v6947_v16, 0.0  ;;  %v3104_v53 = vpack.c.bf16 %v6947_v16, %v6945_v59 }
0x1288   : > { %3102 = vadd.xlane.f32.xlu0 %v3101_v63 }
0x1289   : > { %6412 = vmatmul.mubr.msk.bf16.vlgmr.msra.gmra.mxu0 %vm1169_vm2, %v3104_v53 }
0x128a   : > { %6424 = vmatpush3.bf16.xpose.msra.mxu0 %v3208_v18  ;;  %6425 = vmatprep.mubr.msk.bf16.mxu0 %vm7527_vm0, %v7526_v50 }
0x128b   : > { %6435 = vmatprep.subr.bf16.mxu0 %v7526_v50 }
0x1291   : > { %6426 = vmatmul.mubr.msk.bf16.vlgmr.msra.gmra.mxu0 %vm1119_vm1, %v8093_v26 }
0x1292   : > { %6436 = vmatpush3.bf16.msra.mxu0 %v7016_v1  ;;  %6439 = vmatprep.mubr.msk.bf16.mxu0 %vm7527_vm0, %v7526_v50 }
0x1293   : > { %6437 = vmatprep.subr.bf16.mxu0 %v7526_v50 }
0x1296   : > { %6438 = vmatpush3.bf16.msra.mxu0 %v7017_v40 }
0x1297   : > { %6449 = vmatprep.subr.bf16.mxu0 %v7526_v50 }
0x12a4   : > { %v3024_v6 = vpop.f32.mrf.mxu0 }
0x12a5   : > { %v8520_v39 = vadd.f32 %v3024_v6, %v8493_v11  ;;  %v1092_v11 = vadd.f32 %v8126_v0, %v8069_v13 }
0x12a6   : > { %v6401_v35 = vpop.f32.mrf.mxu0 }
0x12a7   : > { %v8528_v19 = vpack.c.bf16 %v1092_v11, %v1088_v15 }
0x12a8   : > { %v3027_v43 = vpop.f32.mrf.mxu0 }
0x12a9   : > { %v8522_v21 = vadd.f32 %v3027_v43, %v2862_v30 }
0x12aa   : > { %v6402_v20 = vpop.f32.mrf.mxu0 }
0x130d   : > { %v3100_v2 = vpop.xlane.xlu0 %3099 }
0x130e   : > { %6948 = vrcp.f32 %v3100_v2 }
0x1311   : > { %v3103_v7 = vpop.xlane.xlu0 %3102 }
0x1312   : > { %6950 = vrcp.f32 %v3103_v7 }
0x131b   : > { %v6949_v17 = vpop.eup %6948 }
0x131f   : > { %v6951_v25 = vpop.eup %6950 }
0x1349   : > { %v3145_v8 = vpop.f32.mrf.mxu0 }
0x134a   : > { %v3154_v33 = vmul.f32 %v6949_v17, %v3145_v8 }
0x134b   : > { %v6413_v12 = vpop.f32.mrf.mxu0 }
0x134d   : > { %v3148_v10 = vpop.f32.mrf.mxu0 }
0x134e   : > { %v3155_v34 = vmul.f32 %v6951_v25, %v3148_v10 }
0x134f   : > { %v6414_v30 = vpop.f32.mrf.mxu0 }
0x1350   : > { %v3156_v60 = vpack.c.bf16 %v3155_v34, %v3154_v33 }
0x1351   : > { %v3244_v62 = vpop.f32.mrf.mxu0 }
0x1352   : > { %v3251_v48 = vmul.f32 0.17677669, %v3244_v62  ;;  %6420 = vmatmul.mubr.msk.bf16.vlgmr.msra.gmra.mxu1 %vm1119_vm1, %v3156_v60 }
0x1353   : > { %6430 = vmatpush3.bf16.msra.mxu1 %v8528_v19  ;;  %v6427_v38 = vpop.f32.mrf.mxu0  ;;  %6431 = vmatprep.mubr.msk.bf16.mxu1 %vm7527_vm0, %v7526_v50 }
0x1354   : > { %v3253_v45 = vsel %vm1169_vm2, %v3251_v48, -inf  ;;  %6443 = vmatprep.subr.bf16.mxu1 %v7526_v50 }
0x1355   : > { %3254 = vmax.xlane.f32.xlu0 %v3253_v45  ;;  %v3247_v13 = vpop.f32.mrf.mxu0 }
0x1356   : > { %v3252_v0 = vmul.f32 0.17677669, %v3247_v13 }
0x1357   : > { %v6428_v22 = vpop.f32.mrf.mxu0 }
0x1358   : > { %v3256_v41 = vsel %vm1169_vm2, %v3252_v0, -inf }
0x1359   : > { %3257 = vmax.xlane.f32.xlu0 %v3256_v41 }
0x136f   : > { %3368 = vrot.lane.b32.xlu0 %v8093_v26, %s7528_s13 }
0x13de   : > { %v3255_v23 = vpop.xlane.xlu0 %3254 }
0x13df   : > { %v3259_v46 = vsub.f32 %v3251_v48, %v3255_v23 }
0x13e1   : > { %v3261_v52 = vmul.f32 1.442695, %v3259_v46 }
0x13e2   : > { %v3258_v55 = vpop.xlane.xlu0 %3257 }
0x13e3   : > { %6952 = vpow2.f32 %v3261_v52  ;;  %v3260_v28 = vsub.f32 %v3252_v0, %v3258_v55 }
0x13e5   : > { %v3263_v51 = vmul.f32 1.442695, %v3260_v28  ;;  %v7020_v28 = vld [vmem:[%s7975_s21 + $0x28] sm:$0xff]  }
0x13e6   : > { %v3369_v29 = vpop.permute.xlu0 %3368 }
0x13e7   : > { %6954 = vpow2.f32 %v3263_v51  ;;  %v7021_v51 = vld [vmem:[%s7975_s21 + $0x20] sm:$0xff]  }
0x13f0   : > { %v6953_v27 = vpop.eup %6952 }
0x13f1   : > { %v3265_v5 = vsel %vm1169_vm2, %v6953_v27, 0.0 }
0x13f2   : > { %3266 = vadd.xlane.f32.xlu1 %v3265_v5 }
0x13f4   : > { %v6955_v24 = vpop.eup %6954 }
0x13f5   : > { %v3268_v9 = vsel %vm1169_vm2, %v6955_v24, 0.0  ;;  %v3271_v56 = vpack.c.bf16 %v6955_v24, %v6953_v27 }
0x13f6   : > { %3269 = vadd.xlane.f32.xlu0 %v3268_v9 }
0x13f7   : > { %6432 = vmatmul.mubr.msk.bf16.vlgmr.msra.gmra.mxu1 %vm1169_vm2, %v3271_v56 }
0x13f8   : > { %6444 = vmatpush3.bf16.xpose.msra.mxu1 %v3377_v58  ;;  %6445 = vmatprep.mubr.msk.bf16.mxu1 %vm7527_vm0, %v7526_v50 }
0x13f9   : > { %6455 = vmatprep.subr.bf16.mxu1 %v7526_v50 }
0x13ff   : > { %6446 = vmatmul.mubr.msk.bf16.vlgmr.msra.gmra.mxu1 %vm1119_vm1, %v3369_v29 }
0x1400   : > { %6456 = vmatpush3.bf16.msra.mxu1 %v7018_v37  ;;  %6459 = vmatprep.mubr.msk.bf16.mxu1 %vm7527_vm0, %v7526_v50 }
0x1401   : > { %6457 = vmatprep.subr.bf16.mxu1 %v7526_v50 }
0x1404   : > { %6458 = vmatpush3.bf16.msra.mxu1 %v7019_v44 }
0x1405   : > { %6469 = vmatprep.subr.bf16.mxu1 %v7526_v50 }
0x140c   : > { %3542 = vrot.lane.b32.xlu0 %v8120_v49, %s7529_s23 }
0x1412   : > { %v3194_v47 = vpop.f32.mrf.mxu1 }
0x1413   : > { %v8556_v59 = vadd.f32 %v3194_v47, %v8520_v39 }
0x1414   : > { %v6421_v61 = vpop.f32.mrf.mxu1 }
0x1416   : > { %v3197_v16 = vpop.f32.mrf.mxu1 }
0x1417   : > { %v8559_v63 = vadd.f32 %v3197_v16, %v8522_v21 }
0x1418   : > { %v6422_v53 = vpop.f32.mrf.mxu1 }
0x147b   : > { %v3267_v18 = vpop.xlane.xlu1 %3266 }
0x147c   : > { %6956 = vrcp.f32 %v3267_v18 }
0x147f   : > { %v3270_v1 = vpop.xlane.xlu0 %3269 }
0x1480   : > { %6958 = vrcp.f32 %v3270_v1 }
0x1483   : > { %v3543_v41 = vpop.permute.xlu0 %3542 }
0x1484   : > { %v3548_v52 = vsel %vm1119_vm1, %v3543_v41, 0 }
0x1489   : > { %v6957_v35 = vpop.eup %6956 }
0x148d   : > { %v6959_v43 = vpop.eup %6958 }
0x14b7   : > { %v3309_v40 = vpop.f32.mrf.mxu1 }
0x14b8   : > { %v3318_v2 = vmul.f32 %v6957_v35, %v3309_v40 }
0x14b9   : > { %v6433_v6 = vpop.f32.mrf.mxu1 }
0x14bb   : > { %v3312_v20 = vpop.f32.mrf.mxu1 }
0x14bc   : > { %v3319_v7 = vmul.f32 %v6959_v43, %v3312_v20 }
0x14bd   : > { %v6434_v8 = vpop.f32.mrf.mxu1 }
0x14be   : > { %v3320_v39 = vpack.c.bf16 %v3319_v7, %v3318_v2 }
0x14bf   : > { %v3413_v12 = vpop.f32.mrf.mxu1 }
0x14c0   : > { %v3420_v17 = vmul.f32 0.17677669, %v3413_v12  ;;  %6440 = vmatmul.mubr.msk.bf16.vlgmr.msra.gmra.mxu0 %vm1119_vm1, %v3320_v39 }
0x14c1   : > { %v6447_v21 = vpop.f32.mrf.mxu1  ;;  %6451 = vmatprep.mubr.msk.bf16.mxu0 %vm7527_vm0, %v7526_v50 }
0x14c2   : > { %v3422_v25 = vsel %vm1169_vm2, %v3420_v17, -inf }
0x14c3   : > { %3423 = vmax.xlane.f32.xlu1 %v3422_v25  ;;  %v3416_v15 = vpop.f32.mrf.mxu1 }
0x14c4   : > { %v3421_v11 = vmul.f32 0.17677669, %v3416_v15 }
0x14c5   : > { %v6448_v10 = vpop.f32.mrf.mxu1 }
0x14c6   : > { %v3425_v33 = vsel %vm1169_vm2, %v3421_v11, -inf }
0x14c7   : > { %3426 = vmax.xlane.f32.xlu1 %v3425_v33 }
0x14d8   : > { %3442 = vrot.lane.b32.xlu1 %v8528_v19, %s7528_s13 }
0x14dc   : > { %3540 = vrot.lane.b32.xlu1 %v8093_v26, %s7529_s23 }
0x154c   : > { %v3424_v34 = vpop.xlane.xlu1 %3423 }
0x154d   : > { %v3428_v30 = vsub.f32 %v3420_v17, %v3424_v34 }
0x154f   : > { %v3430_v60 = vmul.f32 1.442695, %v3428_v30 }
0x1550   : > { %v3427_v62 = vpop.xlane.xlu1 %3426 }
0x1551   : > { %6960 = vpow2.f32 %v3430_v60  ;;  %v3429_v48 = vsub.f32 %v3421_v11, %v3427_v62  ;;  %v7022_v62 = vld [vmem:[%s7975_s21 + $0x38] sm:$0xff]  }
0x1553   : > { %v3432_v38 = vmul.f32 1.442695, %v3429_v48  ;;  %v7023_v48 = vld [vmem:[%s7975_s21 + $0x30] sm:$0xff]  }
0x1554   : > { %v3443_v45 = vpop.permute.xlu1 %3442 }
0x1555   : > { %6962 = vpow2.f32 %v3432_v38  ;;  %6450 = vmatpush3.bf16.msra.mxu0 %v3443_v45 }
0x1556   : > { %6463 = vmatprep.subr.bf16.mxu0 %v7526_v50 }
0x1558   : > { %v3541_v55 = vpop.permute.xlu1 %3540 }
0x155e   : > { %v6961_v13 = vpop.eup %6960 }
0x155f   : > { %v3434_v0 = vsel %vm1169_vm2, %v6961_v13, 0.0 }
0x1560   : > { %3435 = vadd.xlane.f32.xlu1 %v3434_v0 }
0x1562   : > { %v6963_v22 = vpop.eup %6962 }
0x1563   : > { %v3437_v23 = vsel %vm1169_vm2, %v6963_v22, 0.0  ;;  %v3440_v46 = vpack.c.bf16 %v6963_v22, %v6961_v13 }
0x1564   : > { %3438 = vadd.xlane.f32.xlu0 %v3437_v23 }
0x1565   : > { %6452 = vmatmul.mubr.msk.bf16.vlgmr.msra.gmra.mxu0 %vm1169_vm2, %v3440_v46 }
0x1566   : > { %6464 = vmatpush3.bf16.xpose.msra.mxu0 %v3548_v52  ;;  %6465 = vmatprep.mubr.msk.bf16.mxu0 %vm7527_vm0, %v7526_v50 }
0x1567   : > { %6475 = vmatprep.subr.bf16.mxu0 %v7526_v50 }
0x156d   : > { %6466 = vmatmul.mubr.msk.bf16.vlgmr.msra.gmra.mxu0 %vm1119_vm1, %v3541_v55 }
0x156e   : > { %6476 = vmatpush3.bf16.msra.mxu0 %v7020_v28  ;;  %6479 = vmatprep.mubr.msk.bf16.mxu0 %vm7527_vm0, %v7526_v50 }
0x156f   : > { %6477 = vmatprep.subr.bf16.mxu0 %v7526_v50 }
0x1572   : > { %6478 = vmatpush3.bf16.msra.mxu0 %v7021_v51 }
0x1573   : > { %6489 = vmatprep.subr.bf16.mxu0 %v7526_v50 }
0x1580   : > { %v8585_v27 = vpop.f32.mrf.mxu0 }
0x1581   : > { %v3365_v38 = vadd.f32 %v8585_v27, %v8199_v3 }
0x1582   : > { %v6441_v5 = vpop.f32.mrf.mxu0 }
0x1584   : > { %v8587_v24 = vpop.f32.mrf.mxu0 }
0x1585   : > { %v3366_v22 = vadd.f32 %v8587_v24, %v8199_v3 }
0x1586   : > { %v6442_v32 = vpop.f32.mrf.mxu0 }
0x15e9   : > { %v3436_v9 = vpop.xlane.xlu1 %3435 }
0x15ea   : > { %6964 = vrcp.f32 %v3436_v9 }
0x15ed   : > { %v3439_v56 = vpop.xlane.xlu0 %3438 }
0x15ee   : > { %6966 = vrcp.f32 %v3439_v56 }
0x15f7   : > { %v6965_v37 = vpop.eup %6964 }
0x15fb   : > { %v6967_v44 = vpop.eup %6966 }
0x1625   : > { %v3482_v58 = vpop.f32.mrf.mxu0 }
0x1626   : > { %v3491_v61 = vmul.f32 %v6965_v37, %v3482_v58 }
0x1627   : > { %v6453_v29 = vpop.f32.mrf.mxu0 }
0x1629   : > { %v3485_v47 = vpop.f32.mrf.mxu0 }
0x162a   : > { %v3492_v16 = vmul.f32 %v6967_v44, %v3485_v47 }
0x162b   : > { %v6454_v53 = vpop.f32.mrf.mxu0 }
0x162c   : > { %v3493_v18 = vpack.c.bf16 %v3492_v16, %v3491_v61 }
0x162d   : > { %v3584_v1 = vpop.f32.mrf.mxu0 }
0x162e   : > { %v3591_v40 = vmul.f32 0.17677669, %v3584_v1  ;;  %6460 = vmatmul.mubr.msk.bf16.vlgmr.msra.gmra.mxu1 %vm1119_vm1, %v3493_v18  ;;  %v7024_v18 = vld [vmem:[#allocation2 + $0x8] sm:$0xff] }
0x162f   : > { %v6467_v6 = vpop.f32.mrf.mxu0  ;;  %6471 = vmatprep.mubr.msk.bf16.mxu1 %vm7527_vm0, %v7526_v50  ;;  %v3884_v1 = vadd.f32 %v7024_v18, %v8556_v59  ;;  %v7025_v59 = vld [vmem:[#allocation2 + $0x30] sm:$0xff] }
0x1630   : > { %v3593_v35 = vsel %vm1169_vm2, %v3591_v40, -inf }
0x1631   : > { %3594 = vmax.xlane.f32.xlu1 %v3593_v35  ;;  %v3587_v43 = vpop.f32.mrf.mxu0 }
0x1632   : > { %v3592_v20 = vmul.f32 0.17677669, %v3587_v43 }
0x1633   : > { %v6468_v2 = vpop.f32.mrf.mxu0 }
0x1634   : > { %v3596_v7 = vsel %vm1169_vm2, %v3592_v20, -inf }
0x1635   : > { %3597 = vmax.xlane.f32.xlu0 %v3596_v7 }
0x1642   : > { %3612 = vrot.lane.b32.xlu1 %v8528_v19, %s7529_s23 }
0x1646   : > { %3710 = vrot.lane.b32.xlu1 %v8093_v26, %s7530_s16 }
0x164b   : > { %3712 = vrot.lane.b32.xlu0 %v8120_v49, %s7530_s16 }
0x16ba   : > { %v3595_v8 = vpop.xlane.xlu1 %3594 }
0x16bb   : > { %v3599_v39 = vsub.f32 %v3591_v40, %v3595_v8 }
0x16bd   : > { %v3601_v12 = vmul.f32 1.442695, %v3599_v39 }
0x16be   : > { %v3613_v17 = vpop.permute.xlu1 %3612  ;;  %v3598_v21 = vpop.xlane.xlu0 %3597 }
0x16bf   : > { %6968 = vpow2.f32 %v3601_v12  ;;  %v3600_v25 = vsub.f32 %v3592_v20, %v3598_v21  ;;  %6470 = vmatpush3.bf16.msra.mxu1 %v3613_v17  ;;  %v3880_v17 = vadd.f32 %v7025_v59, %v8291_v31  ;;  %v7026_v21 = vld [vmem:[#allocation2] sm:$0xff] }
0x16c0   : > { %6483 = vmatprep.subr.bf16.mxu1 %v7526_v50 }
0x16c1   : > { %v3603_v15 = vmul.f32 1.442695, %v3600_v25  ;;  %v3881_v25 = vadd.f32 %v7026_v21, %v8294_v36 }
0x16c2   : > { %v3713_v49 = vpop.permute.xlu0 %3712  ;;  %v3711_v60 = vpop.permute.xlu1 %3710 }
0x16c3   : > { %6970 = vpow2.f32 %v3603_v15  ;;  %v3718_v30 = vsel %vm1119_vm1, %v3713_v49, 0  ;;  %v7027_v15 = vld [vmem:[#allocation2 + $0x18] sm:$0xff]  ;;  %v7029_v49 = vld [vmem:[#allocation2 + $0x20] sm:$0xff] }
0x16cc   : > { %v6969_v11 = vpop.eup %6968 }
0x16cd   : > { %v3605_v10 = vsel %vm1169_vm2, %v6969_v11, 0.0 }
0x16ce   : > { %3606 = vadd.xlane.f32.xlu1 %v3605_v10  ;;  %v7028_v10 = vld [vmem:[#allocation2 + $0x10] sm:$0xff] }
0x16d0   : > { %v6971_v26 = vpop.eup %6970 }
0x16d1   : > { %v3608_v33 = vsel %vm1169_vm2, %v6971_v26, 0.0  ;;  %v3611_v34 = vpack.c.bf16 %v6971_v26, %v6969_v11  ;;  %v3882_v11 = vadd.f32 %v7027_v15, %v8428_v42  ;;  %v3883_v26 = vadd.f32 %v7028_v10, %v8431_v4  ;;  %v6824_v15 = vld [vmem:[%s7977_s18 + $0x54] ss:$8 sps:$4 sm:$0xff]   ;;  %v6827_v10 = vld [vmem:[%s7977_s18 + $0x44] ss:$8 sps:$4 sm:$0xff]  }
0x16d2   : > { %3609 = vadd.xlane.f32.xlu0 %v3608_v33  ;;  %v3885_v33 = vadd.f32 %v7029_v49, %v8559_v63  ;;  %v6830_v49 = vld [vmem:[%s7977_s18 + $0x34] ss:$8 sps:$4 sm:$0xff]  }
0x16d3   : > { %6472 = vmatmul.mubr.msk.bf16.vlgmr.msra.gmra.mxu1 %vm1169_vm2, %v3611_v34 }
0x16d4   : > { %6484 = vmatpush3.bf16.xpose.msra.mxu1 %v3718_v30  ;;  %6485 = vmatprep.mubr.msk.bf16.mxu1 %vm7527_vm0, %v7526_v50 }
0x16d5   : > { %6495 = vmatprep.subr.bf16.mxu1 %v7526_v50 }
0x16db   : > { %6486 = vmatmul.mubr.msk.bf16.vlgmr.msra.gmra.mxu1 %vm1119_vm1, %v3711_v60 }
0x16dc   : > { %6496 = vmatpush3.bf16.msra.mxu1 %v7022_v62  ;;  %6499 = vmatprep.mubr.msk.bf16.mxu1 %vm7527_vm0, %v7526_v50 }
0x16dd   : > { %6497 = vmatprep.subr.bf16.mxu1 %v7526_v50 }
0x16e0   : > { %6498 = vmatpush3.bf16.msra.mxu1 %v7023_v48 }
0x16ee   : > { %v3531_v45 = vpop.f32.mrf.mxu1 }
0x16ef   : > { %v8616_v13 = vadd.f32 %v3531_v45, %v3365_v38 }
0x16f0   : > { %v6461_v0 = vpop.f32.mrf.mxu1 }
0x16f2   : > { %v3534_v41 = vpop.f32.mrf.mxu1 }
0x16f3   : > { %v8620_v23 = vadd.f32 %v3534_v41, %v3366_v22 }
0x16f4   : > { %v6462_v46 = vpop.f32.mrf.mxu1 }
0x1757   : > { %v3607_v52 = vpop.xlane.xlu1 %3606 }
0x1758   : > { %6972 = vrcp.f32 %v3607_v52 }
0x175b   : > { %v3610_v55 = vpop.xlane.xlu0 %3609 }
0x175c   : > { %6974 = vrcp.f32 %v3610_v55 }
0x1765   : > { %v6973_v5 = vpop.eup %6972 }
0x1769   : > { %v6975_v32 = vpop.eup %6974 }
0x1793   : > { %v3652_v28 = vpop.f32.mrf.mxu1 }
0x1794   : > { %v3661_v9 = vmul.f32 %v6973_v5, %v3652_v28 }
0x1795   : > { %v6473_v51 = vpop.f32.mrf.mxu1 }
0x1797   : > { %v3655_v27 = vpop.f32.mrf.mxu1 }
0x1798   : > { %v3662_v56 = vmul.f32 %v6975_v32, %v3655_v27 }
0x1799   : > { %v6474_v58 = vpop.f32.mrf.mxu1 }
0x179a   : > { %v3663_v29 = vpack.c.bf16 %v3662_v56, %v3661_v9  ;;  %v7030_v58 = vld [vmem:[#allocation2 + $0x28] sm:$0xff] }
0x179b   : > { %v3754_v37 = vpop.f32.mrf.mxu1 }
0x179c   : > { %v3761_v44 = vmul.f32 0.17677669, %v3754_v37  ;;  %6480 = vmatmul.mubr.msk.bf16.vlgmr.msra.gmra.mxu0 %vm1119_vm1, %v3663_v29 }
0x179d   : > { %v6487_v3 = vpop.f32.mrf.mxu1  ;;  %6491 = vmatprep.mubr.msk.bf16.mxu0 %vm7527_vm0, %v7526_v50 }
0x179e   : > { %v3763_v24 = vsel %vm1169_vm2, %v3761_v44, -inf }
0x179f   : > { %3764 = vmax.xlane.f32.xlu0 %v3763_v24  ;;  %v3757_v47 = vpop.f32.mrf.mxu1 }
0x17a0   : > { %v3762_v61 = vmul.f32 0.17677669, %v3757_v47 }
0x17a1   : > { %v6488_v16 = vpop.f32.mrf.mxu1 }
0x17a2   : > { %v3766_v53 = vsel %vm1169_vm2, %v3762_v61, -inf  ;;  %v7031_v16 = vld [vmem:[#allocation2 + $0x38] sm:$0xff] }
0x17a3   : > { %3767 = vmax.xlane.f32.xlu1 %v3766_v53 }
0x17b5   : > { %3782 = vrot.lane.b32.xlu0 %v8528_v19, %s7530_s16 }
0x17d4   : > { %3896 = vadd.xlane.f32.xlu0 %v3884_v1 }
0x1828   : > { %v3765_v40 = vpop.xlane.xlu0 %3764 }
0x1829   : > { %v3769_v6 = vsub.f32 %v3761_v44, %v3765_v40 }
0x182b   : > { %v3771_v35 = vmul.f32 1.442695, %v3769_v6 }
0x182c   : > { %v3768_v50 = vpop.xlane.xlu1 %3767  ;;  %v3783_v43 = vpop.permute.xlu0 %3782 }
0x182d   : > { %6976 = vpow2.f32 %v3771_v35  ;;  %v3770_v20 = vsub.f32 %v3762_v61, %v3768_v50  ;;  %6490 = vmatpush3.bf16.msra.mxu0 %v3783_v43 }
0x182f   : > { %v3773_v2 = vmul.f32 1.442695, %v3770_v20 }
0x1831   : > { %6978 = vpow2.f32 %v3773_v2 }
0x183a   : > { %v6977_v7 = vpop.eup %6976 }
0x183b   : > { %v3775_v8 = vsel %vm1169_vm2, %v6977_v7, 0.0 }
0x183c   : > { %3776 = vadd.xlane.f32.xlu1 %v3775_v8 }
0x183e   : > { %v6979_v39 = vpop.eup %6978 }
0x183f   : > { %v3778_v19 = vsel %vm1169_vm2, %v6979_v39, 0.0  ;;  %v3781_v12 = vpack.c.bf16 %v6979_v39, %v6977_v7  ;;  %v6816_v39 = vld [vmem:[%s7977_s18 + $0x70] ss:$8 sps:$4 sm:$0xff]  }
0x1840   : > { %3779 = vadd.xlane.f32.xlu1 %v3778_v19  ;;  %v6818_v19 = vld [vmem:[%s7977_s18 + $0x74] ss:$8 sps:$4 sm:$0xff]  }
0x1841   : > { %6492 = vmatmul.mubr.msk.bf16.vlgmr.msra.gmra.mxu0 %vm1169_vm2, %v3781_v12  ;;  %4109 = vmatprep.subr.bf16.mxu0 %v6818_v19 }
0x1842   : > { %4141 = vmatprep.mubr.bf16.mxu0 %v7525_v14  ;;  %4110 = vmatpush1.bf16.msra.mxu0 %v6816_v39 }
0x1844   : > { %3888 = vadd.xlane.f32.xlu1 %v3880_v17 }
0x1848   : > { %3890 = vadd.xlane.f32.xlu1 %v3881_v25 }
0x184c   : > { %3892 = vadd.xlane.f32.xlu1 %v3882_v11 }
0x1850   : > { %3894 = vadd.xlane.f32.xlu1 %v3883_v26 }
0x1854   : > { %3898 = vadd.xlane.f32.xlu1 %v3885_v33 }
0x185c   : > { %v3701_v31 = vpop.f32.mrf.mxu0 }
0x185d   : > { %v3708_v34 = vadd.f32 %v3701_v31, %v8616_v13  ;;  %v3897_v30 = vpop.xlane.xlu0 %3896  ;;  %v6833_v31 = vld [vmem:[%s7977_s18 + $0x24] ss:$8 sps:$4 sm:$0xff]  }
0x185e   : > { %v3909_v60 = vmul.f32 0.0078125, %v3897_v30  ;;  %v6481_v62 = vpop.f32.mrf.mxu0  ;;  %v6836_v30 = vld [vmem:[%s7977_s18 + $0x14] ss:$8 sps:$4 sm:$0xff]  }
0x185f   : > { %v6839_v62 = vld [vmem:[%s7977_s18 + $0x4] ss:$8 sps:$4 sm:$0xff]  }
0x1860   : > { %v8640_v36 = vsub.f32 %v3884_v1, %v3909_v60  ;;  %v3704_v48 = vpop.f32.mrf.mxu0  ;;  %v6834_v60 = vld [vmem:[%s7977_s18 + $0x10] ss:$8 sps:$4 sm:$0xff]  }
0x1861   : > { %v3709_v42 = vadd.f32 %v3704_v48, %v8620_v23  ;;  %v6837_v48 = vld [vmem:[%s7977_s18] ss:$8 sps:$4 sm:$0xff]  }
0x1862   : > { %v6482_v38 = vpop.f32.mrf.mxu0  ;;  %v3925_v4 = vmul.f32 %v8640_v36, %v8640_v36 }
0x1864   : > { %3937 = vadd.xlane.f32.xlu0 %v3925_v4 }
0x18c5   : > { %v3777_v45 = vpop.xlane.xlu1 %3776 }
0x18c6   : > { %6980 = vrcp.f32 %v3777_v45 }
0x18c9   : > { %v3780_v0 = vpop.xlane.xlu1 %3779 }
0x18ca   : > { %6982 = vrcp.f32 %v3780_v0 }
0x18cd   : > { %v3889_v23 = vpop.xlane.xlu1 %3888 }
0x18ce   : > { %v3905_v56 = vmul.f32 0.0078125, %v3889_v23 }
0x18d0   : > { %v8649_v47 = vsub.f32 %v3880_v17, %v3905_v56  ;;  %v6821_v17 = vld [vmem:[%s7977_s18 + $0x64] ss:$8 sps:$4 sm:$0xff]  }
0x18d1   : > { %v3891_v5 = vpop.xlane.xlu1 %3890  ;;  %4111 = vmatprep.subr.bf16.mxu0 %v6821_v17 }
0x18d2   : > { %v3906_v61 = vmul.f32 0.0078125, %v3891_v5  ;;  %v3921_v6 = vmul.f32 %v8649_v47, %v8649_v47 }
0x18d3   : > { %v6981_v13 = vpop.eup %6980 }
0x18d4   : > { %v8651_v1 = vsub.f32 %v3881_v25, %v3906_v61  ;;  %v6819_v25 = vld [vmem:[%s7977_s18 + $0x60] ss:$8 sps:$4 sm:$0xff]  }
0x18d5   : > { %v3893_v37 = vpop.xlane.xlu1 %3892  ;;  %4112 = vmatpush1.bf16.msra.mxu0 %v6819_v25 }
0x18d6   : > { %v3907_v40 = vmul.f32 0.0078125, %v3893_v37  ;;  %v3922_v43 = vmul.f32 %v8651_v1, %v8651_v1  ;;  %4113 = vmatprep.subr.bf16.mxu0 %v6824_v15 }
0x18d7   : > { %v6983_v41 = vpop.eup %6982 }
0x18d8   : > { %v8655_v35 = vsub.f32 %v3882_v11, %v3907_v40  ;;  %v6822_v11 = vld [vmem:[%s7977_s18 + $0x50] ss:$8 sps:$4 sm:$0xff]  }
0x18d9   : > { %v3895_v18 = vpop.xlane.xlu1 %3894  ;;  %4114 = vmatpush1.bf16.msra.mxu0 %v6822_v11 }
0x18da   : > { %v3908_v50 = vmul.f32 0.0078125, %v3895_v18  ;;  %v3923_v8 = vmul.f32 %v8655_v35, %v8655_v35  ;;  %4115 = vmatprep.subr.bf16.mxu0 %v6827_v10  ;;  %v8697_v18 = vld [vmem:[%s7992_s20] sm:$0xff] }
0x18dc   : > { %v8659_v2 = vsub.f32 %v3883_v26, %v3908_v50  ;;  %v6825_v26 = vld [vmem:[%s7977_s18 + $0x40] ss:$8 sps:$4 sm:$0xff]  }
0x18dd   : > { %v3899_v20 = vpop.xlane.xlu1 %3898  ;;  %4116 = vmatpush1.bf16.msra.mxu0 %v6825_v26 }
0x18de   : > { %v3910_v7 = vmul.f32 0.0078125, %v3899_v20  ;;  %v3924_v59 = vmul.f32 %v8659_v2, %v8659_v2  ;;  %4117 = vmatprep.subr.bf16.mxu0 %v6830_v49  ;;  %v8705_v20 = vld [vmem:[%s7992_s20 + $0x8] sm:$0xff] }
0x18e0   : > { %v8665_v12 = vsub.f32 %v3885_v33, %v3910_v7  ;;  %v6828_v33 = vld [vmem:[%s7977_s18 + $0x30] ss:$8 sps:$4 sm:$0xff]  }
0x18e1   : > { %4118 = vmatpush1.bf16.msra.mxu0 %v6828_v33 }
0x18e2   : > { %v3926_v21 = vmul.f32 %v8665_v12, %v8665_v12  ;;  %4119 = vmatprep.subr.bf16.mxu0 %v6833_v31 }
0x18ed   : > { %v3938_v23 = vpop.xlane.xlu0 %3937 }
0x1901   : > { %v3822_v63 = vpop.f32.mrf.mxu0 }
0x1902   : > { %v3831_v52 = vmul.f32 %v6981_v13, %v3822_v63 }
0x1903   : > { %v6493_v22 = vpop.f32.mrf.mxu0 }
0x1905   : > { %v3825_v46 = vpop.f32.mrf.mxu0 }
0x1906   : > { %v3832_v55 = vmul.f32 %v6983_v41, %v3825_v46 }
0x1907   : > { %v6494_v28 = vpop.f32.mrf.mxu0 }
0x1908   : > { %v3833_v51 = vpack.c.bf16 %v3832_v55, %v3831_v52 }
0x190a   : > { %6500 = vmatmul.mubr.msk.bf16.vlgmr.msra.gmra.mxu1 %vm1119_vm1, %v3833_v51 }
0x19ca   : > { %v3871_v32 = vpop.f32.mrf.mxu1 }
0x19cb   : > { %v3878_v27 = vadd.f32 %v3871_v32, %v3708_v34  ;;  %v6831_v34 = vld [vmem:[%s7977_s18 + $0x20] ss:$8 sps:$4 sm:$0xff]  }
0x19cc   : > { %v6501_v9 = vpop.f32.mrf.mxu1  ;;  %4120 = vmatpush1.bf16.msra.mxu0 %v6831_v34 }
0x19cd   : > { %v8646_v29 = vadd.f32 %v7030_v58, %v3878_v27  ;;  %4121 = vmatprep.subr.bf16.mxu0 %v6836_v30  ;;  %v3949_v27 = vmul.f32 0.0078125, %v3938_v23  ;;  %v6840_v30 = vld [vmem:[%s7984_s17 + $0x78] sm:$0xff]  }
0x19ce   : > { %v3874_v44 = vpop.f32.mrf.mxu1  ;;  %6083 = vmatprep.subr.bf16.mxu1 %v6840_v30 }
0x19cf   : > { %v3879_v3 = vadd.f32 %v3874_v44, %v3709_v42  ;;  %3900 = vadd.xlane.f32.xlu1 %v8646_v29 }
0x19d0   : > { %v6502_v24 = vpop.f32.mrf.mxu1  ;;  %4122 = vmatpush1.bf16.msra.mxu0 %v6834_v60  ;;  %v6841_v60 = vld [vmem:[%s7984_s17 + $0x38] sm:$0xff]  }
0x19d1   : > { %v3887_v53 = vadd.f32 %v7031_v16, %v3879_v3  ;;  %4123 = vmatprep.subr.bf16.mxu0 %v6839_v62  ;;  %v3979_v3 = vsub.s32 3, %v8041_v54  ;;  %v6842_v62 = vld [vmem:[%s7984_s17 + $0x70] sm:$0xff]   ;;  %6084 = vmatpush3.bf16.msra.mxu1 %v6841_v60 }
0x19d2   : > { %6085 = vmatprep.subr.bf16.mxu1 %v6842_v62 }
0x19d3   : > { %3902 = vadd.xlane.f32.xlu1 %v3887_v53  ;;  %v8700_v40 = vrot.slane %v8697_v18, %v3979_v3  ;;  %v8708_v7 = vrot.slane %v8705_v20, %v3979_v3 }
0x19d4   : > { %4124 = vmatpush1.bf16.msra.mxu0 %v6837_v48 }
0x19d7   : > { %3929 = vadd.xlane.f32.xlu1 %v3921_v6 }
0x19db   : > { %3931 = vadd.xlane.f32.xlu1 %v3922_v43 }
0x19df   : > { %3933 = vadd.xlane.f32.xlu1 %v3923_v8 }
0x19e3   : > { %3935 = vadd.xlane.f32.xlu1 %v3924_v59 }
0x19e7   : > { %3939 = vadd.xlane.f32.xlu1 %v3926_v21 }
0x1a58   : > { %v3901_v42 = vpop.xlane.xlu1 %3900 }
0x1a59   : > { %v3911_v38 = vmul.f32 0.0078125, %v3901_v42  ;;  %v6844_v42 = vld [vmem:[%s7984_s17 + $0x68] sm:$0xff]  }
0x1a5b   : > { %v8686_v4 = vsub.f32 %v8646_v29, %v3911_v38  ;;  %v3957_v29 = vadd.f32 1e-05, %v3949_v27 }
0x1a5c   : > { %v3903_v45 = vpop.xlane.xlu1 %3902 }
0x1a5d   : > { %v3912_v0 = vmul.f32 0.0078125, %v3903_v45  ;;  %v3927_v63 = vmul.f32 %v8686_v4, %v8686_v4  ;;  %v6845_v45 = vld [vmem:[%s7984_s17 + $0x28] sm:$0xff]  }
0x1a5f   : > { %v8690_v22 = vsub.f32 %v3887_v53, %v3912_v0  ;;  %3941 = vadd.xlane.f32.xlu0 %v3927_v63  ;;  %v6846_v0 = vld [vmem:[%s7984_s17 + $0x60] sm:$0xff]  }
0x1a60   : > { %v3930_v13 = vpop.xlane.xlu1 %3929  ;;  %v6847_v63 = vld [vmem:[%s7984_s17 + $0x20] sm:$0xff]  }
0x1a61   : > { %v3945_v41 = vmul.f32 0.0078125, %v3930_v13  ;;  %v3928_v46 = vmul.f32 %v8690_v22, %v8690_v22  ;;  %v6848_v13 = vld [vmem:[%s7984_s17 + $0x58] sm:$0xff]  }
0x1a63   : > { %v3953_v52 = vadd.f32 1e-05, %v3945_v41  ;;  %3943 = vadd.xlane.f32.xlu1 %v3928_v46  ;;  %v6849_v41 = vld [vmem:[%s7984_s17 + $0x18] sm:$0xff]   ;;  %v6850_v46 = vld [vmem:[%s7984_s17 + $0x50] sm:$0xff]  }
0x1a64   : > { %v3932_v55 = vpop.xlane.xlu1 %3931 }
0x1a65   : > { %6984 = vrsqrt.f32 %v3953_v52  ;;  %v3946_v28 = vmul.f32 0.0078125, %v3932_v55  ;;  %v6851_v52 = vld [vmem:[%s7984_s17 + $0x10] sm:$0xff]   ;;  %v6852_v55 = vld [vmem:[%s7984_s17 + $0x48] sm:$0xff]  }
0x1a67   : > { %v3954_v51 = vadd.f32 1e-05, %v3946_v28  ;;  %v6853_v28 = vld [vmem:[%s7984_s17 + $0x8] sm:$0xff]  }
0x1a68   : > { %v3934_v5 = vpop.xlane.xlu1 %3933 }
0x1a69   : > { %6986 = vrsqrt.f32 %v3954_v51  ;;  %v3947_v32 = vmul.f32 0.0078125, %v3934_v5  ;;  %v6854_v51 = vld [vmem:[%s7984_s17 + $0x40] sm:$0xff]  }
0x1a6b   : > { %v3955_v9 = vadd.f32 1e-05, %v3947_v32 }
0x1a6c   : > { %v3936_v56 = vpop.xlane.xlu1 %3935 }
0x1a6d   : > { %6988 = vrsqrt.f32 %v3955_v9  ;;  %v3948_v58 = vmul.f32 0.0078125, %v3936_v56 }
0x1a6f   : > { %v3956_v37 = vadd.f32 1e-05, %v3948_v58 }
0x1a70   : > { %v3940_v44 = vpop.xlane.xlu1 %3939 }
0x1a71   : > { %6990 = vrsqrt.f32 %v3956_v37  ;;  %v3950_v24 = vmul.f32 0.0078125, %v3940_v44 }
0x1a72   : > { %v6985_v61 = vpop.eup %6984  ;;  %6992 = vrsqrt.f32 %v3957_v29 }
0x1a73   : > { %v3958_v16 = vadd.f32 1e-05, %v3950_v24  ;;  %v3969_v53 = vmul.f32 %v6985_v61, %v8649_v47 }
0x1a75   : > { %6994 = vrsqrt.f32 %v3958_v16  ;;  %v3981_v43 = vmul.f32 %v8700_v40, %v3969_v53 }
0x1a76   : > { %v6987_v6 = vpop.eup %6986 }
0x1a77   : > { %v3970_v50 = vmul.f32 %v6987_v6, %v8651_v1  ;;  %v8712_v47 = vadd.f32 %v8708_v7, %v3981_v43  ;;  %v4023_v6 = vsub.s32 4, %v8041_v54 }
0x1a79   : > { %v3982_v8 = vmul.f32 %v8700_v40, %v3970_v50  ;;  %v4028_v50 = vrot.slane %v8705_v20, %v4023_v6 }
0x1a7a   : > { %v6989_v39 = vpop.eup %6988 }
0x1a7b   : > { %v8715_v19 = vadd.f32 %v8708_v7, %v3982_v8  ;;  %v3971_v59 = vmul.f32 %v6989_v39, %v8655_v35 }
0x1a7d   : > { %v4017_v1 = vpack.c.bf16 %v8715_v19, %v8712_v47  ;;  %v3983_v25 = vmul.f32 %v8700_v40, %v3971_v59 }
0x1a7e   : > { %v6991_v17 = vpop.eup %6990 }
0x1a7f   : > { %4142 = vmatmul.mubr.bf16.vlgmr.msra.gmra.mxu0 %v4017_v1  ;;  %v3972_v21 = vmul.f32 %v6991_v17, %v8659_v2  ;;  %v6993_v15 = vpop.eup %6992  ;;  %v8725_v35 = vadd.f32 %v8708_v7, %v3983_v25 }
0x1a80   : > { %4151 = vmatprep.mubr.bf16.mxu0 %v7525_v14  ;;  %v3973_v49 = vmul.f32 %v6993_v15, %v8640_v36 }
0x1a81   : > { %v3984_v11 = vmul.f32 %v8700_v40, %v3972_v21 }
0x1a82   : > { %v6995_v10 = vpop.eup %6994  ;;  %v3985_v34 = vmul.f32 %v8700_v40, %v3973_v49 }
0x1a83   : > { %v8728_v26 = vadd.f32 %v8708_v7, %v3984_v11  ;;  %v3974_v2 = vmul.f32 %v6995_v10, %v8665_v12  ;;  %v6843_v12 = vld [vmem:[%s7984_s17 + $0x30] sm:$0xff]  }
0x1a84   : > { %v8745_v48 = vadd.f32 %v8708_v7, %v3985_v34  ;;  %6086 = vmatpush3.bf16.msra.mxu1 %v6843_v12 }
0x1a85   : > { %v4018_v33 = vpack.c.bf16 %v8728_v26, %v8725_v35  ;;  %v3986_v31 = vmul.f32 %v8700_v40, %v3974_v2  ;;  %6087 = vmatprep.subr.bf16.mxu1 %v6844_v42 }
0x1a87   : > { %4152 = vmatmul.mubr.bf16.gmra.mxu0 %v4018_v33  ;;  %v8741_v36 = vadd.f32 %v8708_v7, %v3986_v31 }
0x1a88   : > { %4161 = vmatprep.mubr.bf16.mxu0 %v7525_v14  ;;  %6088 = vmatpush3.bf16.msra.mxu1 %v6845_v45 }
0x1a89   : > { %v4019_v38 = vpack.c.bf16 %v8741_v36, %v8745_v48  ;;  %6089 = vmatprep.subr.bf16.mxu1 %v6846_v0 }
0x1a8c   : > { %6090 = vmatpush3.bf16.msra.mxu1 %v6847_v63 }
0x1a8d   : > { %6091 = vmatprep.subr.bf16.mxu1 %v6848_v13 }
0x1a8f   : > { %4162 = vmatmul.mubr.bf16.gmra.mxu0 %v4019_v38 }
0x1a90   : > { %4171 = vmatprep.mubr.bf16.mxu0 %v7525_v14  ;;  %6092 = vmatpush3.bf16.msra.mxu1 %v6849_v41  ;;  %v6855_v14 = vld [vmem:[%s7984_s17] sm:$0xff]  }
0x1a91   : > { %6093 = vmatprep.subr.bf16.mxu1 %v6850_v46 }
0x1a94   : > { %6094 = vmatpush3.bf16.msra.mxu1 %v6851_v52 }
0x1a95   : > { %6095 = vmatprep.subr.bf16.mxu1 %v6852_v55 }
0x1a98   : > { %6096 = vmatpush3.bf16.msra.mxu1 %v6853_v28 }
0x1a99   : > { %6097 = vmatprep.subr.bf16.mxu1 %v6854_v51 }
0x1a9c   : > { %6098 = vmatpush3.bf16.msra.mxu1 %v6855_v14 }
0x1ae8   : > { %v3942_v23 = vpop.xlane.xlu0 %3941 }
0x1ae9   : > { %v3951_v5 = vmul.f32 0.0078125, %v3942_v23 }
0x1aeb   : > { %v3959_v32 = vadd.f32 1e-05, %v3951_v5 }
0x1aec   : > { %v3944_v27 = vpop.xlane.xlu1 %3943 }
0x1aed   : > { %6996 = vrsqrt.f32 %v3959_v32  ;;  %v3952_v9 = vmul.f32 0.0078125, %v3944_v27 }
0x1aef   : > { %v3960_v56 = vadd.f32 1e-05, %v3952_v9 }
0x1af1   : > { %6998 = vrsqrt.f32 %v3960_v56 }
0x1afa   : > { %v6997_v58 = vpop.eup %6996 }
0x1afb   : > { %v3975_v29 = vmul.f32 %v6997_v58, %v8686_v4 }
0x1afd   : > { %v3987_v3 = vmul.f32 %v8700_v40, %v3975_v29 }
0x1afe   : > { %v6999_v37 = vpop.eup %6998 }
0x1aff   : > { %v3976_v44 = vmul.f32 %v6999_v37, %v8690_v22  ;;  %v8767_v61 = vadd.f32 %v8708_v7, %v3987_v3  ;;  %v4024_v22 = vrot.slane %v8697_v18, %v4023_v6 }
0x1b01   : > { %v3988_v24 = vmul.f32 %v8700_v40, %v3976_v44 }
0x1b03   : > { %v8770_v16 = vadd.f32 %v8708_v7, %v3988_v24 }
0x1b05   : > { %v4020_v53 = vpack.c.bf16 %v8770_v16, %v8767_v61 }
0x1b07   : > { %4172 = vmatmul.mubr.bf16.gmra.mxu0 %v4020_v53 }
0x1b3f   : > { %v4143_v4 = vpop.f32.mrf.mxu0 }
0x1b40   : > { %v4144_v59 = vadd.f32 %v4143_v4, %v4024_v22 }
0x1b41   : > { %v4145_v43 = vpop.f32.mrf.mxu0 }
0x1b42   : > { %v4146_v40 = vadd.f32 %v4145_v43, %v4028_v50  ;;  %v4182_v11 = vmax.f32 %v4144_v59, 0.0 }
0x1b43   : > { %v4147_v8 = vpop.f32.mrf.mxu0 }
0x1b44   : > { %v4148_v39 = vadd.f32 %v4147_v8, %v4024_v22  ;;  %v4183_v25 = vmax.f32 %v4146_v40, 0.0 }
0x1b45   : > { %v4149_v1 = vpop.f32.mrf.mxu0 }
0x1b46   : > { %v4150_v17 = vadd.f32 %v4149_v1, %v4028_v50  ;;  %v4184_v7 = vmax.f32 %v4148_v39, 0.0  ;;  %v4240_v1 = vsub.s32 5, %v8041_v54 }
0x1b47   : > { %v4153_v21 = vpop.f32.mrf.mxu0 }
0x1b48   : > { %v4185_v15 = vmax.f32 %v4150_v17, 0.0  ;;  %v4230_v2 = vpack.c.bf16 %v4184_v7, %v4182_v11  ;;  %v4154_v30 = vadd.f32 %v4153_v21, %v4024_v22  ;;  %v4241_v7 = vrot.slane %v8697_v18, %v4240_v1 }
0x1b49   : > { %v4155_v10 = vpop.f32.mrf.mxu0 }
0x1b4a   : > { %v4231_v49 = vpack.c.bf16 %v4185_v15, %v4183_v25  ;;  %v4156_v31 = vadd.f32 %v4155_v10, %v4028_v50  ;;  %v4186_v0 = vmax.f32 %v4154_v30, 0.0 }
0x1b4b   : > { %v4157_v33 = vpop.f32.mrf.mxu0 }
0x1b4c   : > { %v4158_v34 = vadd.f32 %v4157_v33, %v4024_v22  ;;  %4370 = vmatprep.mubr.bf16.mxu1 %v4231_v49  ;;  %v4187_v38 = vmax.f32 %v4156_v31, 0.0 }
0x1b4d   : > { %v4159_v60 = vpop.f32.mrf.mxu0  ;;  %4371 = vmatmul.mubr.bf16.vlgmr.msra.gmra.mxu1 %v4230_v2 }
0x1b4e   : > { %v4160_v62 = vadd.f32 %v4159_v60, %v4028_v50  ;;  %v4188_v12 = vmax.f32 %v4158_v34, 0.0 }
0x1b4f   : > { %v4163_v42 = vpop.f32.mrf.mxu0 }
0x1b50   : > { %v4189_v45 = vmax.f32 %v4160_v62, 0.0  ;;  %v4232_v41 = vpack.c.bf16 %v4188_v12, %v4186_v0  ;;  %v4164_v28 = vadd.f32 %v4163_v42, %v4024_v22 }
0x1b51   : > { %v4165_v63 = vpop.f32.mrf.mxu0 }
0x1b52   : > { %v4233_v13 = vpack.c.bf16 %v4189_v45, %v4187_v38  ;;  %v4166_v52 = vadd.f32 %v4165_v63, %v4028_v50  ;;  %v4190_v27 = vmax.f32 %v4164_v28, 0.0 }
0x1b53   : > { %v4167_v46 = vpop.f32.mrf.mxu0 }
0x1b54   : > { %v4168_v55 = vadd.f32 %v4167_v46, %v4024_v22  ;;  %4378 = vmatprep.mubr.bf16.mxu1 %v4233_v13  ;;  %v4191_v5 = vmax.f32 %v4166_v52, 0.0 }
0x1b55   : > { %v4169_v51 = vpop.f32.mrf.mxu0  ;;  %4379 = vmatmul.mubr.bf16.gmra.mxu1 %v4232_v41 }
0x1b56   : > { %v4170_v14 = vadd.f32 %v4169_v51, %v4028_v50  ;;  %v4192_v23 = vmax.f32 %v4168_v55, 0.0 }
0x1b58   : > { %v4193_v32 = vmax.f32 %v4170_v14, 0.0  ;;  %v4234_v56 = vpack.c.bf16 %v4192_v23, %v4190_v27 }
0x1b5a   : > { %v4235_v9 = vpack.c.bf16 %v4193_v32, %v4191_v5 }
0x1b5c   : > { %4386 = vmatprep.mubr.bf16.mxu1 %v4235_v9 }
0x1b5d   : > { %4387 = vmatmul.mubr.bf16.gmra.mxu1 %v4234_v56 }
0x1bc7   : > { %v4173_v58 = vpop.f32.mrf.mxu0 }
0x1bc8   : > { %v4174_v24 = vadd.f32 %v4173_v58, %v4024_v22 }
0x1bc9   : > { %v4175_v29 = vpop.f32.mrf.mxu0 }
0x1bca   : > { %v4176_v44 = vadd.f32 %v4175_v29, %v4028_v50  ;;  %v4194_v40 = vmax.f32 %v4174_v24, 0.0 }
0x1bcb   : > { %v4177_v37 = vpop.f32.mrf.mxu0 }
0x1bcc   : > { %v4178_v3 = vadd.f32 %v4177_v37, %v4024_v22  ;;  %v4195_v43 = vmax.f32 %v4176_v44, 0.0 }
0x1bcd   : > { %v4179_v53 = vpop.f32.mrf.mxu0 }
0x1bce   : > { %v4180_v6 = vadd.f32 %v4179_v53, %v4028_v50  ;;  %v4196_v4 = vmax.f32 %v4178_v3, 0.0 }
0x1bd0   : > { %v4197_v8 = vmax.f32 %v4180_v6, 0.0  ;;  %v4236_v59 = vpack.c.bf16 %v4196_v4, %v4194_v40 }
0x1bd2   : > { %v4237_v39 = vpack.c.bf16 %v4197_v8, %v4195_v43 }
0x1bd4   : > { %4394 = vmatprep.mubr.bf16.mxu1 %v4237_v39 }
0x1bd5   : > { %4395 = vmatmul.mubr.bf16.gmra.mxu1 %v4236_v59 }
0x1c0d   : > { %v6099_v17 = vpop.f32.mrf.mxu1 }
0x1c0f   : > { %v6100_v21 = vpop.f32.mrf.mxu1 }
0x1c10   : > { %v6101_v25 = vadd.f32 %v6100_v21, %v6099_v17 }
0x1c11   : > { %v6102_v15 = vpop.f32.mrf.mxu1 }
0x1c12   : > { %v4373_v11 = vadd.f32 %v6101_v25, %v4241_v7 }
0x1c13   : > { %v6103_v22 = vpop.f32.mrf.mxu1 }
0x1c14   : > { %v6104_v10 = vadd.f32 %v6103_v22, %v6102_v15  ;;  %v4403_v50 = vadd.f32 %v4373_v11, %v8712_v47 }
0x1c15   : > { %v6105_v49 = vpop.f32.mrf.mxu1 }
0x1c16   : > { %v4376_v2 = vadd.f32 %v6104_v10, %v4241_v7  ;;  %4411 = vadd.xlane.f32.xlu0 %v4403_v50 }
0x1c17   : > { %v6106_v33 = vpop.f32.mrf.mxu1 }
0x1c18   : > { %v6107_v31 = vadd.f32 %v6106_v33, %v6105_v49  ;;  %v4404_v34 = vadd.f32 %v4376_v2, %v8715_v19 }
0x1c19   : > { %v6108_v30 = vpop.f32.mrf.mxu1 }
0x1c1a   : > { %v4381_v60 = vadd.f32 %v6107_v31, %v4241_v7  ;;  %4413 = vadd.xlane.f32.xlu1 %v4404_v34 }
0x1c1b   : > { %v6109_v62 = vpop.f32.mrf.mxu1 }
0x1c1c   : > { %v6110_v12 = vadd.f32 %v6109_v62, %v6108_v30  ;;  %v4405_v42 = vadd.f32 %v4381_v60, %v8725_v35 }
0x1c1d   : > { %v6111_v38 = vpop.f32.mrf.mxu1 }
0x1c1e   : > { %v4384_v45 = vadd.f32 %v6110_v12, %v4241_v7  ;;  %4415 = vadd.xlane.f32.xlu0 %v4405_v42 }
0x1c1f   : > { %v6112_v0 = vpop.f32.mrf.mxu1 }
0x1c20   : > { %v6113_v63 = vadd.f32 %v6112_v0, %v6111_v38  ;;  %v4406_v47 = vadd.f32 %v4384_v45, %v8728_v26 }
0x1c21   : > { %v6114_v13 = vpop.f32.mrf.mxu1 }
0x1c22   : > { %v4389_v41 = vadd.f32 %v6113_v63, %v4241_v7  ;;  %4417 = vadd.xlane.f32.xlu1 %v4406_v47 }
0x1c23   : > { %v6115_v46 = vpop.f32.mrf.mxu1 }
0x1c24   : > { %v6116_v52 = vadd.f32 %v6115_v46, %v6114_v13  ;;  %v4407_v19 = vadd.f32 %v4389_v41, %v8745_v48 }
0x1c26   : > { %v4392_v55 = vadd.f32 %v6116_v52, %v4241_v7  ;;  %4419 = vadd.xlane.f32.xlu0 %v4407_v19 }
0x1c28   : > { %v4408_v28 = vadd.f32 %v4392_v55, %v8741_v36 }
0x1c2a   : > { %4421 = vadd.xlane.f32.xlu1 %v4408_v28 }
0x1c95   : > { %v6117_v35 = vpop.f32.mrf.mxu1 }
0x1c97   : > { %v6118_v51 = vpop.f32.mrf.mxu1 }
0x1c98   : > { %v6119_v14 = vadd.f32 %v6118_v51, %v6117_v35 }
0x1c99   : > { %v6120_v23 = vpop.f32.mrf.mxu1 }
0x1c9a   : > { %v4397_v5 = vadd.f32 %v6119_v14, %v4241_v7 }
0x1c9b   : > { %v6121_v32 = vpop.f32.mrf.mxu1 }
0x1c9c   : > { %v6122_v27 = vadd.f32 %v6121_v32, %v6120_v23  ;;  %v4409_v26 = vadd.f32 %v4397_v5, %v8767_v61 }
0x1c9e   : > { %v4400_v9 = vadd.f32 %v6122_v27, %v4241_v7  ;;  %4423 = vadd.xlane.f32.xlu0 %v4409_v26 }
0x1c9f   : > { %v4412_v56 = vpop.xlane.xlu0 %4411 }
0x1ca0   : > { %v4427_v58 = vmul.f32 0.0078125, %v4412_v56  ;;  %v4410_v48 = vadd.f32 %v4400_v9, %v8770_v16 }
0x1ca2   : > { %v4435_v29 = vsub.f32 %v4403_v50, %v4427_v58  ;;  %4425 = vadd.xlane.f32.xlu1 %v4410_v48 }
0x1ca3   : > { %v4414_v37 = vpop.xlane.xlu1 %4413 }
0x1ca4   : > { %v4428_v36 = vmul.f32 0.0078125, %v4414_v37  ;;  %v4443_v44 = vmul.f32 %v4435_v29, %v4435_v29 }
0x1ca6   : > { %v8787_v3 = vsub.f32 %v4404_v34, %v4428_v36  ;;  %4451 = vadd.xlane.f32.xlu0 %v4443_v44 }
0x1ca7   : > { %v4416_v24 = vpop.xlane.xlu0 %4415 }
0x1ca8   : > { %v4429_v53 = vmul.f32 0.0078125, %v4416_v24  ;;  %v4444_v6 = vmul.f32 %v8787_v3, %v8787_v3 }
0x1caa   : > { %v8791_v61 = vsub.f32 %v4405_v42, %v4429_v53  ;;  %4453 = vadd.xlane.f32.xlu1 %v4444_v6 }
0x1cab   : > { %v4418_v4 = vpop.xlane.xlu1 %4417 }
0x1cac   : > { %v4430_v43 = vmul.f32 0.0078125, %v4418_v4  ;;  %v4445_v16 = vmul.f32 %v8791_v61, %v8791_v61 }
0x1cae   : > { %v8795_v8 = vsub.f32 %v4406_v47, %v4430_v43  ;;  %4455 = vadd.xlane.f32.xlu0 %v4445_v16  ;;  %v4501_v47 = vsub.s32 6, %v8041_v54 }
0x1caf   : > { %v4420_v40 = vpop.xlane.xlu0 %4419 }
0x1cb0   : > { %v4431_v39 = vmul.f32 0.0078125, %v4420_v40  ;;  %v4446_v59 = vmul.f32 %v8795_v8, %v8795_v8  ;;  %v4502_v52 = vrot.slane %v8697_v18, %v4501_v47 }
0x1cb2   : > { %v8799_v1 = vsub.f32 %v4407_v19, %v4431_v39  ;;  %4457 = vadd.xlane.f32.xlu1 %v4446_v59 }
0x1cb3   : > { %v4422_v17 = vpop.xlane.xlu1 %4421 }
0x1cb4   : > { %v4432_v7 = vmul.f32 0.0078125, %v4422_v17  ;;  %v4447_v21 = vmul.f32 %v8799_v1, %v8799_v1 }
0x1cb6   : > { %v8803_v25 = vsub.f32 %v4408_v28, %v4432_v7  ;;  %4459 = vadd.xlane.f32.xlu0 %v4447_v21  ;;  %v4514_v28 = vrot.slane %v8705_v20, %v4501_v47 }
0x1cb8   : > { %v4448_v15 = vmul.f32 %v8803_v25, %v8803_v25 }
0x1cba   : > { %4461 = vadd.xlane.f32.xlu1 %v4448_v15 }
0x1d27   : > { %v4424_v11 = vpop.xlane.xlu0 %4423 }
0x1d28   : > { %v4433_v22 = vmul.f32 0.0078125, %v4424_v11 }
0x1d2a   : > { %v8807_v10 = vsub.f32 %v4409_v26, %v4433_v22 }
0x1d2b   : > { %v4426_v50 = vpop.xlane.xlu1 %4425 }
0x1d2c   : > { %v4434_v49 = vmul.f32 0.0078125, %v4426_v50  ;;  %v4449_v2 = vmul.f32 %v8807_v10, %v8807_v10 }
0x1d2e   : > { %v8811_v33 = vsub.f32 %v4410_v48, %v4434_v49  ;;  %4463 = vadd.xlane.f32.xlu0 %v4449_v2 }
0x1d2f   : > { %v4452_v31 = vpop.xlane.xlu0 %4451 }
0x1d30   : > { %v4467_v34 = vmul.f32 0.0078125, %v4452_v31  ;;  %v4450_v30 = vmul.f32 %v8811_v33, %v8811_v33 }
0x1d32   : > { %v4475_v60 = vadd.f32 1e-05, %v4467_v34  ;;  %4465 = vadd.xlane.f32.xlu1 %v4450_v30 }
0x1d33   : > { %v4454_v62 = vpop.xlane.xlu1 %4453 }
0x1d34   : > { %7000 = vrsqrt.f32 %v4475_v60  ;;  %v4468_v12 = vmul.f32 0.0078125, %v4454_v62 }
0x1d36   : > { %v4476_v42 = vadd.f32 1e-05, %v4468_v12 }
0x1d37   : > { %v4456_v38 = vpop.xlane.xlu0 %4455 }
0x1d38   : > { %7002 = vrsqrt.f32 %v4476_v42  ;;  %v4469_v45 = vmul.f32 0.0078125, %v4456_v38 }
0x1d3a   : > { %v4477_v0 = vadd.f32 1e-05, %v4469_v45 }
0x1d3b   : > { %v4458_v63 = vpop.xlane.xlu1 %4457 }
0x1d3c   : > { %7004 = vrsqrt.f32 %v4477_v0  ;;  %v4470_v13 = vmul.f32 0.0078125, %v4458_v63 }
0x1d3e   : > { %v4478_v41 = vadd.f32 1e-05, %v4470_v13 }
0x1d3f   : > { %v4460_v46 = vpop.xlane.xlu0 %4459 }
0x1d40   : > { %7006 = vrsqrt.f32 %v4478_v41  ;;  %v4471_v19 = vmul.f32 0.0078125, %v4460_v46 }
0x1d41   : > { %v7001_v55 = vpop.eup %7000 }
0x1d42   : > { %v4491_v35 = vmul.f32 %v7001_v55, %v4435_v29  ;;  %v4479_v51 = vadd.f32 1e-05, %v4471_v19 }
0x1d43   : > { %v4462_v14 = vpop.xlane.xlu1 %4461 }
0x1d44   : > { %v4503_v23 = vmul.f32 %v4502_v52, %v4491_v35  ;;  %7008 = vrsqrt.f32 %v4479_v51  ;;  %v4472_v5 = vmul.f32 0.0078125, %v4462_v14 }
0x1d45   : > { %v7003_v32 = vpop.eup %7002 }
0x1d46   : > { %v8818_v27 = vadd.f32 %v4514_v28, %v4503_v23  ;;  %v4492_v26 = vmul.f32 %v7003_v32, %v8787_v3  ;;  %v4480_v9 = vadd.f32 1e-05, %v4472_v5 }
0x1d48   : > { %v4504_v56 = vmul.f32 %v4502_v52, %v4492_v26  ;;  %7010 = vrsqrt.f32 %v4480_v9 }
0x1d49   : > { %v7005_v18 = vpop.eup %7004 }
0x1d4a   : > { %v8821_v58 = vadd.f32 %v4514_v28, %v4504_v56  ;;  %v4493_v20 = vmul.f32 %v7005_v18, %v8791_v61 }
0x1d4c   : > { %v4505_v48 = vmul.f32 %v4502_v52, %v4493_v20 }
0x1d4d   : > { %v7007_v29 = vpop.eup %7006 }
0x1d4e   : > { %v8824_v37 = vadd.f32 %v4514_v28, %v4505_v48  ;;  %v4494_v36 = vmul.f32 %v7007_v29, %v8795_v8 }
0x1d50   : > { %v4506_v44 = vmul.f32 %v4502_v52, %v4494_v36 }
0x1d51   : > { %v7009_v24 = vpop.eup %7008 }
0x1d52   : > { %v8827_v53 = vadd.f32 %v4514_v28, %v4506_v44  ;;  %v4495_v3 = vmul.f32 %v7009_v24, %v8799_v1 }
0x1d54   : > { %v4507_v6 = vmul.f32 %v4502_v52, %v4495_v3 }
0x1d55   : > { %v7011_v4 = vpop.eup %7010 }
0x1d56   : > { %v8831_v43 = vadd.f32 %v4514_v28, %v4507_v6  ;;  %v4496_v16 = vmul.f32 %v7011_v4, %v8803_v25 }
0x1d58   : > { %v4508_v61 = vmul.f32 %v4502_v52, %v4496_v16 }
0x1d5a   : > { %v8834_v40 = vadd.f32 %v4514_v28, %v4508_v61 }
0x1db7   : > { %v4464_v39 = vpop.xlane.xlu0 %4463 }
0x1db8   : > { %v4473_v59 = vmul.f32 0.0078125, %v4464_v39 }
0x1dba   : > { %v4481_v17 = vadd.f32 1e-05, %v4473_v59 }
0x1dbb   : > { %v4466_v8 = vpop.xlane.xlu1 %4465 }
0x1dbc   : > { %7012 = vrsqrt.f32 %v4481_v17  ;;  %v4474_v7 = vmul.f32 0.0078125, %v4466_v8 }
0x1dbe   : > { %v4482_v21 = vadd.f32 1e-05, %v4474_v7 }
0x1dc0   : > { %7014 = vrsqrt.f32 %v4482_v21 }
0x1dc9   : > { %v7013_v15 = vpop.eup %7012 }
0x1dca   : > { %v4497_v1 = vmul.f32 %v7013_v15, %v8807_v10 }
0x1dcc   : > { %v4509_v11 = vmul.f32 %v4502_v52, %v4497_v1 }
0x1dcd   : > { %v7015_v22 = vpop.eup %7014 }
0x1dce   : > { %v8837_v50 = vadd.f32 %v4514_v28, %v4509_v11  ;;  %v4498_v25 = vmul.f32 %v7015_v22, %v8811_v33  ;;  %4526 = sbr.rel (%p5775_p0) target bundleno = 7928 (0x1ef8), region = 104 }
0x1dd0   : > { %v4510_v49 = vmul.f32 %v4502_v52, %v4498_v25 }
0x1dd2   : > { %v8840_v2 = vadd.f32 %v4514_v28, %v4510_v49 }
0x1dd3   : > { %v7034_v10 = vld [vmem:[%s7986_s7 + $0x78] sm:$0xff]   ;;  %v4735_v31 = vpack.c.bf16 %v8821_v58, %v8818_v27  ;;  %v7036_v33 = vld [vmem:[%s7986_s7 + $0x70] sm:$0xff]   ;;  %v7038_v60 = vld [vmem:[%s7986_s7 + $0x68] sm:$0xff]   ;;  %v4640_v12 = vrot.slane %v8818_v27, 7  ;;  %v4641_v42 = vrot.slane %v8821_v58, 7  ;;  %vm4648_vm3 = vcmp.lt.s32.totalorder %v8041_v54, 1 }
0x1dd4   : > { %v7035_v34 = vld [vmem:[%s7986_s7 + $0x38] sm:$0xff]   ;;  %6503 = vmatprep.subr.bf16.mxu0 %v7034_v10  ;;  %v7037_v30 = vld [vmem:[%s7986_s7 + $0x30] sm:$0xff]   ;;  %v7039_v62 = vld [vmem:[%s7986_s7 + $0x28] sm:$0xff]   ;;  %v4647_v38 = vrot.slane %v8840_v2, 7  ;;  %v4540_v0 = vand.u32 15, %v8041_v54  ;;  %vm7531_vm5 = vmmov 1   ;;  %v4736_v24 = vpack.c.bf16 %v8827_v53, %v8824_v37 }
0x1dd5   : > { %6519 = vmatprep.mubr.bf16.mxu0 %v4735_v31  ;;  %6527 = vmatprep.subr.bf16.mxu1 %v7035_v34  ;;  %v7040_v45 = vld [vmem:[%s7986_s7 + $0x60] sm:$0xff]   ;;  %v4655_v47 = vsel %vm4648_vm3, %v4640_v12, %v4641_v42  ;;  %v7042_v41 = vld [vmem:[%s7986_s7 + $0x58] sm:$0xff]   ;;  %v7044_v19 = vld [vmem:[%s7986_s7 + $0x50] sm:$0xff]   ;;  %v4530_v51 = vadd.s32 16, %v8041_v54  ;;  %v4642_v14 = vrot.slane %v8824_v37, 7  ;;  %v4643_v23 = vrot.slane %v8827_v53, 7 }
0x1dd6   : > { %6504 = vmatpush3.bf16.msra.mxu0 %v7034_v10  ;;  %6528 = vmatpush3.bf16.msra.mxu1 %v7035_v34  ;;  %v7041_v63 = vld [vmem:[%s7986_s7 + $0x20] sm:$0xff]   ;;  %v4656_v13 = vsel %vm4648_vm3, %v4647_v38, %v4640_v12  ;;  %vm5948_vm4 = vcmp.ne.s32.totalorder %v4540_v0, 0  ;;  %v7043_v46 = vld [vmem:[%s7986_s7 + $0x18] sm:$0xff]   ;;  %v7045_v55 = vld [vmem:[%s7986_s7 + $0x10] sm:$0xff]   ;;  %v4532_v32 = vadd.s32 32, %v8041_v54  ;;  %v4644_v56 = vrot.slane %v8831_v43, 7 }
0x1dd7   : > { %6505 = vmatprep.subr.bf16.mxu0 %v7036_v33  ;;  %6529 = vmatprep.subr.bf16.mxu1 %v7037_v30  ;;  %v5810_v52 = vpack.c.bf16 %v4655_v47, %v4656_v13  ;;  %vm5809_vm6 = vmpackc.low %vm7531_vm5, %vm5948_vm4  ;;  %v7046_v28 = vld [vmem:[%s7986_s7 + $0x48] sm:$0xff]   ;;  %v7048_v5 = vld [vmem:[%s7986_s7 + $0x40] sm:$0xff]   ;;  %v4554_v9 = vand.u32 15, %v4530_v51  ;;  %v4645_v18 = vrot.slane %v8834_v40, 7  ;;  %v4653_v20 = vsel %vm4648_vm3, %v4642_v14, %v4643_v23 }
0x1dd8   : > { %v7047_v35 = vld [vmem:[%s7986_s7 + $0x8] sm:$0xff]   ;;  %v7049_v26 = vld [vmem:[%s7986_s7] sm:$0xff]   ;;  %v4654_v48 = vsel %vm4648_vm3, %v4641_v42, %v4642_v14  ;;  %v7050_v29 = vld [vmem:[%s7986_s7 + $0xb8] sm:$0xff]   ;;  %v4568_v36 = vand.u32 15, %v4532_v32  ;;  %v4534_v44 = vadd.s32 48, %v8041_v54  ;;  %v4529_v3 = vadd.s32 8, %v8041_v54 }
0x1dd9   : > { %6543 = vmatprep.mubr.msk.bf16.mxu1 %vm5809_vm6, %v5810_v52  ;;  %vm5949_vm7 = vcmp.ne.s32.totalorder %v4554_v9, 0  ;;  %v5814_v6 = vpack.c.bf16 %v4653_v20, %v4654_v48  ;;  %v4651_v4 = vsel %vm4648_vm3, %v4644_v56, %v4645_v18  ;;  %v4652_v16 = vsel %vm4648_vm3, %v4643_v23, %v4644_v56  ;;  %v7051_v61 = vld [vmem:[%s7986_s7 + $0xb0] sm:$0xff]   ;;  %v7052_v10 = vld [vmem:[%s7986_s7 + $0xa8] sm:$0xff]   ;;  %v7054_v47 = vld [vmem:[%s7986_s7 + $0x98] sm:$0xff]  }
0x1dda   : > { %6506 = vmatpush3.bf16.msra.mxu0 %v7036_v33  ;;  %6530 = vmatpush3.bf16.msra.mxu1 %v7037_v30  ;;  %vm5813_vm8 = vmpackc.low %vm7531_vm5, %vm5949_vm7  ;;  %vm5950_vm9 = vcmp.ne.s32.totalorder %v4568_v36, 0  ;;  %v4646_v39 = vrot.slane %v8837_v50, 7  ;;  %v4533_v59 = vadd.s32 40, %v8041_v54  ;;  %v4737_v17 = vpack.c.bf16 %v8834_v40, %v8831_v43  ;;  %v7055_v13 = vld [vmem:[%s7986_s7 + $0x90] sm:$0xff]  }
0x1ddb   : > { %6507 = vmatprep.subr.bf16.mxu0 %v7038_v60  ;;  %6531 = vmatprep.subr.bf16.mxu1 %v7039_v62  ;;  %v4582_v8 = vand.u32 15, %v4534_v44  ;;  %v4673_v7 = vrot.slane %v8818_v27, 1  ;;  %v5818_v21 = vpack.c.bf16 %v4651_v4, %v4652_v16  ;;  %v4547_v15 = vand.u32 15, %v4529_v3  ;;  %vm5817_vm10 = vmpackc.low %vm7531_vm5, %vm5950_vm9 }
0x1ddc   : > { %v4674_v1 = vrot.slane %v8821_v58, 1  ;;  %v4675_v11 = vrot.slane %v8824_v37, 1  ;;  %vm4681_vm11 = vcmp.lt.s32.totalorder %v8041_v54, 7  ;;  %v4677_v22 = vrot.slane %v8831_v43, 1 }
0x1ddd   : > { %v4678_v25 = vrot.slane %v8834_v40, 1  ;;  %v4679_v49 = vrot.slane %v8837_v50, 1  ;;  %v4649_v31 = vsel %vm4648_vm3, %v4646_v39, %v4647_v38  ;;  %v4650_v34 = vsel %vm4648_vm3, %v4645_v18, %v4646_v39 }
0x1dde   : > { %6508 = vmatpush3.bf16.msra.mxu0 %v7038_v60  ;;  %6532 = vmatpush3.bf16.msra.mxu1 %v7039_v62  ;;  %v4575_v33 = vand.u32 15, %v4533_v59  ;;  %vm5951_vm12 = vcmp.ne.s32.totalorder %v4582_v8, 0  ;;  %v4738_v30 = vpack.c.bf16 %v8840_v2, %v8837_v50  ;;  %v4687_v60 = vsel %vm4681_vm11, %v4674_v1, %v4675_v11 }
0x1ddf   : > { %6509 = vmatprep.subr.bf16.mxu0 %v7040_v45  ;;  %6533 = vmatprep.subr.bf16.mxu1 %v7041_v63  ;;  %v4688_v62 = vsel %vm4681_vm11, %v4673_v7, %v4674_v1  ;;  %v5822_v12 = vpack.c.bf16 %v4649_v31, %v4650_v34  ;;  %vm5952_vm13 = vcmp.ne.s32.totalorder %v4547_v15, 15  ;;  %v4683_v42 = vsel %vm4681_vm11, %v4678_v25, %v4679_v49  ;;  %vm5821_vm14 = vmpackc.low %vm7531_vm5, %vm5951_vm12 }
0x1de0   : > { %v4684_v38 = vsel %vm4681_vm11, %v4677_v22, %v4678_v25  ;;  %vm5954_vm15 = vcmp.ne.s32.totalorder %v4575_v33, 15  ;;  %v5850_v0 = vpack.c.bf16 %v4687_v60, %v4688_v62  ;;  %vm5849_vm0 = vmpackc.low %vm5952_vm13, %vm7531_vm5  ;;  %v4535_v52 = vadd.s32 56, %v8041_v54 }
0x1de1   : > { %vm5857_vm1 = vmpackc.low %vm5954_vm15, %vm7531_vm5  ;;  %v5109_v59 = vsub.s32 7, %v8041_v54 }
0x1de2   : > { %6510 = vmatpush3.bf16.msra.mxu0 %v7040_v45  ;;  %6534 = vmatpush3.bf16.msra.mxu1 %v7041_v63  ;;  %v7053_v45 = vld [vmem:[%s7986_s7 + $0xa0] sm:$0xff]   ;;  %v5858_v63 = vpack.c.bf16 %v4683_v42, %v4684_v38  ;;  %v4589_v51 = vand.u32 15, %v4535_v52 }
0x1de3   : > { %6511 = vmatprep.subr.bf16.mxu0 %v7042_v41  ;;  %6535 = vmatprep.subr.bf16.mxu1 %v7043_v46 }
0x1de4   : > { %vm5955_vm3 = vcmp.ne.s32.totalorder %v4589_v51, 15 }
0x1de5   : > { %vm5861_vm6 = vmpackc.low %vm5955_vm3, %vm7531_vm5 }
0x1de6   : > { %6512 = vmatpush3.bf16.msra.mxu0 %v7042_v41  ;;  %6536 = vmatpush3.bf16.msra.mxu1 %v7043_v46  ;;  %v7056_v41 = vld [vmem:[%s7986_s7 + $0x88] sm:$0xff]   ;;  %v4531_v46 = vadd.s32 24, %v8041_v54 }
0x1de7   : > { %6513 = vmatprep.subr.bf16.mxu0 %v7044_v19  ;;  %6537 = vmatprep.subr.bf16.mxu1 %v7045_v55 }
0x1dea   : > { %6514 = vmatpush3.bf16.msra.mxu0 %v7044_v19  ;;  %6538 = vmatpush3.bf16.msra.mxu1 %v7045_v55  ;;  %v4676_v19 = vrot.slane %v8827_v53, 1  ;;  %v7057_v55 = vld [vmem:[%s7986_s7 + $0x80] sm:$0xff]  }
0x1deb   : > { %6515 = vmatprep.subr.bf16.mxu0 %v7046_v28  ;;  %6539 = vmatprep.subr.bf16.mxu1 %v7047_v35 }
0x1dec   : > { %v4686_v14 = vsel %vm4681_vm11, %v4675_v11, %v4676_v19  ;;  %v4685_v23 = vsel %vm4681_vm11, %v4676_v19, %v4677_v22 }
0x1dee   : > { %6516 = vmatpush3.bf16.msra.mxu0 %v7046_v28  ;;  %6540 = vmatpush3.bf16.msra.mxu1 %v7047_v35  ;;  %v4680_v28 = vrot.slane %v8840_v2, 1  ;;  %v4561_v35 = vand.u32 15, %v4531_v46 }
0x1def   : > { %6517 = vmatprep.subr.bf16.mxu0 %v7048_v5  ;;  %6541 = vmatprep.subr.bf16.mxu1 %v7049_v26 }
0x1df0   : > { %v4682_v32 = vsel %vm4681_vm11, %v4679_v49, %v4680_v28  ;;  %vm5953_vm2 = vcmp.ne.s32.totalorder %v4561_v35, 15 }
0x1df1   : > { %vm5853_vm4 = vmpackc.low %vm5953_vm2, %vm7531_vm5 }
0x1df2   : > { %6518 = vmatpush3.bf16.msra.mxu0 %v7048_v5  ;;  %6542 = vmatpush3.bf16.msra.mxu1 %v7049_v26  ;;  %v4689_v5 = vsel %vm4681_vm11, %v4680_v28, %v4673_v7  ;;  %v5854_v26 = vpack.c.bf16 %v4685_v23, %v4686_v14 }
0x1df3   : > { %6551 = vmatprep.subr.bf16.mxu0 %v7050_v29  ;;  %6575 = vmatprep.subr.bf16.mxu1 %v7050_v29  ;;  %v5862_v9 = vpack.c.bf16 %v4689_v5, %v4682_v32 }
0x1df5   : > { %6520 = vmatmul.mubr.bf16.vlgmr.msra.gmra.mxu0 %v4736_v24  ;;  %6544 = vmatmul.mubr.msk.bf16.vlgmr.msra.gmra.mxu1 %vm5813_vm8, %v5814_v6 }
0x1df6   : > { %6552 = vmatpush3.bf16.msra.mxu0 %v7050_v29  ;;  %6583 = vmatpush3.bf16.msra.mxu1 %v7050_v29 }
0x1df7   : > { %6553 = vmatprep.subr.bf16.mxu0 %v7051_v61  ;;  %6576 = vmatprep.subr.bf16.mxu1 %v7051_v61 }
0x1df8   : > { %6523 = vmatprep.mubr.bf16.mxu0 %v4737_v17  ;;  %6547 = vmatprep.mubr.msk.bf16.mxu1 %vm5817_vm10, %v5818_v21  ;;  %v5110_v21 = vrot.slane %v8046_v57, %v5109_v59 }
0x1dfa   : > { %6554 = vmatpush3.bf16.msra.mxu0 %v7051_v61  ;;  %6584 = vmatpush3.bf16.msra.mxu1 %v7051_v61 }
0x1dfb   : > { %6555 = vmatprep.subr.bf16.mxu0 %v7052_v10  ;;  %6577 = vmatprep.subr.bf16.mxu1 %v7052_v10 }
0x1dfd   : > { %6524 = vmatmul.mubr.bf16.gmra.mxu0 %v4738_v30  ;;  %6548 = vmatmul.mubr.msk.bf16.gmra.mxu1 %vm5821_vm14, %v5822_v12 }
0x1dfe   : > { %6556 = vmatpush3.bf16.msra.mxu0 %v7052_v10  ;;  %6585 = vmatpush3.bf16.msra.mxu1 %v7052_v10 }
0x1dff   : > { %6557 = vmatprep.subr.bf16.mxu0 %v7053_v45  ;;  %6578 = vmatprep.subr.bf16.mxu1 %v7053_v45 }
0x1e00   : > { %6567 = vmatprep.mubr.msk.bf16.mxu0 %vm5849_vm0, %v5850_v0  ;;  %6571 = vmatprep.mubr.msk.bf16.mxu1 %vm5857_vm1, %v5858_v63 }
0x1e02   : > { %6558 = vmatpush3.bf16.msra.mxu0 %v7053_v45  ;;  %6586 = vmatpush3.bf16.msra.mxu1 %v7053_v45 }
0x1e03   : > { %6559 = vmatprep.subr.bf16.mxu0 %v7054_v47  ;;  %6579 = vmatprep.subr.bf16.mxu1 %v7054_v47 }
0x1e06   : > { %6560 = vmatpush3.bf16.msra.mxu0 %v7054_v47  ;;  %6587 = vmatpush3.bf16.msra.mxu1 %v7054_v47 }
0x1e07   : > { %6561 = vmatprep.subr.bf16.mxu0 %v7055_v13  ;;  %6580 = vmatprep.subr.bf16.mxu1 %v7055_v13 }
0x1e0a   : > { %6562 = vmatpush3.bf16.msra.mxu0 %v7055_v13  ;;  %6588 = vmatpush3.bf16.msra.mxu1 %v7055_v13 }
0x1e0b   : > { %6563 = vmatprep.subr.bf16.mxu0 %v7056_v41  ;;  %6581 = vmatprep.subr.bf16.mxu1 %v7056_v41 }
0x1e0e   : > { %6564 = vmatpush3.bf16.msra.mxu0 %v7056_v41  ;;  %6589 = vmatpush3.bf16.msra.mxu1 %v7056_v41 }
0x1e0f   : > { %6565 = vmatprep.subr.bf16.mxu0 %v7057_v55  ;;  %6582 = vmatprep.subr.bf16.mxu1 %v7057_v55 }
0x1e12   : > { %6566 = vmatpush3.bf16.msra.mxu0 %v7057_v55  ;;  %6590 = vmatpush3.bf16.msra.mxu1 %v7057_v55 }
0x1e15   : > { %6568 = vmatmul.mubr.msk.bf16.vlgmr.msra.gmra.mxu0 %vm5853_vm4, %v5854_v26  ;;  %6572 = vmatmul.mubr.msk.bf16.vlgmr.msra.gmra.mxu1 %vm5861_vm6, %v5862_v9 }
0x1eb5   : > { %v6521_v56 = vpop.f32.mrf.mxu0  ;;  %v6545_v18 = vpop.f32.mrf.mxu1 }
0x1eb6   : > { %v4943_v8 = vadd.f32 %v6545_v18, %v6521_v56 }
0x1eb7   : > { %v4821_v20 = vpop.f32.mrf.mxu0  ;;  %v4934_v48 = vpop.f32.mrf.mxu1 }
0x1eb8   : > { %v4935_v11 = vadd.f32 %v4934_v48, %v4821_v20 }
0x1eb9   : > { %v6522_v29 = vpop.f32.mrf.mxu0  ;;  %v6546_v36 = vpop.f32.mrf.mxu1 }
0x1eba   : > { %v4946_v34 = vadd.f32 %v6546_v36, %v6522_v29 }
0x1ebb   : > { %v4824_v44 = vpop.f32.mrf.mxu0  ;;  %v4937_v24 = vpop.f32.mrf.mxu1 }
0x1ebc   : > { %v4938_v19 = vadd.f32 %v4937_v24, %v4824_v44 }
0x1ebd   : > { %v6525_v3 = vpop.f32.mrf.mxu0  ;;  %v6549_v6 = vpop.f32.mrf.mxu1 }
0x1ebe   : > { %v4959_v15 = vadd.f32 %v6549_v6, %v6525_v3 }
0x1ebf   : > { %v4837_v4 = vpop.f32.mrf.mxu0  ;;  %v4950_v16 = vpop.f32.mrf.mxu1 }
0x1ec0   : > { %v4951_v49 = vadd.f32 %v4950_v16, %v4837_v4 }
0x1ec1   : > { %v6526_v61 = vpop.f32.mrf.mxu0  ;;  %v6550_v39 = vpop.f32.mrf.mxu1 }
0x1ec2   : > { %v4962_v62 = vadd.f32 %v6550_v39, %v6526_v61 }
0x1ec3   : > { %v4840_v17 = vpop.f32.mrf.mxu0  ;;  %v4953_v7 = vpop.f32.mrf.mxu1 }
0x1ec4   : > { %v4954_v23 = vadd.f32 %v4953_v7, %v4840_v17 }
0x1ed5   : > { %v6569_v1 = vpop.f32.mrf.mxu0  ;;  %v6573_v25 = vpop.f32.mrf.mxu1 }
0x1ed6   : > { %v5101_v22 = vadd.f32 %v6569_v1, %v4943_v8  ;;  %v5105_v10 = vadd.f32 %v6573_v25, %v4959_v15 }
0x1ed7   : > { %v5068_v31 = vpop.f32.mrf.mxu0  ;;  %v5084_v60 = vpop.f32.mrf.mxu1 }
0x1ed8   : > { %v5113_v33 = vadd.f32 %v5110_v21, %v5101_v22  ;;  %v5099_v30 = vadd.f32 %v5068_v31, %v4935_v11  ;;  %v5117_v12 = vadd.f32 %v5110_v21, %v5105_v10  ;;  %v5103_v54 = vadd.f32 %v5084_v60, %v4951_v49 }
0x1ed9   : > { %v6570_v42 = vpop.f32.mrf.mxu0  ;;  %v6574_v57 = vpop.f32.mrf.mxu1 }
0x1eda   : > { %v5129_v38 = vmin.f32 %v5113_v33, 0.0  ;;  %v5111_v45 = vadd.f32 %v5110_v21, %v5099_v30  ;;  %v5102_v0 = vadd.f32 %v6570_v42, %v4946_v34  ;;  %v5133_v63 = vmin.f32 %v5117_v12, 0.0 }
0x1edb   : > { %v5115_v47 = vadd.f32 %v5110_v21, %v5103_v54  ;;  %v5106_v13 = vadd.f32 %v6574_v57, %v4962_v62  ;;  %v5071_v51 = vpop.f32.mrf.mxu0  ;;  %v5087_v14 = vpop.f32.mrf.mxu1  ;;  %vm5121_vm5 = vcmp.gt.f32.partialorder %v5113_v33, 0.0  ;;  %vm5125_vm7 = vcmp.gt.f32.partialorder %v5117_v12, 0.0 }
0x1edc   : > { %v5139_v41 = vmul.f32 1.442695, %v5129_v38  ;;  %v5127_v46 = vmin.f32 %v5111_v45, 0.0  ;;  %v5114_v52 = vadd.f32 %v5110_v21, %v5102_v0  ;;  %v5147_v55 = vmul.f32 1.442695, %v5133_v63 }
0x1edd   : > { %v5131_v28 = vmin.f32 %v5115_v47, 0.0  ;;  %v5118_v35 = vadd.f32 %v5110_v21, %v5106_v13  ;;  %v5100_v18 = vadd.f32 %v5071_v51, %v4938_v19  ;;  %v5104_v20 = vadd.f32 %v5087_v14, %v4954_v23 }
0x1ede   : > { %7058 = vpow2.f32 %v5139_v41  ;;  %v5135_v5 = vmul.f32 1.442695, %v5127_v46  ;;  %v5130_v32 = vmin.f32 %v5114_v52, 0.0  ;;  %vm5119_vm8 = vcmp.gt.f32.partialorder %v5111_v45, 0.0 }
0x1edf   : > { %7060 = vpow2.f32 %v5147_v55  ;;  %v5143_v26 = vmul.f32 1.442695, %v5131_v28  ;;  %v5134_v9 = vmin.f32 %v5118_v35, 0.0  ;;  %v5112_v29 = vadd.f32 %v5110_v21, %v5100_v18 }
0x1ee0   : > { %7062 = vpow2.f32 %v5135_v5  ;;  %v5141_v56 = vmul.f32 1.442695, %v5130_v32  ;;  %v5116_v36 = vadd.f32 %v5110_v21, %v5104_v20  ;;  %vm5123_vm9 = vcmp.gt.f32.partialorder %v5115_v47, 0.0 }
0x1ee1   : > { %7064 = vpow2.f32 %v5143_v26  ;;  %v5149_v48 = vmul.f32 1.442695, %v5134_v9  ;;  %v5128_v44 = vmin.f32 %v5112_v29, 0.0  ;;  %vm5122_vm10 = vcmp.gt.f32.partialorder %v5114_v52, 0.0 }
0x1ee2   : > { %7066 = vpow2.f32 %v5141_v56  ;;  %v5132_v24 = vmin.f32 %v5116_v36, 0.0  ;;  %vm5126_vm11 = vcmp.gt.f32.partialorder %v5118_v35, 0.0  ;;  %vm5120_vm12 = vcmp.gt.f32.partialorder %v5112_v29, 0.0 }
0x1ee3   : > { %7068 = vpow2.f32 %v5149_v48  ;;  %v5137_v3 = vmul.f32 1.442695, %v5128_v44  ;;  %vm5124_vm13 = vcmp.gt.f32.partialorder %v5116_v36, 0.0 }
0x1ee4   : > { %v5145_v6 = vmul.f32 1.442695, %v5132_v24 }
0x1ee5   : > { %7070 = vpow2.f32 %v5137_v3 }
0x1ee6   : > { %7072 = vpow2.f32 %v5145_v6 }
0x1eeb   : > { %v7059_v4 = vpop.eup %7058 }
0x1eec   : > { %v7061_v16 = vpop.eup %7060  ;;  %v5866_v61 = vadd.f32 -1.0, %v7059_v4 }
0x1eed   : > { %v7063_v39 = vpop.eup %7062  ;;  %v5870_v59 = vadd.f32 -1.0, %v7061_v16 }
0x1eee   : > { %v7065_v17 = vpop.eup %7064  ;;  %v5161_v8 = vsel %vm5121_vm5, %v5113_v33, %v5866_v61  ;;  %v5864_v7 = vadd.f32 -1.0, %v7063_v39 }
0x1eef   : > { %v7067_v15 = vpop.eup %7066  ;;  %5169 = vst [vmem:[#allocation2 + $0x18] sm:$0xff] %v5161_v8  ;;  %v5165_v21 = vsel %vm5125_vm7, %v5117_v12, %v5870_v59  ;;  %v5868_v1 = vadd.f32 -1.0, %v7065_v17 }
0x1ef0   : > { %v7069_v11 = vpop.eup %7068  ;;  %5173 = vst [vmem:[#allocation2 + $0x28] sm:$0xff] %v5165_v21  ;;  %v5159_v22 = vsel %vm5119_vm8, %v5111_v45, %v5864_v7  ;;  %v5867_v25 = vadd.f32 -1.0, %v7067_v15 }
0x1ef1   : > { %5167 = vst [vmem:[#allocation2 + $0x30] sm:$0xff] %v5159_v22  ;;  %v5163_v49 = vsel %vm5123_vm9, %v5115_v47, %v5868_v1  ;;  %v5871_v10 = vadd.f32 -1.0, %v7069_v11 }
0x1ef2   : > { %5171 = vst [vmem:[#allocation2 + $0x8] sm:$0xff] %v5163_v49  ;;  %v5162_v31 = vsel %vm5122_vm10, %v5114_v52, %v5867_v25  ;;  %v7071_v33 = vpop.eup %7070 }
0x1ef3   : > { %5170 = vst [vmem:[#allocation2 + $0x10] sm:$0xff] %v5162_v31  ;;  %v5166_v34 = vsel %vm5126_vm11, %v5118_v35, %v5871_v10  ;;  %v7073_v30 = vpop.eup %7072  ;;  %v5865_v60 = vadd.f32 -1.0, %v7071_v33 }
0x1ef4   : > { %5174 = vst [vmem:[#allocation2 + $0x38] sm:$0xff] %v5166_v34  ;;  %v5869_v62 = vadd.f32 -1.0, %v7073_v30 }
0x1ef5   : > { %v5160_v12 = vsel %vm5120_vm12, %v5112_v29, %v5865_v60 }
0x1ef6   : > { %5168 = vst [vmem:[#allocation2] sm:$0xff] %v5160_v12  ;;  %v5164_v54 = vsel %vm5124_vm13, %v5116_v36, %v5869_v62 }
0x1ef7   : > { %5172 = vst [vmem:[#allocation2 + $0x20] sm:$0xff] %v5164_v54 }
0x1ef8 PF: > { %p5176_p4 = pnand %p5775_p0, %p4523_p10 }
0x1efa   : > { %5179 = sbr.rel (%p5176_p4) target bundleno = 7939 (0x1f03), region = 108 }
0x1eff   : > { %5180 = vst [vmem:[#allocation2 + $0x30] sm:$0xff] %v8818_v27  ;;  %5181 = vst [vmem:[#allocation2] sm:$0xff] %v8821_v58 }
0x1f00   : > { %5182 = vst [vmem:[#allocation2 + $0x18] sm:$0xff] %v8824_v37  ;;  %5183 = vst [vmem:[#allocation2 + $0x10] sm:$0xff] %v8827_v53 }
0x1f01   : > { %5184 = vst [vmem:[#allocation2 + $0x8] sm:$0xff] %v8831_v43  ;;  %5185 = vst [vmem:[#allocation2 + $0x20] sm:$0xff] %v8834_v40 }
0x1f02   : > { %5186 = vst [vmem:[#allocation2 + $0x28] sm:$0xff] %v8837_v50  ;;  %5187 = vst [vmem:[#allocation2 + $0x38] sm:$0xff] %v8840_v2 }
0x1f03 PF: > { %s9273_s0 = sld [smem:[#allocation33_spill]] }
0x1f09   : > { %p5872_p3 = scmp.ne.s32.totalorder %s9273_s0, 2 }
0x1f0a   : > { %s9274_s1 = sld [smem:[#allocation59_spill]] (!%p5872_p3) }
0x1f0b   : > { %5191 = sbr.rel (%p5872_p3) target bundleno = 8277 (0x2055), region = 112 }
0x1f10   : > { %5194 = vadd.xlane.f32.xlu0 %v8818_v27  ;;  %5198 = vadd.xlane.f32.xlu1 %v8824_v37  ;;  %v5873_v33 = vld [vmem:[%s9274_s1] ss:$0 sm:$0xff]  ;;  %v5874_v54 = vld [vmem:[%s9274_s1 + $0x1] ss:$0 sm:$0xff] }
0x1f14   : > { %5196 = vadd.xlane.f32.xlu0 %v8821_v58  ;;  %5200 = vadd.xlane.f32.xlu1 %v8827_v53 }
0x1f18   : > { %5202 = vadd.xlane.f32.xlu0 %v8831_v43  ;;  %5204 = vadd.xlane.f32.xlu1 %v8834_v40 }
0x1f1c   : > { %5206 = vadd.xlane.f32.xlu0 %v8837_v50  ;;  %5208 = vadd.xlane.f32.xlu1 %v8840_v2 }
0x1f99   : > { %v5195_v42 = vpop.xlane.xlu0 %5194  ;;  %v5199_v38 = vpop.xlane.xlu1 %5198 }
0x1f9a   : > { %v5210_v45 = vmul.f32 0.0078125, %v5195_v42  ;;  %v5212_v0 = vmul.f32 0.0078125, %v5199_v38 }
0x1f9c   : > { %v8987_v57 = vsub.f32 %v8818_v27, %v5210_v45  ;;  %v8990_v63 = vsub.f32 %v8824_v37, %v5212_v0 }
0x1f9d   : > { %v5197_v47 = vpop.xlane.xlu0 %5196  ;;  %v5201_v13 = vpop.xlane.xlu1 %5200 }
0x1f9e   : > { %v5211_v41 = vmul.f32 0.0078125, %v5197_v47  ;;  %v5226_v46 = vmul.f32 %v8987_v57, %v8987_v57  ;;  %v5213_v52 = vmul.f32 0.0078125, %v5201_v13  ;;  %v5228_v27 = vmul.f32 %v8990_v63, %v8990_v63 }
0x1fa0   : > { %v8995_v19 = vsub.f32 %v8821_v58, %v5211_v41  ;;  %5234 = vadd.xlane.f32.xlu0 %v5226_v46  ;;  %v8998_v55 = vsub.f32 %v8827_v53, %v5213_v52 }
0x1fa1   : > { %v5203_v28 = vpop.xlane.xlu0 %5202  ;;  %v5205_v37 = vpop.xlane.xlu1 %5204 }
0x1fa2   : > { %v5214_v35 = vmul.f32 0.0078125, %v5203_v28  ;;  %v5227_v51 = vmul.f32 %v8995_v19, %v8995_v19  ;;  %v5215_v14 = vmul.f32 0.0078125, %v5205_v37  ;;  %v5229_v53 = vmul.f32 %v8998_v55, %v8998_v55 }
0x1fa4   : > { %v9005_v23 = vsub.f32 %v8831_v43, %v5214_v35  ;;  %5238 = vadd.xlane.f32.xlu0 %v5228_v27  ;;  %5236 = vadd.xlane.f32.xlu1 %v5227_v51  ;;  %v9008_v58 = vsub.f32 %v8834_v40, %v5215_v14 }
0x1fa5   : > { %v5207_v5 = vpop.xlane.xlu0 %5206  ;;  %v5209_v32 = vpop.xlane.xlu1 %5208 }
0x1fa6   : > { %v5216_v26 = vmul.f32 0.0078125, %v5207_v5  ;;  %v5230_v9 = vmul.f32 %v9005_v23, %v9005_v23  ;;  %v5217_v56 = vmul.f32 0.0078125, %v5209_v32  ;;  %v5231_v40 = vmul.f32 %v9008_v58, %v9008_v58 }
0x1fa8   : > { %v9015_v18 = vsub.f32 %v8837_v50, %v5216_v26  ;;  %5240 = vadd.xlane.f32.xlu1 %v5229_v53  ;;  %5242 = vadd.xlane.f32.xlu0 %v5230_v9  ;;  %v9018_v43 = vsub.f32 %v8840_v2, %v5217_v56 }
0x1faa   : > { %v5232_v20 = vmul.f32 %v9015_v18, %v9015_v18  ;;  %v5233_v48 = vmul.f32 %v9018_v43, %v9018_v43 }
0x1fac   : > { %5244 = vadd.xlane.f32.xlu1 %v5231_v40  ;;  %5246 = vadd.xlane.f32.xlu0 %v5232_v20 }
0x1fb0   : > { %5248 = vadd.xlane.f32.xlu1 %v5233_v48 }
0x2029   : > { %v5235_v29 = vpop.xlane.xlu0 %5234 }
0x202a   : > { %v5250_v50 = vmul.f32 0.0078125, %v5235_v29 }
0x202c   : > { %v5258_v36 = vadd.f32 1e-05, %v5250_v50 }
0x202d   : > { %v5237_v44 = vpop.xlane.xlu1 %5236  ;;  %v5239_v24 = vpop.xlane.xlu0 %5238 }
0x202e   : > { %7074 = vrsqrt.f32 %v5258_v36  ;;  %v5251_v2 = vmul.f32 0.0078125, %v5237_v44  ;;  %v5252_v3 = vmul.f32 0.0078125, %v5239_v24 }
0x2030   : > { %v5259_v6 = vadd.f32 1e-05, %v5251_v2  ;;  %v5260_v4 = vadd.f32 1e-05, %v5252_v3 }
0x2031   : > { %v5241_v16 = vpop.xlane.xlu1 %5240  ;;  %v5243_v61 = vpop.xlane.xlu0 %5242 }
0x2032   : > { %7076 = vrsqrt.f32 %v5259_v6  ;;  %v5253_v39 = vmul.f32 0.0078125, %v5241_v16  ;;  %v5254_v59 = vmul.f32 0.0078125, %v5243_v61 }
0x2033   : > { %7078 = vrsqrt.f32 %v5260_v4 }
0x2034   : > { %v5261_v17 = vadd.f32 1e-05, %v5253_v39  ;;  %v5262_v8 = vadd.f32 1e-05, %v5254_v59 }
0x2035   : > { %v5245_v7 = vpop.xlane.xlu1 %5244  ;;  %v5247_v15 = vpop.xlane.xlu0 %5246 }
0x2036   : > { %7080 = vrsqrt.f32 %v5261_v17  ;;  %v5255_v21 = vmul.f32 0.0078125, %v5245_v7  ;;  %v5256_v1 = vmul.f32 0.0078125, %v5247_v15 }
0x2037   : > { %7082 = vrsqrt.f32 %v5262_v8 }
0x2038   : > { %v5263_v11 = vadd.f32 1e-05, %v5255_v21  ;;  %v5264_v22 = vadd.f32 1e-05, %v5256_v1 }
0x2039   : > { %v5249_v25 = vpop.xlane.xlu1 %5248 }
0x203a   : > { %7084 = vrsqrt.f32 %v5263_v11  ;;  %v5257_v49 = vmul.f32 0.0078125, %v5249_v25 }
0x203b   : > { %v7075_v10 = vpop.eup %7074  ;;  %7086 = vrsqrt.f32 %v5264_v22 }
0x203c   : > { %v5274_v31 = vmul.f32 %v7075_v10, %v8987_v57  ;;  %v5265_v34 = vadd.f32 1e-05, %v5257_v49 }
0x203e   : > { %7088 = vrsqrt.f32 %v5265_v34  ;;  %v5286_v62 = vmul.f32 %v5873_v33, %v5274_v31 }
0x203f   : > { %v7077_v30 = vpop.eup %7076 }
0x2040   : > { %v7079_v60 = vpop.eup %7078  ;;  %v5275_v12 = vmul.f32 %v7077_v30, %v8995_v19  ;;  %v5298_v57 = vadd.f32 %v5874_v54, %v5286_v62 }
0x2041   : > { %v5276_v42 = vmul.f32 %v7079_v60, %v8990_v63 }
0x2042   : > { %v5287_v38 = vmul.f32 %v5873_v33, %v5275_v12 }
0x2043   : > { %v7081_v45 = vpop.eup %7080  ;;  %v5288_v13 = vmul.f32 %v5873_v33, %v5276_v42 }
0x2044   : > { %v7083_v0 = vpop.eup %7082  ;;  %v5299_v47 = vadd.f32 %v5874_v54, %v5287_v38  ;;  %v5277_v41 = vmul.f32 %v7081_v45, %v8998_v55 }
0x2045   : > { %v5278_v46 = vmul.f32 %v7083_v0, %v9005_v23  ;;  %v5300_v37 = vadd.f32 %v5874_v54, %v5288_v13 }
0x2046   : > { %v5928_v52 = vpack.c.bf16 %v5299_v47, %v5298_v57  ;;  %v5289_v27 = vmul.f32 %v5873_v33, %v5277_v41 }
0x2047   : > { %v7085_v19 = vpop.eup %7084  ;;  %v5290_v63 = vmul.f32 %v5873_v33, %v5278_v46 }
0x2048   : > { %v7087_v28 = vpop.eup %7086  ;;  %5929 = vst [vmem:[%s7999_s9] sm:$0xff] %v5928_v52   ;;  %v5301_v35 = vadd.f32 %v5874_v54, %v5289_v27  ;;  %v5279_v51 = vmul.f32 %v7085_v19, %v9008_v58 }
0x2049   : > { %v5280_v14 = vmul.f32 %v7087_v28, %v9015_v18  ;;  %v5302_v55 = vadd.f32 %v5874_v54, %v5290_v63 }
0x204a   : > { %v5933_v53 = vpack.c.bf16 %v5301_v35, %v5300_v37  ;;  %v5291_v5 = vmul.f32 %v5873_v33, %v5279_v51 }
0x204b   : > { %v7089_v32 = vpop.eup %7088  ;;  %v5292_v26 = vmul.f32 %v5873_v33, %v5280_v14 }
0x204c   : > { %5956 = vst [vmem:[%s7999_s9 + $0x8] sm:$0xff] %v5933_v53   ;;  %v5303_v23 = vadd.f32 %v5874_v54, %v5291_v5  ;;  %v5281_v9 = vmul.f32 %v7089_v32, %v9018_v43 }
0x204d   : > { %v5304_v20 = vadd.f32 %v5874_v54, %v5292_v26 }
0x204e   : > { %v5938_v56 = vpack.c.bf16 %v5303_v23, %v5302_v55  ;;  %v5293_v40 = vmul.f32 %v5873_v33, %v5281_v9 }
0x2050   : > { %5957 = vst [vmem:[%s7999_s9 + $0x10] sm:$0xff] %v5938_v56   ;;  %v5305_v48 = vadd.f32 %v5874_v54, %v5293_v40 }
0x2052   : > { %v5943_v29 = vpack.c.bf16 %v5305_v48, %v5304_v20 }
0x2054   : > { %5958 = vst [vmem:[%s7999_s9 + $0x18] sm:$0xff] %v5943_v29  }
0x2055 PF: > { %s9275_s27 = sld [smem:[#allocation34_spill]]  ;;  %s5361_s4 = sshll.u32 %s7999_s9, 4  ;;  %s9051_s4 = int_to_ptr.vmem [resolvable:$true] %s5361_s4 }
0x2056   : > { %s9276_s22 = sld [smem:[#allocation38_spill]]  ;;  %s5347_s17 = scalar_lea.sflag [#allocation5], %s7941_s15 }
0x2057   : > { %s9277_s18 = sld [smem:[#allocation60_spill]]  ;;  %s7342_s2 = scalar_lea.vmem %s9051_s4, 512 }
0x2058   : > { %p7343_p12 = scmp.ne.s32.totalorder %s9051_s4, %s7342_s2  ;;  %s7532_s7 = smov [#allocation18]  }
0x2059   : > { %s7346_s8 = sshll.u32 %s7532_s7, 4  ;;  %s7347_s8 = int_to_ptr.vmem [resolvable:$false] %s7346_s8 }
0x205a   : > { %s7348_s20 = scalar_lea.vmem %s7347_s8, 1024  ;;  %p7349_p7 = scmp.lt.s32.totalorder %s9051_s4, %s7347_s8 }
0x205b   : > { %s5908_s12 = sshll.u32 %s9275_s27, 9  ;;  %p7350_p9 = scmp.lt.s32.totalorder %s7348_s20, %s7342_s2 }
0x205c   : > { %p9279_p11 = scmp.ne.s32.totalorder %s9276_s22, 0 }
0x205d   : > { %s9278_s3 = smov %s9277_s18  ;;  %s9048_s26 = scalar_lea.hbm %s9277_s18, %s5908_s12 }
0x205e   : > { %p7344_p13 = pnand %p7343_p12, %p9279_p11  ;;  %p7351_p8 = por %p7350_p9, %p7349_p7 }
0x2060   : > { %p7345_p1 = pneg %p7344_p13 }
0x2062   : > { %p7352_p6 = pnand %p7351_p8, %p7345_p1 }
0x2064   : > { %7355 = shalt.err (!%p7352_p6)
}
0x2065   : > { %s7356_s9 = scalar_lea.hbm %s9048_s26, 512  ;;  %s7360_s16 = scalar_lea.hbm %s9278_s3, 1024 }
0x2066   : > { %p7357_p2 = scmp.ne.s32.totalorder %s9048_s26, %s7356_s9  ;;  %p7361_p0 = scmp.lt.s32.totalorder %s9048_s26, %s9278_s3 }
0x2067   : > { %p7362_p4 = scmp.lt.s32.totalorder %s7360_s16, %s7356_s9 }
0x2068   : > { %p7358_p5 = pnand %p7357_p2, %p9279_p11 }
0x2069   : > { %p7363_p3 = por %p7362_p4, %p7361_p0 }
0x206a   : > { %p7359_p10 = pneg %p7358_p5 }
0x206c   : > { %p7364_p12 = pnand %p7363_p3, %p7359_p10 }
0x206e   : > { %7367 = shalt.err (!%p7364_p12)
}
0x206f   : > { %s7533_s0 = smov 4  }
0x2070   : > { %6612 = dma.vmem_to_hbm [thread:$0]  (%p9279_p11), %s9051_s4, 512, %s9048_s26, %s5347_s17, %s7529_s23, %s7529_s23, %s7533_s0  }
0x2071 PF: > { %s9280_s19 = sld [smem:[#allocation35_spill]] }
0x2072   : > { %s9281_s11 = sld [smem:[#allocation30_spill]] }
0x2073   : > { %s9282_s5 = sld [smem:[#allocation39_spill]] }
0x2077   : > { %p6647_p13 = scmp.ge.s32.totalorder %s9280_s19, 2 }
0x2078   : > { %s5376_s28 = sand.u32 1, %s9281_s11  }
0x2079   : > { %p9283_p1 = scmp.ne.s32.totalorder %s9282_s5, 0  ;;  %s5377_s27 = scalar_lea.sflag [#allocation5], %s5376_s28 }
0x207b   : > { %p6643_p7 = pnand %p6647_p13, %p9283_p1 }
0x207d   : > { %p6644_p9 = pneg %p6643_p7 }
0x207f   : > { %7453 = dma.done.wait (%p6644_p9), %s5377_s27, 512  }
0x2080   : > { %7455 = vsyncadd (%p6644_p9), %s5377_s27, 4294966784  ;;  %s38_s26 = sadd.s32 1, %s9280_s19   ;;  %s9285_s15 = sld [smem:[#allocation27_spill]] }
0x2081   : > { %p9083_p8 = scmp.ge.s32.totalorder %s38_s26, 8   ;;  %s9286_s23 = sld [smem:[#allocation48_spill]] }
0x2082   : > { %s9287_s16 = sld [smem:[#allocation28_spill]]  ;;  %s9296_s13 = smov %s7462_s14 }
0x2083   : > { %s9288_s17 = sld [smem:[#allocation29_spill]]  ;;  %s9299_s22 = smov %s7502_s24 }
0x2084   : > { %s9289_s18 = sld [smem:[#allocation47_spill]] }
0x2085   : > { %s9290_s19 = sld [smem:[#allocation31_spill]] }
0x2086   : > { %s9291_s20 = sld [smem:[#allocation32_spill]]  ;;  %s9297_s14 = smov %s9285_s15 }
0x2087   : > { %s9292_s21 = sld [smem:[#allocation40_spill]]  ;;  %s9298_s15 = smov %s9286_s23 }
0x2088   : > { %s9293_s12 = sld [smem:[#allocation46_spill]]  ;;  %s9300_s23 = smov %s7506_s25 }
0x2089   : > { %s9294_s29 = sld [smem:[#allocation36_spill]] }
0x208b   :  { %37 = sbr.rel (!%p9083_p8) target bundleno = 30 (0x1e), region = 219 }
0x208e   : > { %s9301_s24 = smov %s9293_s12 }
0x208f   : > { %s9302_s25 = smov %s9294_s29 }
0x2090   :  { %5382 = vsyncpa [#allocation4], 1 }
0x2091   :  { %5384 = vsyncpa [#allocation4 + $0x1], 1 }
0x2092   :  { %5385 = vsyncpa [#allocation7], 1 }
0x2093   :  { %5387 = vsyncpa [#allocation7 + $0x1], 1 }
0x2094   :  { %5388 = vsyncpa [#allocation10], 1 }
0x2095   :  { %5390 = vsyncpa [#allocation10 + $0x1], 1 }
0x2096   :  { %5391 = vsyncpa [#allocation13], 1 }
0x2097   :  { %5393 = vsyncpa [#allocation13 + $0x1], 1 }
0x2098   :  { %5394 = vsyncpa [#allocation16], 1 }
0x2099   :  { %5396 = vsyncpa [#allocation16 + $0x1], 1 }
0x209a   :  { %5397 = vsyncpa [#allocation5], 1 }
0x209b   :  { %5399 = vsyncpa [#allocation5 + $0x1], 1 }

</bundles_post_ra>
